<compile_context>
chip_gen: v5e
topology: v5e:2x2
jax: 0.10.0
libtpu: 0.0.40
codegen_flags: <defaults>
</compile_context>

<pallas_src>
import jax
import jax.numpy as jnp
from jax import lax
from jax.experimental import pallas as pl
from jax.experimental.pallas import tpu as pltpu


# ------------------------------------------------------------------------------ kernel
def _cfd_gnn_pool_kernel(src_ref, dst_ref, x_ref, pos_ref, w_ref, b_ref, wsc_ref,
                         xout_ref, score_ref,
                         x0_ref, pij_ref, acc_ref, degc_ref, row_ref):
    f32 = jnp.float32
    p = pl.program_id(0)            # 0 = message-passing pass, 1 = scorer pass
    e = pl.program_id(1)            # edge tile index
    ne = pl.num_programs(1)

    N, H = x0_ref.shape
    TE = src_ref.shape[1]
    DX = x_ref.shape[1]
    DP = pos_ref.shape[1]
    # weight-slab row offsets (all multiples of 8; H % 8 == 0)
    o_m1 = DX + DP                  # wm1 (2H rows: [0:H] -> x_i/dst, [H:2H] -> x_j/src)
    o_m2 = o_m1 + 2 * H             # wm2 (H rows)
    o_u1 = o_m2 + H                 # wu1 (2H rows, concat-fused [x0 | agg])
    o_u2 = o_u1 + 2 * H             # wu2 (H rows)

    def silu(v):
        return v * (1.0 / (1.0 + jnp.exp(-v)))

    # -------- phase 0, first tile: node-local embed + message pre-projection ----------
    @pl.when(jnp.logical_and(p == 0, e == 0))
    def _init():
        h = jnp.dot(x_ref[...], w_ref[0:DX, :], preferred_element_type=f32) + b_ref[0:1, :]
        ang = jnp.dot(pos_ref[...], w_ref[DX:DX + DP, :], preferred_element_type=f32)
        x0 = h + jnp.sin(ang + b_ref[1:2, :])       # single-sin sincos embed (phase row)
        x0_ref[...] = x0
        # pre-project message-net layer 1 once per node (gather(x0) @ W == gather(x0 @ W))
        pij_ref[0:N, :] = jnp.dot(x0, w_ref[o_m1:o_m1 + H, :],
                                  preferred_element_type=f32)            # x_i (dst) part
        pij_ref[N:2 * N, :] = jnp.dot(x0, w_ref[o_m1 + H:o_m1 + 2 * H, :],
                                      preferred_element_type=f32)        # x_j (src) part
        acc_ref[...] = jnp.zeros_like(acc_ref)
        degc_ref[...] = jnp.zeros_like(degc_ref)
        row_ref[...] = jnp.zeros_like(row_ref)

    # -------- stacked one-hot for this edge tile ---------------------------------------
    # rows [0, N) match dst (targets), rows [N, 2N) match src (sources).
    # Padded edges carry index 2N and therefore match nothing.
    dst_t = dst_ref[...]                                                  # [1, TE] int32
    src_t = src_ref[...]
    iota2 = lax.broadcasted_iota(jnp.int32, (2 * N, TE), 0)
    oh2 = jnp.logical_or(iota2 == dst_t, iota2 == src_t + N).astype(f32)  # [2N, TE]
    d_oh = oh2[:N, :]                                                     # [N, TE]

    # -------- phase 0: per-edge messages, accumulate sums & degrees --------------------
    @pl.when(p == 0)
    def _message():
        # fused gather: pre[e] = p_i[dst[e]] + p_j[src[e]]   (one K=2N matmul)
        pre = lax.dot_general(oh2, pij_ref[...], (((0,), (0,)), ((), ())),
                              preferred_element_type=f32) + b_ref[2:3, :]   # [TE, H]
        m = jnp.dot(silu(pre), w_ref[o_m2:o_m2 + H, :],
                    preferred_element_type=f32) + b_ref[3:4, :]             # [TE, H]
        acc_ref[...] += jnp.dot(d_oh, m, preferred_element_type=f32)        # scatter-add
        degc_ref[...] += jnp.sum(d_oh, axis=1, keepdims=True)               # deg (column)
        row_ref[2:3, :] += lax.dot_general(jnp.ones((1, TE), f32), d_oh,
                                           (((1,), (1,)), ((), ())),
                                           preferred_element_type=f32)      # deg (row)

    # -------- phase 0, last tile: mean, update net, scorer projections -----------------
    @pl.when(jnp.logical_and(p == 0, e == ne - 1))
    def _update():
        # one divide per node at finalize; exact division kept so the script stays
        # tightly comparable to the f32 reference (pl.reciprocal(approx=True) also works).
        inv_deg = 1.0 / jnp.maximum(degc_ref[...], 1.0)                     # [N, 1]
        agg = acc_ref[...] * inv_deg
        x0 = x0_ref[...]
        cat = jnp.concatenate([x0, agg], axis=-1)                           # [N, 2H]
        u = silu(jnp.dot(cat, w_ref[o_u1:o_u1 + 2 * H, :],
                         preferred_element_type=f32) + b_ref[4:5, :])
        x1 = x0 + jnp.dot(u, w_ref[o_u2:o_u2 + H, :],
                          preferred_element_type=f32) + b_ref[5:6, :]
        xout_ref[...] = x1
        # project-then-gather scorer: row 0 = x1 @ w_rel, row 1 = x1 @ w_root  (as [2, N])
        row_ref[0:2, :] = lax.dot_general(wsc_ref[...], x1, (((0,), (1,)), ((), ())),
                                          preferred_element_type=f32)
        row_ref[2:3, :] = 1.0 / jnp.maximum(row_ref[2:3, :], 1.0)           # inv_deg row
        row_ref[3:4, :] = jnp.zeros((1, N), f32)                            # score acc

    # -------- phase 1: scatter-mean of the scalar neighbour score ----------------------
    @pl.when(p == 1)
    def _score_pass():
        s_oh = oh2[N:, :]                                                   # [N, TE]
        s1_e = jnp.dot(row_ref[0:1, :], s_oh, preferred_element_type=f32)   # [1, TE]
        row_ref[3:4, :] += lax.dot_general(s1_e, d_oh, (((1,), (1,)), ((), ())),
                                           preferred_element_type=f32)      # [1, N]

    @pl.when(jnp.logical_and(p == 1, e == ne - 1))
    def _finalize():
        # lane-dense [1, N] output (node axis on lanes)
        score_ref[...] = (row_ref[3:4, :] * row_ref[2:3, :]
                          + b_ref[6:7, 0:1] + row_ref[1:2, :])


# ----------------------------------------------------------------------------- wrapper
def run_node_kernel(params, x, mesh_pos, mesh_edges, *, edge_tile=128):
    f32 = jnp.float32
    N0, din = x.shape
    ndim = mesh_pos.shape[1]
    H = params["wm2"].shape[0]
    assert H % 8 == 0

    def rup(a, m):
        return (a + m - 1) // m * m

    N = rup(N0, 8)
    DX = rup(din, 8)
    DP = rup(ndim, 8)
    E0 = mesh_edges.shape[0]
    E = rup(max(E0, edge_tile), edge_tile)
    ne = E // edge_tile

    # pad nodes / feature dims with zeros, pad edges with the "match nothing" index 2N
    xp = jnp.zeros((N, DX), f32).at[:N0, :din].set(x.astype(f32))
    pp = jnp.zeros((N, DP), f32).at[:N0, :ndim].set(mesh_pos.astype(f32))
    pad_val = 2 * N
    src = jnp.full((1, E), pad_val, jnp.int32).at[0, :E0].set(
        mesh_edges[:, 0].astype(jnp.int32))
    dst = jnp.full((1, E), pad_val, jnp.int32).at[0, :E0].set(
        mesh_edges[:, 1].astype(jnp.int32))

    # ---- pack weights into one [R, H] slab (row offsets all multiples of 8) ----------
    def pad_rows(w, rows):
        return jnp.zeros((rows, H), f32).at[:w.shape[0]].set(w)

    wslab = jnp.concatenate([
        pad_rows(params["w_proj"], DX),     # rows [0, DX)
        pad_rows(params["w_pe"], DP),       # rows [DX, DX+DP)
        params["wm1"],                      # 2H rows
        params["wm2"],                      # H rows
        params["wu1"],                      # 2H rows
        params["wu2"],                      # H rows
    ], axis=0)
    brel_row = jnp.zeros((1, H), f32).at[0, 0].set(params["b_rel"])
    bslab = jnp.concatenate([
        params["b_proj"], params["phase"], params["bm1"], params["bm2"],
        params["bu1"], params["bu2"], brel_row], axis=0)                    # [7, H]
    w_sc = jnp.concatenate([params["w_rel"], params["w_root"]], axis=1)     # [H, 2]

    grid_spec = pltpu.PrefetchScalarGridSpec(
        num_scalar_prefetch=0,
        grid=(2, ne),                               # (phase, edge tile)
        in_specs=[
            pl.BlockSpec((1, edge_tile), lambda p, e: (0, e)),   # src ids
            pl.BlockSpec((1, edge_tile), lambda p, e: (0, e)),   # dst ids
            pl.BlockSpec((N, DX), lambda p, e: (0, 0)),          # node features (resident)
            pl.BlockSpec((N, DP), lambda p, e: (0, 0)),          # node positions
            pl.BlockSpec(wslab.shape, lambda p, e: (0, 0)),      # weight slab
            pl.BlockSpec((7, H), lambda p, e: (0, 0)),           # bias / phase slab
            pl.BlockSpec((H, 2), lambda p, e: (0, 0)),           # [w_rel | w_root]
        ],
        out_specs=(
            pl.BlockSpec((N, H), lambda p, e: (0, 0)),           # node features out
            pl.BlockSpec((1, N), lambda p, e: (0, 0)),           # lane-dense scores
        ),
        scratch_shapes=[
            pltpu.VMEM((N, H), f32),        # x0
            pltpu.VMEM((2 * N, H), f32),    # stacked message pre-projections [p_i; p_j]
            pltpu.VMEM((N, H), f32),        # message-sum accumulator
            pltpu.VMEM((N, 1), f32),        # in-degree (column form)
            pltpu.VMEM((4, N), f32),        # rows: s1, root, inv_deg, score accumulator
        ],
    )

    x1_full, score_row = pl.pallas_call(
        _cfd_gnn_pool_kernel,
        grid_spec=grid_spec,
        out_shape=(jax.ShapeDtypeStruct((N, H), f32),
                   jax.ShapeDtypeStruct((1, N), f32)),
        compiler_params=pltpu.CompilerParams(
            # phase is sequential and edge tiles accumulate into shared scratch, so both
            # axes are reductions; raise vmem_limit_bytes for larger meshes per-generation.
            dimension_semantics=("arbitrary", "arbitrary"),
            vmem_limit_bytes=32 * 1024 * 1024),
    )(src, dst, xp, pp, wslab, bslab, w_sc)
    return x1_full[:N0], score_row[0, :N0]


def sag_pool_topk(x_nodes, score, batch_idx, num_graphs, k):
    # plain-JAX glue: fixed-k top-k per graph + tanh gating (SAGPooling semantics).
    # TODO(synk): graphs with fewer than k nodes would pick cross-graph filler rows.
    perms = []
    for b in range(num_graphs):
        masked = jnp.where(batch_idx == b, score, -jnp.inf)
        _, idx = jax.lax.top_k(masked, k)
        perms.append(idx)
    perm = jnp.concatenate(perms)
    x_pool = x_nodes[perm] * jnp.tanh(score[perm])[:, None]
    batch_pool = batch_idx[perm]
    return x_pool, batch_pool


def cfd_gnn_pool_forward(params, x, mesh_pos, mesh_edges, batch_idx,
                         num_graphs, num_output_nodes):
    x_nodes, score = run_node_kernel(params, x, mesh_pos, mesh_edges)
    return sag_pool_topk(x_nodes, score, batch_idx, num_graphs, num_output_nodes)


# ------------------------------------------------------------------------------ params
def init_params(key, input_dim, hidden_dim, ndim):
    H = hidden_dim
    assert H % (2 * ndim) == 0 and H % 8 == 0
    f32 = jnp.float32
    ks = jax.random.split(key, 14)

    def xavier(k, fi, fo):
        lim = (6.0 / (fi + fo)) ** 0.5
        return jax.random.uniform(k, (fi, fo), f32, -lim, lim)

    def small(k, shape):
        # the PyTorch module zero-inits biases; small random biases used here so the
        # packed-slab plumbing is actually exercised by the correctness check.
        return 0.1 * jax.random.normal(k, shape, f32)

    eff = H // ndim                                 # lanes per coordinate
    F = eff // 2                                    # number of frequencies
    omega = 1.0 / (10000.0 ** (jnp.arange(0, eff, 2, dtype=f32) / eff))     # [F]
    # w_pe maps pos -> angles replicated in the sin and cos lane groups; phase adds pi/2
    # on the cos lanes so the embedding is a single sin in-kernel.
    w_pe = jnp.zeros((ndim, H), f32)
    phase = jnp.zeros((1, H), f32)
    for d in range(ndim):
        base = d * 2 * F
        w_pe = w_pe.at[d, base:base + F].set(omega)
        w_pe = w_pe.at[d, base + F:base + 2 * F].set(omega)
        phase = phase.at[0, base + F:base + 2 * F].set(jnp.pi / 2)

    return dict(
        omega=omega[None, :], w_pe=w_pe, phase=phase,
        w_proj=xavier(ks[0], input_dim, H), b_proj=small(ks[7], (1, H)),
        wm1=xavier(ks[1], 2 * H, H), bm1=small(ks[8], (1, H)),      # rows [0:H]=x_i, [H:2H]=x_j
        wm2=xavier(ks[2], H, H), bm2=small(ks[9], (1, H)),
        wu1=xavier(ks[3], 2 * H, H), bu1=small(ks[10], (1, H)),     # rows [0:H]=x, [H:2H]=agg
        wu2=xavier(ks[4], H, H), bu2=small(ks[11], (1, H)),
        w_rel=xavier(ks[5], H, 1), b_rel=small(ks[12], ()),
        w_root=xavier(ks[6], H, 1),
    )


# --------------------------------------------------------------------------- reference
def reference_nodes(params, x, mesh_pos, mesh_edges):
    src = mesh_edges[:, 0]
    dst = mesh_edges[:, 1]
    N = x.shape[0]
    H = params["wm2"].shape[0]
    omega = params["omega"]

    def silu(v):
        return v * jax.nn.sigmoid(v)

    h = x @ params["w_proj"] + params["b_proj"]
    parts = []
    for d in range(mesh_pos.shape[1]):
        ang = mesh_pos[:, d:d + 1] * omega
        parts += [jnp.sin(ang), jnp.cos(ang)]
    x0 = h + jnp.concatenate(parts, axis=-1)

    deg = jax.ops.segment_sum(jnp.ones((src.shape[0],), jnp.float32), dst, N)
    inv_deg = (1.0 / jnp.maximum(deg, 1.0))[:, None]

    m = silu(x0[dst] @ params["wm1"][:H] + x0[src] @ params["wm1"][H:] + params["bm1"])
    m = m @ params["wm2"] + params["bm2"]
    agg = jax.ops.segment_sum(m, dst, N) * inv_deg
    u = silu(x0 @ params["wu1"][:H] + agg @ params["wu1"][H:] + params["bu1"])
    x1 = x0 + u @ params["wu2"] + params["bu2"]

    agg_s = jax.ops.segment_sum(x1[src], dst, N) * inv_deg
    score = agg_s @ params["w_rel"] + params["b_rel"] + x1 @ params["w_root"]
    return x1, score[:, 0]


# --------------------------------------------------------------------------------- main
if __name__ == "__main__":
    key = jax.random.PRNGKey(0)
    input_dim, hidden_dim, ndim = 4, 32, 2
    num_output_nodes = 8
    B, N_per, E_per = 2, 32, 96          # E=192 -> padded to 256 -> 2 edge tiles
    N = B * N_per

    k_x, k_pos, k_edge, k_par = jax.random.split(key, 4)
    x = jax.random.normal(k_x, (N, input_dim), jnp.float32)
    mesh_pos = jax.random.uniform(k_pos, (N, ndim), jnp.float32)
    edge_keys = jax.random.split(k_edge, B)
    mesh_edges = jnp.concatenate(
        [jax.random.randint(edge_keys[b], (E_per, 2), 0, N_per, jnp.int32) + b * N_per
         for b in range(B)], axis=0)     # [E, 2] columns = (src, dst)
    batch_idx = jnp.repeat(jnp.arange(B, dtype=jnp.int32), N_per)

    params = init_params(k_par, input_dim, hidden_dim, ndim)

    x_pool, batch_pool = cfd_gnn_pool_forward(
        params, x, mesh_pos, mesh_edges, batch_idx, B, num_output_nodes)
    jax.block_until_ready((x_pool, batch_pool))

    # sanity check of the Pallas node kernel against a pure-JAX reference
    x_ker, score_ker = run_node_kernel(params, x, mesh_pos, mesh_edges)
    x_ref, score_ref = reference_nodes(params, x, mesh_pos, mesh_edges)
    assert x_pool.shape == (B * num_output_nodes, hidden_dim)
    assert batch_pool.shape == (B * num_output_nodes,)
    assert jnp.allclose(x_ker, x_ref, atol=2e-3, rtol=2e-3), \
        float(jnp.abs(x_ker - x_ref).max())
    assert jnp.allclose(score_ker, score_ref, atol=2e-3, rtol=2e-3), \
        float(jnp.abs(score_ker - score_ref).max())

    print("KERNEL_OK")
</pallas_src>

<mosaic_0001>
module attributes {stable_mosaic.version = 11 : i64} {
  func.func @_cfd_gnn_pool_kernel(%arg0: i32, %arg1: i32, %arg2: memref<1x128xi32, #tpu.memory_space<vmem>>, %arg3: memref<1x128xi32, #tpu.memory_space<vmem>>, %arg4: memref<64x8xf32, #tpu.memory_space<vmem>>, %arg5: memref<64x8xf32, #tpu.memory_space<vmem>>, %arg6: memref<208x32xf32, #tpu.memory_space<vmem>>, %arg7: memref<7x32xf32, #tpu.memory_space<vmem>>, %arg8: memref<32x2xf32, #tpu.memory_space<vmem>>, %arg9: memref<64x32xf32, #tpu.memory_space<vmem>>, %arg10: memref<1x64xf32, #tpu.memory_space<vmem>>, %arg11: memref<64x32xf32, #tpu.memory_space<vmem>>, %arg12: memref<128x32xf32, #tpu.memory_space<vmem>>, %arg13: memref<64x32xf32, #tpu.memory_space<vmem>>, %arg14: memref<64x1xf32, #tpu.memory_space<vmem>>, %arg15: memref<4x64xf32, #tpu.memory_space<vmem>>) attributes {dimension_semantics = [#tpu.dimension_semantics<arbitrary>, #tpu.dimension_semantics<arbitrary>], iteration_bounds = array<i64: 2, 2>, scalar_prefetch = 0 : i64, scratch_operands = 5 : i64, tpu.core_type = #tpu.core_type<tc>, window_params = [{transform_indices = @transform_0, window_bounds = array<i64: 1, 128>}, {transform_indices = @transform_1, window_bounds = array<i64: 1, 128>}, {pipeline_mode = #tpu.pipeline_mode<synchronous>, transform_indices = @transform_2, window_bounds = array<i64: 64, 8>}, {pipeline_mode = #tpu.pipeline_mode<synchronous>, transform_indices = @transform_3, window_bounds = array<i64: 64, 8>}, {pipeline_mode = #tpu.pipeline_mode<synchronous>, transform_indices = @transform_4, window_bounds = array<i64: 208, 32>}, {pipeline_mode = #tpu.pipeline_mode<synchronous>, transform_indices = @transform_5, window_bounds = array<i64: 7, 32>}, {pipeline_mode = #tpu.pipeline_mode<synchronous>, transform_indices = @transform_6, window_bounds = array<i64: 32, 2>}, {pipeline_mode = #tpu.pipeline_mode<synchronous>, transform_indices = @transform_7, window_bounds = array<i64: 64, 32>}, {pipeline_mode = #tpu.pipeline_mode<synchronous>, transform_indices = @transform_8, window_bounds = array<i64: 1, 64>}]} {
    %c0_i32 = arith.constant 0 : i32
    %0 = arith.cmpi eq, %arg0, %c0_i32 : i32
    %c0_i32_0 = arith.constant 0 : i32
    %1 = arith.cmpi eq, %arg1, %c0_i32_0 : i32
    %2 = arith.andi %0, %1 : i1
    %3 = arith.extui %2 : i1 to i32
    %c0_i32_1 = arith.constant 0 : i32
    %4 = arith.cmpi ne, %3, %c0_i32_1 : i32
    scf.if %4 {
      %c0_14 = arith.constant 0 : index
      %c0_15 = arith.constant 0 : index
      %34 = vector.load %arg4[%c0_14, %c0_15] : memref<64x8xf32, #tpu.memory_space<vmem>>, vector<64x8xf32>
      %c0_16 = arith.constant 0 : index
      %c0_17 = arith.constant 0 : index
      %35 = vector.load %arg6[%c0_16, %c0_17] : memref<208x32xf32, #tpu.memory_space<vmem>>, vector<8x32xf32>
      %cst = arith.constant dense<0.000000e+00> : vector<64x32xf32>
      %36 = tpu.matmul %34, %35, %cst {dimension_numbers = #tpu.dot_dimension_numbers<[1], [0], [0], [1], [0, 0, 1, 1], [], []>} : vector<64x8xf32>, vector<8x32xf32>, vector<64x32xf32> -> vector<64x32xf32>
      %c0_18 = arith.constant 0 : index
      %c0_19 = arith.constant 0 : index
      %37 = vector.load %arg7[%c0_18, %c0_19] : memref<7x32xf32, #tpu.memory_space<vmem>>, vector<1x32xf32>
      %38 = vector.broadcast %37 : vector<1x32xf32> to vector<64x32xf32>
      %39 = arith.addf %36, %38 : vector<64x32xf32>
      %c0_20 = arith.constant 0 : index
      %c0_21 = arith.constant 0 : index
      %40 = vector.load %arg5[%c0_20, %c0_21] : memref<64x8xf32, #tpu.memory_space<vmem>>, vector<64x8xf32>
      %c8 = arith.constant 8 : index
      %c0_22 = arith.constant 0 : index
      %41 = vector.load %arg6[%c8, %c0_22] : memref<208x32xf32, #tpu.memory_space<vmem>>, vector<8x32xf32>
      %cst_23 = arith.constant dense<0.000000e+00> : vector<64x32xf32>
      %42 = tpu.matmul %40, %41, %cst_23 {dimension_numbers = #tpu.dot_dimension_numbers<[1], [0], [0], [1], [0, 0, 1, 1], [], []>} : vector<64x8xf32>, vector<8x32xf32>, vector<64x32xf32> -> vector<64x32xf32>
      %c1 = arith.constant 1 : index
      %c0_24 = arith.constant 0 : index
      %43 = vector.load %arg7[%c1, %c0_24] : memref<7x32xf32, #tpu.memory_space<vmem>>, vector<1x32xf32>
      %44 = vector.broadcast %43 : vector<1x32xf32> to vector<64x32xf32>
      %45 = arith.addf %42, %44 : vector<64x32xf32>
      %46 = math.sin %45 : vector<64x32xf32>
      %47 = arith.addf %39, %46 : vector<64x32xf32>
      %c0_25 = arith.constant 0 : index
      %c0_26 = arith.constant 0 : index
      %48 = vector.load %arg11[%c0_25, %c0_26] : memref<64x32xf32, #tpu.memory_space<vmem>>, vector<64x32xf32>
      tpu.vector_store %arg11[%c0_25, %c0_26], %47 {strides = array<i32>} : memref<64x32xf32, #tpu.memory_space<vmem>>, vector<64x32xf32>,
      %c16 = arith.constant 16 : index
      %c0_27 = arith.constant 0 : index
      %49 = vector.load %arg6[%c16, %c0_27] : memref<208x32xf32, #tpu.memory_space<vmem>>, vector<32x32xf32>
      %cst_28 = arith.constant dense<0.000000e+00> : vector<64x32xf32>
      %50 = tpu.matmul %47, %49, %cst_28 {dimension_numbers = #tpu.dot_dimension_numbers<[1], [0], [0], [1], [0, 0, 1, 1], [], []>} : vector<64x32xf32>, vector<32x32xf32>, vector<64x32xf32> -> vector<64x32xf32>
      %c0_29 = arith.constant 0 : index
      %c0_30 = arith.constant 0 : index
      %51 = vector.load %arg12[%c0_29, %c0_30] : memref<128x32xf32, #tpu.memory_space<vmem>>, vector<64x32xf32>
      tpu.vector_store %arg12[%c0_29, %c0_30], %50 {strides = array<i32>} : memref<128x32xf32, #tpu.memory_space<vmem>>, vector<64x32xf32>,
      %c48 = arith.constant 48 : index
      %c0_31 = arith.constant 0 : index
      %52 = vector.load %arg6[%c48, %c0_31] : memref<208x32xf32, #tpu.memory_space<vmem>>, vector<32x32xf32>
      %cst_32 = arith.constant dense<0.000000e+00> : vector<64x32xf32>
      %53 = tpu.matmul %47, %52, %cst_32 {dimension_numbers = #tpu.dot_dimension_numbers<[1], [0], [0], [1], [0, 0, 1, 1], [], []>} : vector<64x32xf32>, vector<32x32xf32>, vector<64x32xf32> -> vector<64x32xf32>
      %c64 = arith.constant 64 : index
      %c0_33 = arith.constant 0 : index
      %54 = vector.load %arg12[%c64, %c0_33] : memref<128x32xf32, #tpu.memory_space<vmem>>, vector<64x32xf32>
      tpu.vector_store %arg12[%c64, %c0_33], %53 {strides = array<i32>} : memref<128x32xf32, #tpu.memory_space<vmem>>, vector<64x32xf32>,
      %cst_34 = arith.constant 0.000000e+00 : f32
      %55 = vector.broadcast %cst_34 : f32 to vector<64x32xf32>
      %c0_35 = arith.constant 0 : index
      %c0_36 = arith.constant 0 : index
      %56 = vector.load %arg13[%c0_35, %c0_36] : memref<64x32xf32, #tpu.memory_space<vmem>>, vector<64x32xf32>
      tpu.vector_store %arg13[%c0_35, %c0_36], %55 {strides = array<i32>} : memref<64x32xf32, #tpu.memory_space<vmem>>, vector<64x32xf32>,
      %cst_37 = arith.constant 0.000000e+00 : f32
      %57 = vector.broadcast %cst_37 : f32 to vector<64x1xf32>
      %c0_38 = arith.constant 0 : index
      %c0_39 = arith.constant 0 : index
      %58 = vector.load %arg14[%c0_38, %c0_39] : memref<64x1xf32, #tpu.memory_space<vmem>>, vector<64x1xf32>
      tpu.vector_store %arg14[%c0_38, %c0_39], %57 {strides = array<i32>} : memref<64x1xf32, #tpu.memory_space<vmem>>, vector<64x1xf32>,
      %cst_40 = arith.constant 0.000000e+00 : f32
      %59 = vector.broadcast %cst_40 : f32 to vector<4x64xf32>
      %c0_41 = arith.constant 0 : index
      %c0_42 = arith.constant 0 : index
      %60 = vector.load %arg15[%c0_41, %c0_42] : memref<4x64xf32, #tpu.memory_space<vmem>>, vector<4x64xf32>
      tpu.vector_store %arg15[%c0_41, %c0_42], %59 {strides = array<i32>} : memref<4x64xf32, #tpu.memory_space<vmem>>, vector<4x64xf32>,
    } else {
    }
    %c0 = arith.constant 0 : index
    %c0_2 = arith.constant 0 : index
    %5 = vector.load %arg3[%c0, %c0_2] : memref<1x128xi32, #tpu.memory_space<vmem>>, vector<1x128xi32>
    %c0_3 = arith.constant 0 : index
    %c0_4 = arith.constant 0 : index
    %6 = vector.load %arg2[%c0_3, %c0_4] : memref<1x128xi32, #tpu.memory_space<vmem>>, vector<1x128xi32>
    %7 = tpu.iota {dimensions = array<i32: 0>} : vector<128x128xi32>
    %8 = vector.broadcast %5 : vector<1x128xi32> to vector<128x128xi32>
    %9 = arith.cmpi eq, %7, %8 : vector<128x128xi32>
    %c64_i32 = arith.constant 64 : i32
    %10 = vector.broadcast %c64_i32 : i32 to vector<1x128xi32>
    %11 = arith.addi %6, %10 : vector<1x128xi32>
    %12 = vector.broadcast %11 : vector<1x128xi32> to vector<128x128xi32>
    %13 = arith.cmpi eq, %7, %12 : vector<128x128xi32>
    %14 = arith.ori %9, %13 : vector<128x128xi1>
    %15 = arith.extui %14 : vector<128x128xi1> to vector<128x128xi32>
    %16 = arith.sitofp %15 : vector<128x128xi32> to vector<128x128xf32>
    %17 = vector.extract_strided_slice %16 {offsets = [0, 0], sizes = [64, 128], strides = [1, 1]} : vector<128x128xf32> to vector<64x128xf32>
    %c0_i32_5 = arith.constant 0 : i32
    %18 = arith.cmpi eq, %arg0, %c0_i32_5 : i32
    %19 = arith.extui %18 : i1 to i32
    %c0_i32_6 = arith.constant 0 : i32
    %20 = arith.cmpi ne, %19, %c0_i32_6 : i32
    scf.if %20 {
      %c0_14 = arith.constant 0 : index
      %c0_15 = arith.constant 0 : index
      %34 = vector.load %arg12[%c0_14, %c0_15] : memref<128x32xf32, #tpu.memory_space<vmem>>, vector<128x32xf32>
      %cst = arith.constant dense<0.000000e+00> : vector<128x32xf32>
      %35 = tpu.matmul %16, %34, %cst {dimension_numbers = #tpu.dot_dimension_numbers<[0], [0], [1], [1], [0, 1, 1, 1], [], []>} : vector<128x128xf32>, vector<128x32xf32>, vector<128x32xf32> -> vector<128x32xf32>
      %c2 = arith.constant 2 : index
      %c0_16 = arith.constant 0 : index
      %36 = vector.load %arg7[%c2, %c0_16] : memref<7x32xf32, #tpu.memory_space<vmem>>, vector<1x32xf32>
      %37 = vector.broadcast %36 : vector<1x32xf32> to vector<128x32xf32>
      %38 = arith.addf %35, %37 : vector<128x32xf32>
      %cst_17 = arith.constant 0.000000e+00 : f32
      %39 = vector.broadcast %cst_17 : f32 to vector<128x32xf32>
      %40 = arith.subf %39, %38 : vector<128x32xf32>
      %41 = math.exp %40 : vector<128x32xf32>
      %cst_18 = arith.constant 1.000000e+00 : f32
      %42 = vector.broadcast %cst_18 : f32 to vector<128x32xf32>
      %43 = arith.addf %42, %41 : vector<128x32xf32>
      %cst_19 = arith.constant 1.000000e+00 : f32
      %44 = vector.broadcast %cst_19 : f32 to vector<128x32xf32>
      %45 = arith.divf %44, %43 : vector<128x32xf32>
      %46 = arith.mulf %38, %45 : vector<128x32xf32>
      %c80 = arith.constant 80 : index
      %c0_20 = arith.constant 0 : index
      %47 = vector.load %arg6[%c80, %c0_20] : memref<208x32xf32, #tpu.memory_space<vmem>>, vector<32x32xf32>
      %cst_21 = arith.constant dense<0.000000e+00> : vector<128x32xf32>
      %48 = tpu.matmul %46, %47, %cst_21 {dimension_numbers = #tpu.dot_dimension_numbers<[1], [0], [0], [1], [0, 0, 1, 1], [], []>} : vector<128x32xf32>, vector<32x32xf32>, vector<128x32xf32> -> vector<128x32xf32>
      %c3 = arith.constant 3 : index
      %c0_22 = arith.constant 0 : index
      %49 = vector.load %arg7[%c3, %c0_22] : memref<7x32xf32, #tpu.memory_space<vmem>>, vector<1x32xf32>
      %50 = vector.broadcast %49 : vector<1x32xf32> to vector<128x32xf32>
      %51 = arith.addf %48, %50 : vector<128x32xf32>
      %c0_23 = arith.constant 0 : index
      %c0_24 = arith.constant 0 : index
      %52 = vector.load %arg13[%c0_23, %c0_24] : memref<64x32xf32, #tpu.memory_space<vmem>>, vector<64x32xf32>
      %cst_25 = arith.constant dense<0.000000e+00> : vector<64x32xf32>
      %53 = tpu.matmul %17, %51, %cst_25 {dimension_numbers = #tpu.dot_dimension_numbers<[1], [0], [0], [1], [0, 0, 1, 1], [], []>} : vector<64x128xf32>, vector<128x32xf32>, vector<64x32xf32> -> vector<64x32xf32>
      %54 = arith.addf %52, %53 : vector<64x32xf32>
      %c0_26 = arith.constant 0 : index
      %c0_27 = arith.constant 0 : index
      %55 = vector.load %arg13[%c0_26, %c0_27] : memref<64x32xf32, #tpu.memory_space<vmem>>, vector<64x32xf32>
      tpu.vector_store %arg13[%c0_26, %c0_27], %54 {strides = array<i32>} : memref<64x32xf32, #tpu.memory_space<vmem>>, vector<64x32xf32>,
      %c0_28 = arith.constant 0 : index
      %c0_29 = arith.constant 0 : index
      %56 = vector.load %arg14[%c0_28, %c0_29] : memref<64x1xf32, #tpu.memory_space<vmem>>, vector<64x1xf32>
      %cst_30 = arith.constant dense<0.000000e+00> : vector<64xf32>
      %57 = vector.multi_reduction <add>, %17, %cst_30 [1] : vector<64x128xf32> to vector<64xf32>
      %58 = vector.shape_cast %57 : vector<64xf32> to vector<64x1xf32>
      %59 = arith.addf %56, %58 : vector<64x1xf32>
      %c0_31 = arith.constant 0 : index
      %c0_32 = arith.constant 0 : index
      %60 = vector.load %arg14[%c0_31, %c0_32] : memref<64x1xf32, #tpu.memory_space<vmem>>, vector<64x1xf32>
      tpu.vector_store %arg14[%c0_31, %c0_32], %59 {strides = array<i32>} : memref<64x1xf32, #tpu.memory_space<vmem>>, vector<64x1xf32>,
      %c2_33 = arith.constant 2 : index
      %c0_34 = arith.constant 0 : index
      %61 = vector.load %arg15[%c2_33, %c0_34] : memref<4x64xf32, #tpu.memory_space<vmem>>, vector<1x64xf32>
      %cst_35 = arith.constant 1.000000e+00 : f32
      %62 = vector.broadcast %cst_35 : f32 to vector<1x128xf32>
      %cst_36 = arith.constant dense<0.000000e+00> : vector<1x64xf32>
      %63 = tpu.matmul %62, %17, %cst_36 {dimension_numbers = #tpu.dot_dimension_numbers<[1], [1], [0], [0], [0, 0, 1, 0], [], []>} : vector<1x128xf32>, vector<64x128xf32>, vector<1x64xf32> -> vector<1x64xf32>
      %64 = arith.addf %61, %63 : vector<1x64xf32>
      %c2_37 = arith.constant 2 : index
      %c0_38 = arith.constant 0 : index
      %65 = vector.load %arg15[%c2_37, %c0_38] : memref<4x64xf32, #tpu.memory_space<vmem>>, vector<1x64xf32>
      tpu.vector_store %arg15[%c2_37, %c0_38], %64 {strides = array<i32>} : memref<4x64xf32, #tpu.memory_space<vmem>>, vector<1x64xf32>,
    } else {
    }
    %c0_i32_7 = arith.constant 0 : i32
    %21 = arith.cmpi eq, %arg0, %c0_i32_7 : i32
    %c1_i32 = arith.constant 1 : i32
    %22 = arith.cmpi eq, %arg1, %c1_i32 : i32
    %23 = arith.andi %21, %22 : i1
    %24 = arith.extui %23 : i1 to i32
    %c0_i32_8 = arith.constant 0 : i32
    %25 = arith.cmpi ne, %24, %c0_i32_8 : i32
    scf.if %25 {
      %c0_14 = arith.constant 0 : index
      %c0_15 = arith.constant 0 : index
      %34 = vector.load %arg14[%c0_14, %c0_15] : memref<64x1xf32, #tpu.memory_space<vmem>>, vector<64x1xf32>
      %cst = arith.constant 1.000000e+00 : f32
      %35 = vector.broadcast %cst : f32 to vector<64x1xf32>
      %36 = arith.maximumf %34, %35 : vector<64x1xf32>
      %cst_16 = arith.constant 1.000000e+00 : f32
      %37 = vector.broadcast %cst_16 : f32 to vector<64x1xf32>
      %38 = arith.divf %37, %36 : vector<64x1xf32>
      %c0_17 = arith.constant 0 : index
      %c0_18 = arith.constant 0 : index
      %39 = vector.load %arg13[%c0_17, %c0_18] : memref<64x32xf32, #tpu.memory_space<vmem>>, vector<64x32xf32>
      %40 = vector.broadcast %38 : vector<64x1xf32> to vector<64x32xf32>
      %41 = arith.mulf %39, %40 : vector<64x32xf32>
      %c0_19 = arith.constant 0 : index
      %c0_20 = arith.constant 0 : index
      %42 = vector.load %arg11[%c0_19, %c0_20] : memref<64x32xf32, #tpu.memory_space<vmem>>, vector<64x32xf32>
      %43 = tpu.concatenate %42, %41 in 1 : vector<64x32xf32>, vector<64x32xf32> -> vector<64x64xf32>
      %c112 = arith.constant 112 : index
      %c0_21 = arith.constant 0 : index
      %44 = vector.load %arg6[%c112, %c0_21] : memref<208x32xf32, #tpu.memory_space<vmem>>, vector<64x32xf32>
      %cst_22 = arith.constant dense<0.000000e+00> : vector<64x32xf32>
      %45 = tpu.matmul %43, %44, %cst_22 {dimension_numbers = #tpu.dot_dimension_numbers<[1], [0], [0], [1], [0, 0, 1, 1], [], []>} : vector<64x64xf32>, vector<64x32xf32>, vector<64x32xf32> -> vector<64x32xf32>
      %c4 = arith.constant 4 : index
      %c0_23 = arith.constant 0 : index
      %46 = vector.load %arg7[%c4, %c0_23] : memref<7x32xf32, #tpu.memory_space<vmem>>, vector<1x32xf32>
      %47 = vector.broadcast %46 : vector<1x32xf32> to vector<64x32xf32>
      %48 = arith.addf %45, %47 : vector<64x32xf32>
      %cst_24 = arith.constant 0.000000e+00 : f32
      %49 = vector.broadcast %cst_24 : f32 to vector<64x32xf32>
      %50 = arith.subf %49, %48 : vector<64x32xf32>
      %51 = math.exp %50 : vector<64x32xf32>
      %cst_25 = arith.constant 1.000000e+00 : f32
      %52 = vector.broadcast %cst_25 : f32 to vector<64x32xf32>
      %53 = arith.addf %52, %51 : vector<64x32xf32>
      %cst_26 = arith.constant 1.000000e+00 : f32
      %54 = vector.broadcast %cst_26 : f32 to vector<64x32xf32>
      %55 = arith.divf %54, %53 : vector<64x32xf32>
      %56 = arith.mulf %48, %55 : vector<64x32xf32>
      %c176 = arith.constant 176 : index
      %c0_27 = arith.constant 0 : index
      %57 = vector.load %arg6[%c176, %c0_27] : memref<208x32xf32, #tpu.memory_space<vmem>>, vector<32x32xf32>
      %cst_28 = arith.constant dense<0.000000e+00> : vector<64x32xf32>
      %58 = tpu.matmul %56, %57, %cst_28 {dimension_numbers = #tpu.dot_dimension_numbers<[1], [0], [0], [1], [0, 0, 1, 1], [], []>} : vector<64x32xf32>, vector<32x32xf32>, vector<64x32xf32> -> vector<64x32xf32>
      %59 = arith.addf %42, %58 : vector<64x32xf32>
      %c5 = arith.constant 5 : index
      %c0_29 = arith.constant 0 : index
      %60 = vector.load %arg7[%c5, %c0_29] : memref<7x32xf32, #tpu.memory_space<vmem>>, vector<1x32xf32>
      %61 = vector.broadcast %60 : vector<1x32xf32> to vector<64x32xf32>
      %62 = arith.addf %59, %61 : vector<64x32xf32>
      %c0_30 = arith.constant 0 : index
      %c0_31 = arith.constant 0 : index
      %63 = vector.load %arg9[%c0_30, %c0_31] : memref<64x32xf32, #tpu.memory_space<vmem>>, vector<64x32xf32>
      tpu.vector_store %arg9[%c0_30, %c0_31], %62 {strides = array<i32>} : memref<64x32xf32, #tpu.memory_space<vmem>>, vector<64x32xf32>,
      %c0_32 = arith.constant 0 : index
      %c0_33 = arith.constant 0 : index
      %64 = vector.load %arg8[%c0_32, %c0_33] : memref<32x2xf32, #tpu.memory_space<vmem>>, vector<32x2xf32>
      %cst_34 = arith.constant dense<0.000000e+00> : vector<2x64xf32>
      %65 = tpu.matmul %64, %62, %cst_34 {dimension_numbers = #tpu.dot_dimension_numbers<[0], [1], [1], [0], [0, 1, 1, 0], [], []>} : vector<32x2xf32>, vector<64x32xf32>, vector<2x64xf32> -> vector<2x64xf32>
      %c0_35 = arith.constant 0 : index
      %c0_36 = arith.constant 0 : index
      %66 = vector.load %arg15[%c0_35, %c0_36] : memref<4x64xf32, #tpu.memory_space<vmem>>, vector<2x64xf32>
      tpu.vector_store %arg15[%c0_35, %c0_36], %65 {strides = array<i32>} : memref<4x64xf32, #tpu.memory_space<vmem>>, vector<2x64xf32>,
      %c2 = arith.constant 2 : index
      %c0_37 = arith.constant 0 : index
      %67 = vector.load %arg15[%c2, %c0_37] : memref<4x64xf32, #tpu.memory_space<vmem>>, vector<1x64xf32>
      %cst_38 = arith.constant 1.000000e+00 : f32
      %68 = vector.broadcast %cst_38 : f32 to vector<1x64xf32>
      %69 = arith.maximumf %67, %68 : vector<1x64xf32>
      %cst_39 = arith.constant 1.000000e+00 : f32
      %70 = vector.broadcast %cst_39 : f32 to vector<1x64xf32>
      %71 = arith.divf %70, %69 : vector<1x64xf32>
      %c2_40 = arith.constant 2 : index
      %c0_41 = arith.constant 0 : index
      %72 = vector.load %arg15[%c2_40, %c0_41] : memref<4x64xf32, #tpu.memory_space<vmem>>, vector<1x64xf32>
      tpu.vector_store %arg15[%c2_40, %c0_41], %71 {strides = array<i32>} : memref<4x64xf32, #tpu.memory_space<vmem>>, vector<1x64xf32>,
      %cst_42 = arith.constant 0.000000e+00 : f32
      %73 = vector.broadcast %cst_42 : f32 to vector<1x64xf32>
      %c3 = arith.constant 3 : index
      %c0_43 = arith.constant 0 : index
      %74 = vector.load %arg15[%c3, %c0_43] : memref<4x64xf32, #tpu.memory_space<vmem>>, vector<1x64xf32>
      tpu.vector_store %arg15[%c3, %c0_43], %73 {strides = array<i32>} : memref<4x64xf32, #tpu.memory_space<vmem>>, vector<1x64xf32>,
    } else {
    }
    %c1_i32_9 = arith.constant 1 : i32
    %26 = arith.cmpi eq, %arg0, %c1_i32_9 : i32
    %27 = arith.extui %26 : i1 to i32
    %c0_i32_10 = arith.constant 0 : i32
    %28 = arith.cmpi ne, %27, %c0_i32_10 : i32
    scf.if %28 {
      %34 = vector.extract_strided_slice %16 {offsets = [64, 0], sizes = [64, 128], strides = [1, 1]} : vector<128x128xf32> to vector<64x128xf32>
      %c0_14 = arith.constant 0 : index
      %c0_15 = arith.constant 0 : index
      %35 = vector.load %arg15[%c0_14, %c0_15] : memref<4x64xf32, #tpu.memory_space<vmem>>, vector<1x64xf32>
      %cst = arith.constant dense<0.000000e+00> : vector<1x128xf32>
      %36 = tpu.matmul %35, %34, %cst {dimension_numbers = #tpu.dot_dimension_numbers<[1], [0], [0], [1], [0, 0, 1, 1], [], []>} : vector<1x64xf32>, vector<64x128xf32>, vector<1x128xf32> -> vector<1x128xf32>
      %c3 = arith.constant 3 : index
      %c0_16 = arith.constant 0 : index
      %37 = vector.load %arg15[%c3, %c0_16] : memref<4x64xf32, #tpu.memory_space<vmem>>, vector<1x64xf32>
      %cst_17 = arith.constant dense<0.000000e+00> : vector<1x64xf32>
      %38 = tpu.matmul %36, %17, %cst_17 {dimension_numbers = #tpu.dot_dimension_numbers<[1], [1], [0], [0], [0, 0, 1, 0], [], []>} : vector<1x128xf32>, vector<64x128xf32>, vector<1x64xf32> -> vector<1x64xf32>
      %39 = arith.addf %37, %38 : vector<1x64xf32>
      %c3_18 = arith.constant 3 : index
      %c0_19 = arith.constant 0 : index
      %40 = vector.load %arg15[%c3_18, %c0_19] : memref<4x64xf32, #tpu.memory_space<vmem>>, vector<1x64xf32>
      tpu.vector_store %arg15[%c3_18, %c0_19], %39 {strides = array<i32>} : memref<4x64xf32, #tpu.memory_space<vmem>>, vector<1x64xf32>,
    } else {
    }
    %c1_i32_11 = arith.constant 1 : i32
    %29 = arith.cmpi eq, %arg0, %c1_i32_11 : i32
    %c1_i32_12 = arith.constant 1 : i32
    %30 = arith.cmpi eq, %arg1, %c1_i32_12 : i32
    %31 = arith.andi %29, %30 : i1
    %32 = arith.extui %31 : i1 to i32
    %c0_i32_13 = arith.constant 0 : i32
    %33 = arith.cmpi ne, %32, %c0_i32_13 : i32
    scf.if %33 {
      %c3 = arith.constant 3 : index
      %c0_14 = arith.constant 0 : index
      %34 = vector.load %arg15[%c3, %c0_14] : memref<4x64xf32, #tpu.memory_space<vmem>>, vector<1x64xf32>
      %c2 = arith.constant 2 : index
      %c0_15 = arith.constant 0 : index
      %35 = vector.load %arg15[%c2, %c0_15] : memref<4x64xf32, #tpu.memory_space<vmem>>, vector<1x64xf32>
      %36 = arith.mulf %34, %35 : vector<1x64xf32>
      %c6 = arith.constant 6 : index
      %c0_16 = arith.constant 0 : index
      %37 = vector.load %arg7[%c6, %c0_16] : memref<7x32xf32, #tpu.memory_space<vmem>>, vector<1x1xf32>
      %38 = vector.broadcast %37 : vector<1x1xf32> to vector<1x64xf32>
      %39 = arith.addf %36, %38 : vector<1x64xf32>
      %c1 = arith.constant 1 : index
      %c0_17 = arith.constant 0 : index
      %40 = vector.load %arg15[%c1, %c0_17] : memref<4x64xf32, #tpu.memory_space<vmem>>, vector<1x64xf32>
      %41 = arith.addf %39, %40 : vector<1x64xf32>
      %c0_18 = arith.constant 0 : index
      %c0_19 = arith.constant 0 : index
      %42 = vector.load %arg10[%c0_18, %c0_19] : memref<1x64xf32, #tpu.memory_space<vmem>>, vector<1x64xf32>
      tpu.vector_store %arg10[%c0_18, %c0_19], %41 {strides = array<i32>} : memref<1x64xf32, #tpu.memory_space<vmem>>, vector<1x64xf32>,
    } else {
    }
    return
  }
  func.func @transform_0(%arg0: i32, %arg1: i32) -> (i32, i32) {
    %c0_i32 = arith.constant 0 : i32
    %c0_i32_0 = arith.constant 0 : i32
    return %c0_i32, %arg1 : i32, i32
  }
  func.func @transform_1(%arg0: i32, %arg1: i32) -> (i32, i32) {
    %c0_i32 = arith.constant 0 : i32
    %c0_i32_0 = arith.constant 0 : i32
    return %c0_i32, %arg1 : i32, i32
  }
  func.func @transform_2(%arg0: i32, %arg1: i32) -> (i32, i32) {
    %c0_i32 = arith.constant 0 : i32
    %c0_i32_0 = arith.constant 0 : i32
    %c0_i32_1 = arith.constant 0 : i32
    return %c0_i32, %c0_i32_0 : i32, i32
  }
  func.func @transform_3(%arg0: i32, %arg1: i32) -> (i32, i32) {
    %c0_i32 = arith.constant 0 : i32
    %c0_i32_0 = arith.constant 0 : i32
    %c0_i32_1 = arith.constant 0 : i32
    return %c0_i32, %c0_i32_0 : i32, i32
  }
  func.func @transform_4(%arg0: i32, %arg1: i32) -> (i32, i32) {
    %c0_i32 = arith.constant 0 : i32
    %c0_i32_0 = arith.constant 0 : i32
    %c0_i32_1 = arith.constant 0 : i32
    return %c0_i32, %c0_i32_0 : i32, i32
  }
  func.func @transform_5(%arg0: i32, %arg1: i32) -> (i32, i32) {
    %c0_i32 = arith.constant 0 : i32
    %c0_i32_0 = arith.constant 0 : i32
    %c0_i32_1 = arith.constant 0 : i32
    return %c0_i32, %c0_i32_0 : i32, i32
  }
  func.func @transform_6(%arg0: i32, %arg1: i32) -> (i32, i32) {
    %c0_i32 = arith.constant 0 : i32
    %c0_i32_0 = arith.constant 0 : i32
    %c0_i32_1 = arith.constant 0 : i32
    return %c0_i32, %c0_i32_0 : i32, i32
  }
  func.func @transform_7(%arg0: i32, %arg1: i32) -> (i32, i32) {
    %c0_i32 = arith.constant 0 : i32
    %c0_i32_0 = arith.constant 0 : i32
    %c0_i32_1 = arith.constant 0 : i32
    return %c0_i32, %c0_i32_0 : i32, i32
  }
  func.func @transform_8(%arg0: i32, %arg1: i32) -> (i32, i32) {
    %c0_i32 = arith.constant 0 : i32
    %c0_i32_0 = arith.constant 0 : i32
    %c0_i32_1 = arith.constant 0 : i32
    return %c0_i32, %c0_i32_0 : i32, i32
  }
}

</mosaic_0001>

<bundles_post_ra>
// kernel: tpu_custom_call.1
= control target key start
LH: loop header
LB: loop body
LE: loop exit
PB: predicated region body
PF: predicated region fallthrough
CT: control target
= control target key end

     0   :  { %14 = vsyncpa [#allocation8], 0  ;;  %s3991_s27 = smov 0   ;;  %s3993_s28 = smov 0   ;;  %s6190_s0 = inlined_call_operand.vmem [shape: s32[1,256], index: 0, kind: input, shape index: {}]   ;;  %s6191_s1 = inlined_call_operand.vmem [shape: s32[1,256], index: 1, kind: input, shape index: {}]   ;;  %s6192_s2 = inlined_call_operand.vmem [shape: f32[64,8], index: 2, kind: input, shape index: {}]   ;;  %s6193_s3 = inlined_call_operand.vmem [shape: f32[64,8], index: 3, kind: input, shape index: {}]   ;;  %s6194_s4 = inlined_call_operand.vmem [shape: f32[208,32], index: 4, kind: input, shape index: {}]   ;;  %s6195_s5 = inlined_call_operand.vmem [shape: f32[7,32], index: 5, kind: input, shape index: {}]   ;;  %s6196_s6 = inlined_call_operand.vmem [shape: f32[32,2], index: 6, kind: input, shape index: {}]   ;;  %s6197_s7 = inlined_call_operand.vmem [shape: f32[64,32], index: 7, kind: output, shape index: {0}]   ;;  %s6198_s8 = inlined_call_operand.hbm [shape: f32[1,64], index: 8, kind: output, shape index: {1}]  }
   0x1   :  { %s3995_s29 = smov 0   ;;  %s3997_s30 = smov 0  }
   0x2   :  { %s3999_s9 = smov 0  }
   0x3 LB: > { %s3490_s10 = sadd.s32 4294967295, %s3928_s9   ;;  %s29_s11 = sadd.s32 1, %s3920_s29  ;;  %s3928_s9 = sphi %s3999_s9, %s20_s9   ;;  %s3924_s30 = sphi %s3997_s30, %s6523_s30   ;;  %s3920_s29 = sphi %s3995_s29, %s6522_s29   ;;  %s3916_s28 = sphi %s3993_s28, %s6521_s28   ;;  %s3912_s27 = sphi %s3991_s27, %s6520_s27  }
   0x4   : > { %p30_p0 = scmp.ge.s32.totalorder %s29_s11, 2  ;;  %s32_s12 = sadd.s32 1, %s3924_s30 }
   0x5   : > { %p3493_p1 = scmp.ge.s32.totalorder %s3928_s9, 1  ;;  %p274_p2 = scmp.lt.s32.totalorder %s3928_s9, 5 }
   0x6   : > { %s6525_s11 = smov (%p30_p0, %s29_s11), 0  ;;  %s6527_s12 = smov (!%p30_p0, %s32_s12), %s3924_s30 }
   0x7   : > { %p275_p3 = pnand %p3493_p1, %p274_p2  ;;  %p34_p4 = scmp.ge.s32.totalorder %s6527_s12, 2 }
   0x8   : > { %p304_p5 = scmp.lt.s32.totalorder (!%p275_p3), %s3912_s27, 1  ;;  %p310_p6 = scmp.eq.s32.totalorder (!%p275_p3), %s3916_s28, 0 }
   0x9   : > { %s6529_s12 = smov (%p34_p4, %s6527_s12), 0  ;;  %278 = sbr.rel (%p275_p3) target bundleno = 2712 (0xa98), region = 48 }
   0xa   : > { %p311_p7 = scmp.eq.s32.totalorder (!%p275_p3), %s3912_s27, 0 }
   0xc   : > { %p312_p8 = pnand (!%p275_p3), %p311_p7, %p310_p6 }
   0xe   : > { %s4030_s13 = scalar_select %p304_p5, %s3912_s27, 1 }
   0xf   : > { %315 = sbr.rel (%p312_p8) target bundleno = 625 (0x271), region = 52 }
  0x10   : > { %s306_s16 = scalar_lea.vmem %s6190_s0, %s4030_s13  ;;  %s309_s19 = scalar_lea.vmem %s6191_s1, %s4030_s13 }
  0x14   : > { %v401_v0 = vld [vmem:[%s6194_s4 + $0x8] sm:$0xff]  ;;  %vm327_vm0 = vcmask 64512   ;;  %v393_v1 = vld [vmem:[%s6193_s3] sm:$0xff]  ;;  %v395_v3 = vld [vmem:[%s6193_s3 + $0x10] sm:$0xff]  ;;  %v6207_v33 = vmov 1326507024  }
  0x15   : > { %443 = vmatpush.msra.mxu1 %v401_v0  ;;  %v394_v2 = vld [vmem:[%s6193_s3 + $0x8] sm:$0xff]  ;;  %v396_v4 = vld [vmem:[%s6193_s3 + $0x18] sm:$0xff]  ;;  %v324_v5 = vld [vmem:[%s6194_s4] sm:$0xff]  ;;  %v6203_v38 = vmov 920167782  }
  0x16   : > { %3502 = vmatmul.msk.f32.vlgmr.msra.gmra.mxu1 %vm327_vm0, %v393_v1  ;;  %v316_v6 = vld [vmem:[%s6192_s2] sm:$0xff]  ;;  %367 = vmatpush.msra.mxu0 %v324_v5  ;;  %v317_v8 = vld [vmem:[%s6192_s2 + $0x8] sm:$0xff]  ;;  %v318_v10 = vld [vmem:[%s6192_s2 + $0x10] sm:$0xff]  ;;  %v6209_v40 = vmov 2131351028  }
  0x17   : > { %3494 = vmatmul.msk.f32.vlgmr.msra.gmra.mxu0 %vm327_vm0, %v316_v6  ;;  %v397_v7 = vld [vmem:[%s6193_s3 + $0x20] sm:$0xff]  ;;  %v398_v9 = vld [vmem:[%s6193_s3 + $0x28] sm:$0xff]  ;;  %v399_v11 = vld [vmem:[%s6193_s3 + $0x30] sm:$0xff]  ;;  %v6205_v42 = vmov 2102212464  }
  0x18   : > { %v319_v12 = vld [vmem:[%s6192_s2 + $0x18] sm:$0xff]  ;;  %v320_v14 = vld [vmem:[%s6192_s2 + $0x20] sm:$0xff]  ;;  %v321_v15 = vld [vmem:[%s6192_s2 + $0x28] sm:$0xff]  ;;  %v6211_v46 = vmov 2475754826  }
  0x19   : > { %v400_v13 = vld [vmem:[%s6193_s3 + $0x38] sm:$0xff]  ;;  %v4107_v16 = vld [vmem:[%s6195_s5 + $0x1] ss:$0 sm:$0xff]  ;;  %v322_v23 = vld [vmem:[%s6192_s2 + $0x30] sm:$0xff]  ;;  %v6221_v61 = vmov 683565275  }
  0x1a   : > { %v323_v52 = vld [vmem:[%s6192_s2 + $0x38] sm:$0xff] }
  0x1e   : > { %3503 = vmatmul.msk.f32.gmra.mxu1 %vm327_vm0, %v394_v2 }
  0x1f   : > { %3495 = vmatmul.msk.f32.gmra.mxu0 %vm327_vm0, %v317_v8 }
  0x26   : > { %3504 = vmatmul.msk.f32.gmra.mxu1 %vm327_vm0, %v395_v3 }
  0x27   : > { %3496 = vmatmul.msk.f32.gmra.mxu0 %vm327_vm0, %v318_v10 }
  0x2e   : > { %3505 = vmatmul.msk.f32.gmra.mxu1 %vm327_vm0, %v396_v4 }
  0x2f   : > { %3497 = vmatmul.msk.f32.gmra.mxu0 %vm327_vm0, %v319_v12 }
  0x36   : > { %3506 = vmatmul.msk.f32.gmra.mxu1 %vm327_vm0, %v397_v7 }
  0x37   : > { %3498 = vmatmul.msk.f32.gmra.mxu0 %vm327_vm0, %v320_v14 }
  0x3e   : > { %3507 = vmatmul.msk.f32.gmra.mxu1 %vm327_vm0, %v398_v9 }
  0x3f   : > { %3499 = vmatmul.msk.f32.gmra.mxu0 %vm327_vm0, %v321_v15 }
  0x46   : > { %3508 = vmatmul.msk.f32.gmra.mxu1 %vm327_vm0, %v399_v11 }
  0x47   : > { %3500 = vmatmul.msk.f32.gmra.mxu0 %vm327_vm0, %v322_v23 }
  0x4e   : > { %3509 = vmatmul.msk.f32.gmra.mxu1 %vm327_vm0, %v400_v13 }
  0x4f   : > { %3501 = vmatmul.msk.f32.gmra.mxu0 %vm327_vm0, %v323_v52 }
  0x93   : > { %v445_v17 = vpop.f32.mrf.mxu1 }
  0x94   : > { %v4110_v18 = vadd.f32 %v4107_v16, %v445_v17 }
  0x96   : > { %6288 = vst [vmem:[#allocation10_spill] sm:$0xff] %v4110_v18  ;;  %v472_v19 = vand.u32 2139095040, %v4110_v18  ;;  %v6202_v31 = vand.u32 2147483647, %v4110_v18  ;;  %v6319_v18 = vmov 2475754826  }
  0x98   : > { %v473_v20 = vshrl.u32 %v472_v19, 23  ;;  %v476_v36 = vand.u32 8388607, %v6202_v31 }
  0x9a   : > { %v3510_v21 = vadd.s32 4294967169, %v473_v20  ;;  %v477_v53 = vor.u32 8388608, %v476_v36 }
  0x9b   : > { %v448_v22 = vpop.f32.mrf.mxu1 }
  0x9c   : > { %v479_v24 = vadd.s32 1, %v3510_v21  ;;  %v4117_v25 = vadd.f32 %v4107_v16, %v448_v22  ;;  %v4150_v63 = vshll.u32 %v477_v53, 8 }
  0x9e   : > { %6289 = vst [vmem:[#allocation11_spill] sm:$0xff] %v4117_v25  ;;  %vm480_vm1 = vcmp.gt.s32.totalorder %v479_v24, 0  ;;  %v627_v27 = vand.u32 2139095040, %v4117_v25  ;;  %v6201_v2 = vand.u32 2147483647, %v4117_v25  ;;  %v4167_v8 = vand.u32 65535, %v4150_v63 }
  0x9f   : > { %v481_v26 = vsel %vm480_vm1, %v479_v24, 0  ;;  %6291 = vst [vmem:[#allocation13_spill] sm:$0xff] %v4150_v63 }
  0xa0   : > { %v483_v28 = vand.u32 31, %v481_v26  ;;  %v628_v29 = vshrl.u32 %v627_v27, 23  ;;  %v4125_v37 = vshrl.u32 %v481_v26, 5  ;;  %v631_v9 = vand.u32 8388607, %v6201_v2 }
  0xa2   : > { %v484_v30 = vsub.s32 32, %v483_v28  ;;  %v3513_v32 = vadd.s32 4294967169, %v628_v29  ;;  %v498_v39 = vshll.u32 %v6203_v38, %v483_v28  ;;  %v489_v47 = vshll.u32 %v6211_v46, %v483_v28 }
  0xa3   : > { %v492_v48 = vshll.u32 %v6209_v40, %v483_v28  ;;  %v495_v49 = vshll.u32 %v6205_v42, %v483_v28  ;;  %v451_v51 = vpop.f32.mrf.mxu1  ;;  %vm504_vm3 = vcmp.lt.s32.totalorder %v4125_v37, 4  ;;  %v486_v62 = vshll.u32 %v6221_v61, %v483_v28 }
  0xa4   : > { %v499_v34 = vshrl.u32 %v6207_v33, %v484_v30  ;;  %v634_v35 = vadd.s32 1, %v3513_v32  ;;  %v490_v41 = vshrl.u32 %v6209_v40, %v484_v30  ;;  %v493_v43 = vshrl.u32 %v6205_v42, %v484_v30 }
  0xa5   : > { %v496_v44 = vshrl.u32 %v6203_v38, %v484_v30  ;;  %v487_v57 = vshrl.u32 %v6211_v46, %v484_v30  ;;  %v4145_v60 = vadd.f32 %v4107_v16, %v451_v51  ;;  %vm501_vm4 = vcmp.lt.s32.totalorder %v4125_v37, 1 }
  0xa6   : > { %vm635_vm2 = vcmp.gt.s32.totalorder %v634_v35, 0  ;;  %v500_v45 = vor.u32 %v499_v34, %v498_v39  ;;  %v491_v54 = vor.u32 %v490_v41, %v489_v47  ;;  %v494_v55 = vor.u32 %v493_v43, %v492_v48 }
  0xa7   : > { %v636_v50 = vsel %vm635_vm2, %v634_v35, 0  ;;  %v497_v56 = vor.u32 %v496_v44, %v495_v49  ;;  %6290 = vst [vmem:[#allocation12_spill] sm:$0xff] %v4145_v60  ;;  %vm503_vm5 = vcmp.lt.s32.totalorder %v4125_v37, 3  ;;  %v488_v4 = vor.u32 %v487_v57, %v486_v62 }
  0xa8   : > { %v514_v58 = vsel %vm504_vm3, %v500_v45, 1326507024  ;;  %v4142_v59 = vand.u32 31, %v636_v50  ;;  %v513_v0 = vsel %vm501_vm4, %v491_v54, %v494_v55  ;;  %v782_v5 = vand.u32 2139095040, %v4145_v60 }
  0xa9   : > { %v515_v1 = vsel %vm503_vm5, %v497_v56, %v514_v58  ;;  %vm502_vm6 = vcmp.lt.s32.totalorder %v4125_v37, 2  ;;  %v510_v6 = vsel %vm504_vm3, %v497_v56, 920167782  ;;  %v485_v11 = vshrl.u32 %v6221_v61, %v484_v30 }
  0xaa   : > { %v4158_v3 = vsub.s32 32, %v4142_v59  ;;  %v516_v7 = vsel %vm502_vm6, %v513_v0, %v515_v1  ;;  %v506_v12 = vsel %vm504_vm3, %v494_v55, 2102212464  ;;  %v509_v13 = vsel %vm501_vm4, %v488_v4, %v491_v54 }
  0xab   : > { %v783_v14 = vshrl.u32 %v782_v5, 23  ;;  %v511_v15 = vsel %vm503_vm5, %v494_v55, %v510_v6  ;;  %v521_v17 = vshrl.u32 %v516_v7, 16  ;;  %v4180_v19 = vshrl.u32 %v636_v50, 5  ;;  %v454_v26 = vpop.f32.mrf.mxu1 }
  0xac   : > { %v654_v10 = vshrl.u32 %v6207_v33, %v4158_v3  ;;  %v653_v20 = vshll.u32 %v6203_v38, %v4142_v59  ;;  %v645_v21 = vshrl.u32 %v6209_v40, %v4158_v3  ;;  %v648_v22 = vshrl.u32 %v6205_v42, %v4158_v3 }
  0xad   : > { %v651_v23 = vshrl.u32 %v6203_v38, %v4158_v3  ;;  %v3516_v24 = vadd.s32 4294967169, %v783_v14  ;;  %v505_v27 = vsel %vm501_vm4, %v485_v11, %v488_v4  ;;  %v519_v28 = vshrl.u32 %v4150_v63, 16 }
  0xae   : > { %v632_v29 = vor.u32 8388608, %v631_v9  ;;  %v655_v30 = vor.u32 %v654_v10, %v653_v20  ;;  %v507_v32 = vsel %vm503_vm5, %v491_v54, %v506_v12  ;;  %v644_v34 = vshll.u32 %v6211_v46, %v4142_v59 }
  0xaf   : > { %v647_v35 = vshll.u32 %v6209_v40, %v4142_v59  ;;  %v650_v36 = vshll.u32 %v6205_v42, %v4142_v59  ;;  %v512_v39 = vsel %vm502_vm6, %v509_v13, %v511_v15  ;;  %v4204_v41 = vmul.u32 %v521_v17, %v4167_v8 }
  0xb0   : > { %v789_v43 = vadd.s32 1, %v3516_v24  ;;  %v4207_v44 = vadd.f32 %v4107_v16, %v454_v26  ;;  %v646_v45 = vor.u32 %v645_v21, %v644_v34  ;;  %vm659_vm7 = vcmp.lt.s32.totalorder %v4180_v19, 4 }
  0xb1   : > { %v649_v47 = vor.u32 %v648_v22, %v647_v35  ;;  %v652_v48 = vor.u32 %v651_v23, %v650_v36  ;;  %v4212_v49 = vsel %vm502_vm6, %v505_v27, %v507_v32  ;;  %v520_v50 = vand.u32 65535, %v516_v7 }
  0xb2   : > { %6292 = vst [vmem:[#allocation14_spill] sm:$0xff] %v4207_v44  ;;  %v669_v51 = vsel %vm659_vm7, %v655_v30, 1326507024  ;;  %v4216_v52 = vshll.u32 %v632_v29, 8  ;;  %v542_v53 = vand.u32 65535, %v512_v39  ;;  %v543_v54 = vshrl.u32 %v512_v39, 16 }
  0xb3   : > { %6293 = vst [vmem:[#allocation15_spill] sm:$0xff] %v4212_v49  ;;  %v642_v55 = vshrl.u32 %v6211_v46, %v4158_v3  ;;  %vm790_vm8 = vcmp.gt.s32.totalorder %v789_v43, 0  ;;  %vm656_vm9 = vcmp.lt.s32.totalorder %v4180_v19, 1  ;;  %vm658_vm10 = vcmp.lt.s32.totalorder %v4180_v19, 3 }
  0xb4   : > { %6294 = vst [vmem:[#allocation16_spill] sm:$0xff] %v4216_v52  ;;  %v791_v56 = vsel %vm790_vm8, %v789_v43, 0  ;;  %v937_v37 = vand.u32 2139095040, %v4207_v44  ;;  %v526_v57 = vshll.u32 %v4204_v41, 16  ;;  %v668_v58 = vsel %vm656_vm9, %v646_v45, %v649_v47 }
  0xb5   : > { %v670_v62 = vsel %vm658_vm10, %v652_v48, %v669_v51  ;;  %v4228_v0 = vand.u32 31, %v791_v56  ;;  %v641_v4 = vshll.u32 %v6221_v61, %v4142_v59  ;;  %v4235_v5 = vand.u32 65535, %v4216_v52 }
  0xb6   : > { %v4238_v6 = vshrl.u32 %v4216_v52, 16  ;;  %v522_v7 = vmul.u32 %v520_v50, %v4167_v8  ;;  %v4241_v9 = vmul.u32 %v520_v50, %v519_v28  ;;  %vm657_vm11 = vcmp.lt.s32.totalorder %v4180_v19, 2 }
  0xb7   : > { %v4245_v10 = vsub.s32 32, %v4228_v0  ;;  %v643_v11 = vor.u32 %v642_v55, %v641_v4  ;;  %v4249_v12 = vsel %vm657_vm11, %v668_v58, %v670_v62  ;;  %v6200_v59 = vand.u32 2147483647, %v4145_v60 }
  0xb8   : > { %v938_v13 = vshrl.u32 %v937_v37, 23  ;;  %v525_v14 = vmul.u32 %v521_v17, %v519_v28  ;;  %vm530_vm12 = vc.u32 %v522_v7, %v526_v57  ;;  %v4253_v15 = vmul.u32 %v542_v53, %v4167_v8 }
  0xb9   : > { %v4256_v20 = vmul.u32 %v543_v54, %v4167_v8  ;;  %v4258_v21 = vmul.u32 %v542_v53, %v519_v28  ;;  %v640_v22 = vshrl.u32 %v6221_v61, %v4158_v3  ;;  %v661_v23 = vsel %vm659_vm7, %v649_v47, 2102212464 }
  0xba   : > { %v665_v24 = vsel %vm659_vm7, %v652_v48, 920167782  ;;  %v4267_v26 = vmul.u32 %v543_v54, %v519_v28  ;;  %v676_v27 = vshrl.u32 %v4249_v12, 16  ;;  %v809_v8 = vshrl.u32 %v6207_v33, %v4245_v10 }
  0xbb   : > { %v6213_v29 = vmov 0   ;;  %v660_v3 = vsel %vm656_vm9, %v640_v22, %v643_v11  ;;  %v664_v32 = vsel %vm656_vm9, %v643_v11, %v646_v45  ;;  %v3519_v34 = vadd.s32 4294967169, %v938_v13  ;;  %v457_v22 = vpop.f32.mrf.mxu1 }
  0xbc   : > { %v531_v30 = vsel %vm530_vm12, 1, %v6213_v29  ;;  %v662_v35 = vsel %vm658_vm10, %v646_v45, %v661_v23  ;;  %v666_v28 = vsel %vm658_vm10, %v649_v47, %v665_v24  ;;  %v4281_v36 = vshrl.u32 %v791_v56, 5 }
  0xbd   : > { %v808_v39 = vshll.u32 %v6203_v38, %v4228_v0  ;;  %v800_v43 = vshrl.u32 %v6209_v40, %v4245_v10  ;;  %v803_v48 = vshrl.u32 %v6205_v42, %v4245_v10  ;;  %v806_v50 = vshrl.u32 %v6203_v38, %v4245_v10 }
  0xbe   : > { %v944_v51 = vadd.s32 1, %v3519_v34  ;;  %v4291_v53 = vadd.s32 %v526_v57, %v522_v7  ;;  %v4294_v45 = vmul.u32 %v676_v27, %v4235_v5  ;;  %v786_v47 = vand.u32 8388607, %v6200_v59 }
  0xbf   : > { %v810_v54 = vor.u32 %v809_v8, %v808_v39  ;;  %v799_v55 = vshll.u32 %v6211_v46, %v4228_v0  ;;  %v802_v56 = vshll.u32 %v6209_v40, %v4228_v0  ;;  %v805_v37 = vshll.u32 %v6205_v42, %v4228_v0 }
  0xc0   : > { %vm945_vm13 = vcmp.gt.s32.totalorder %v944_v51, 0  ;;  %v4304_v58 = vadd.s32 %v531_v30, %v525_v14  ;;  %v4308_v57 = vsel %vm657_vm11, %v660_v3, %v662_v35  ;;  %v667_v62 = vsel %vm657_vm11, %v664_v32, %v666_v28 }
  0xc1   : > { %6295 = vst [vmem:[#allocation17_spill] sm:$0xff] %v4308_v57  ;;  %v675_v4 = vand.u32 65535, %v4249_v12  ;;  %v801_v7 = vor.u32 %v800_v43, %v799_v55  ;;  %v804_v11 = vor.u32 %v803_v48, %v802_v56  ;;  %v807_v13 = vor.u32 %v806_v50, %v805_v37 }
  0xc2   : > { %vm814_vm14 = vcmp.lt.s32.totalorder %v4281_v36, 4  ;;  %v787_v23 = vor.u32 8388608, %v786_v47  ;;  %v6199_v24 = vand.u32 2147483647, %v4207_v44  ;;  %v946_v8 = vsel %vm945_vm13, %v944_v51, 0 }
  0xc3   : > { %v824_v14 = vsel %vm814_vm14, %v810_v54, 1326507024  ;;  %v681_v30 = vshll.u32 %v4294_v45, 16  ;;  %v697_v3 = vand.u32 65535, %v667_v62  ;;  %v698_v19 = vshrl.u32 %v667_v62, 16  ;;  %v460_v2 = vpop.f32.mrf.mxu1 }
  0xc4   : > { %v797_v12 = vshrl.u32 %v6211_v46, %v4245_v10  ;;  %v677_v32 = vmul.u32 %v675_v4, %v4235_v5  ;;  %vm811_vm15 = vcmp.lt.s32.totalorder %v4281_v36, 1  ;;  %vm813_vm0 = vcmp.lt.s32.totalorder %v4281_v36, 3 }
  0xc5   : > { %v4324_v34 = vadd.f32 %v4107_v16, %v457_v22  ;;  %v796_v35 = vshll.u32 %v6221_v61, %v4228_v0  ;;  %v823_v28 = vsel %vm811_vm15, %v801_v7, %v804_v11  ;;  %v825_v39 = vsel %vm813_vm0, %v807_v13, %v824_v14 }
  0xc6   : > { %v948_v43 = vand.u32 31, %v946_v8  ;;  %v4333_v48 = vmul.u32 %v675_v4, %v4238_v6  ;;  %v4337_v51 = vshll.u32 %v787_v23, 8  ;;  %v941_v47 = vand.u32 8388607, %v6199_v24 }
  0xc7   : > { %6296 = vst [vmem:[#allocation18_spill] sm:$0xff] %v4324_v34  ;;  %v680_v0 = vmul.u32 %v676_v27, %v4238_v6  ;;  %vm685_vm1 = vc.u32 %v677_v32, %v681_v30  ;;  %v798_v54 = vor.u32 %v797_v12, %v796_v35  ;;  %vm812_vm2 = vcmp.lt.s32.totalorder %v4281_v36, 2 }
  0xc8   : > { %6297 = vst [vmem:[#allocation19_spill] sm:$0xff] %v4337_v51  ;;  %v4344_v55 = vmul.u32 %v697_v3, %v4235_v5  ;;  %v816_v56 = vsel %vm814_vm14, %v804_v11, 2102212464  ;;  %v4350_v37 = vsel %vm812_vm2, %v823_v28, %v825_v39  ;;  %v1092_v62 = vand.u32 2139095040, %v4324_v34 }
  0xc9   : > { %v4354_v4 = vmul.u32 %v698_v19, %v4235_v5  ;;  %v795_v27 = vshrl.u32 %v6221_v61, %v4245_v10  ;;  %v820_v22 = vsel %vm814_vm14, %v807_v13, 920167782  ;;  %v949_v23 = vsub.s32 32, %v948_v43 }
  0xca   : > { %v686_v14 = vsel %vm685_vm1, 1, %v6213_v29  ;;  %v4362_v12 = vmul.u32 %v697_v3, %v4238_v6  ;;  %v4365_v35 = vmul.u32 %v698_v19, %v4238_v6  ;;  %v942_v28 = vor.u32 8388608, %v941_v47 }
  0xcb   : > { %v815_v5 = vsel %vm811_vm15, %v795_v27, %v798_v54  ;;  %v817_v10 = vsel %vm813_vm0, %v801_v7, %v816_v56  ;;  %v6215_v13 = vshrl.u32 %v4350_v37, 16  ;;  %v819_v24 = vsel %vm811_vm15, %v798_v54, %v801_v7 }
  0xcc   : > { %v821_v3 = vsel %vm813_vm0, %v804_v11, %v820_v22  ;;  %v4378_v6 = vand.u32 65535, %v4337_v51  ;;  %v1093_v19 = vshrl.u32 %v1092_v62, 23  ;;  %v4380_v47 = vadd.s32 %v681_v30, %v677_v32 }
  0xcd   : > { %v4382_v59 = vadd.s32 %v686_v14, %v680_v0  ;;  %v4385_v27 = vshrl.u32 %v4337_v51, 16  ;;  %v964_v56 = vshrl.u32 %v6207_v33, %v949_v23  ;;  %v4390_v7 = vsel %vm812_vm2, %v815_v5, %v817_v10 }
  0xce   : > { %6298 = vst [vmem:[#allocation20_spill] sm:$0xff] %v4390_v7  ;;  %v961_v11 = vshrl.u32 %v6203_v38, %v949_v23  ;;  %v4393_v54 = vshll.u32 %v942_v28, 8  ;;  %v3522_v22 = vadd.s32 4294967169, %v1093_v19  ;;  %v822_v30 = vsel %vm812_vm2, %v819_v24, %v821_v3 }
  0xcf   : > { %v4400_v32 = vmul.u32 %v6215_v13, %v4378_v6  ;;  %v958_v0 = vshrl.u32 %v6205_v42, %v949_v23  ;;  %v963_v62 = vshll.u32 %v6203_v38, %v948_v43  ;;  %v947_v14 = vshrl.u32 %v946_v8, 5 }
  0xd0   : > { %6299 = vst [vmem:[#allocation21_spill] sm:$0xff] %v4393_v54  ;;  %v955_v5 = vshrl.u32 %v6209_v40, %v949_v23  ;;  %v960_v10 = vshll.u32 %v6205_v42, %v948_v43  ;;  %v4407_v28 = vadd.f32 %v4107_v16, %v460_v2  ;;  %v952_v36 = vshrl.u32 %v6211_v46, %v949_v23 }
  0xd1   : > { %6300 = vst [vmem:[#allocation22_spill] sm:$0xff] %v4400_v32  ;;  %v957_v24 = vshll.u32 %v6209_v40, %v948_v43  ;;  %v965_v3 = vor.u32 %v964_v56, %v963_v62  ;;  %v1099_v19 = vadd.s32 1, %v3522_v22  ;;  %v830_v31 = vand.u32 65535, %v4350_v37 }
  0xd2   : > { %6301 = vst [vmem:[#allocation23_spill] sm:$0xff] %v4407_v28  ;;  %v954_v8 = vshll.u32 %v6211_v46, %v948_v43  ;;  %v962_v1 = vor.u32 %v961_v11, %v960_v10  ;;  %v852_v39 = vand.u32 65535, %v822_v30  ;;  %v951_v17 = vshll.u32 %v6221_v61, %v948_v43 }
  0xd3   : > { %v959_v38 = vor.u32 %v958_v0, %v957_v24  ;;  %v6220_v2 = vand.u32 2147483647, %v4324_v34  ;;  %v836_v42 = vshll.u32 %v4400_v32, 16  ;;  %vm969_vm3 = vcmp.lt.s32.totalorder %v947_v14, 4 }
  0xd4   : > { %v956_v33 = vor.u32 %v955_v5, %v954_v8  ;;  %vm1100_vm4 = vcmp.gt.s32.totalorder %v1099_v19, 0  ;;  %v953_v56 = vor.u32 %v952_v36, %v951_v17  ;;  %v979_v22 = vsel %vm969_vm3, %v965_v3, 1326507024 }
  0xd5   : > { %v1101_v62 = vsel %vm1100_vm4, %v1099_v19, 0  ;;  %v1247_v40 = vand.u32 2139095040, %v4407_v28  ;;  %v832_v50 = vmul.u32 %v830_v31, %v4378_v6  ;;  %v853_v46 = vshrl.u32 %v822_v30, 16 }
  0xd6   : > { %v975_v11 = vsel %vm969_vm3, %v962_v1, 920167782  ;;  %v983_v10 = vand.u32 65535, %v4393_v54  ;;  %vm966_vm5 = vcmp.lt.s32.totalorder %v947_v14, 1  ;;  %vm968_vm6 = vcmp.lt.s32.totalorder %v947_v14, 3 }
  0xd7   : > { %v971_v43 = vsel %vm969_vm3, %v959_v38, 2102212464  ;;  %v1096_v0 = vand.u32 8388607, %v6220_v2  ;;  %v950_v5 = vshrl.u32 %v6221_v61, %v949_v23  ;;  %v978_v24 = vsel %vm966_vm5, %v956_v33, %v959_v38 }
  0xd8   : > { %v980_v17 = vsel %vm968_vm6, %v962_v1, %v979_v22  ;;  %v1103_v36 = vand.u32 31, %v1101_v62  ;;  %vm840_vm7 = vc.u32 %v832_v50, %v836_v42  ;;  %v974_v3 = vsel %vm966_vm5, %v953_v56, %v956_v33 }
  0xd9   : > { %v976_v19 = vsel %vm968_vm6, %v959_v38, %v975_v11  ;;  %v1248_v8 = vshrl.u32 %v1247_v40, 23  ;;  %v4425_v30 = vmul.u32 %v830_v31, %v4385_v27  ;;  %vm967_vm8 = vcmp.lt.s32.totalorder %v947_v14, 2 }
  0xda   : > { %v970_v29 = vsel %vm966_vm5, %v950_v5, %v953_v56  ;;  %v972_v13 = vsel %vm968_vm6, %v956_v33, %v971_v43  ;;  %v6303_v44 = vshrl.u32 %v4350_v37, 16  ;;  %v4431_v2 = vmul.u32 %v852_v39, %v4378_v6 }
  0xdb   : > { %6302 = vst [vmem:[#allocation24_spill] sm:$0xff] %v4425_v30  ;;  %v981_v23 = vsel %vm967_vm8, %v978_v24, %v980_v17  ;;  %v984_v1 = vshrl.u32 %v4393_v54, 16  ;;  %v6305_v22 = vmov 0   ;;  %v977_v38 = vsel %vm967_vm8, %v974_v3, %v976_v19  ;;  %v463_v54 = vpop.f32.mrf.mxu1 }
  0xdc   : > { %v835_v34 = vmul.u32 %v6303_v44, %v4385_v27  ;;  %6304 = vst [vmem:[#allocation25_spill] sm:$0xff] %v4431_v2  ;;  %v841_v61 = vsel %vm840_vm7, 1, %v6305_v22  ;;  %v1097_v40 = vor.u32 8388608, %v1096_v0  ;;  %v1104_v11 = vsub.s32 32, %v1103_v36 }
  0xdd   : > { %v4436_v31 = vmul.u32 %v853_v46, %v4378_v6  ;;  %v4439_v33 = vmul.u32 %v852_v39, %v4385_v27  ;;  %v4441_v14 = vsel %vm967_vm8, %v970_v29, %v972_v13  ;;  %v3525_v44 = vadd.s32 4294967169, %v1248_v8 }
  0xde   : > { %6308 = vst [vmem:[#allocation28_spill] sm:$0xff] %v4441_v14  ;;  %v4445_v56 = vmul.u32 %v853_v46, %v4385_v27  ;;  %v985_v43 = vand.u32 65535, %v981_v23  ;;  %v986_v5 = vshrl.u32 %v981_v23, 16  ;;  %v4447_v24 = vadd.s32 %v836_v42, %v832_v50 }
  0xdf   : > { %6306 = vst [vmem:[#allocation26_spill] sm:$0xff] %v4436_v31  ;;  %v4449_v0 = vadd.s32 %v841_v61, %v835_v34  ;;  %v1007_v17 = vand.u32 65535, %v977_v38  ;;  %v1254_v6 = vadd.s32 1, %v3525_v44  ;;  %v1008_v3 = vshrl.u32 %v977_v38, 16 }
  0xe0   : > { %6307 = vst [vmem:[#allocation27_spill] sm:$0xff] %v4439_v33  ;;  %v6312_v29 = vmov 1326507024   ;;  %v4454_v19 = vshll.u32 %v1097_v40, 8  ;;  %v6314_v8 = vmov 2102212464   ;;  %v987_v42 = vmul.u32 %v985_v43, %v983_v10 }
  0xe1   : > { %6309 = vst [vmem:[#allocation29_spill] sm:$0xff] %v4445_v56  ;;  %v1119_v13 = vshrl.u32 %v6312_v29, %v1104_v11  ;;  %v1113_v37 = vshrl.u32 %v6314_v8, %v1104_v11  ;;  %v6315_v46 = vmov 920167782   ;;  %vm1255_vm9 = vcmp.gt.s32.totalorder %v1254_v6, 0 }
  0xe2   : > { %6310 = vst [vmem:[#allocation30_spill] sm:$0xff] %v4447_v24  ;;  %v1116_v27 = vshrl.u32 %v6315_v46, %v1104_v11  ;;  %v4459_v61 = vmul.u32 %v986_v5, %v983_v10  ;;  %v1102_v34 = vshrl.u32 %v1101_v62, 5  ;;  %v1118_v50 = vshll.u32 %v6315_v46, %v1103_v36 }
  0xe3   : > { %6311 = vst [vmem:[#allocation31_spill] sm:$0xff] %v4449_v0  ;;  %v6317_v38 = vmov 2131351028   ;;  %v1115_v40 = vshll.u32 %v6314_v8, %v1103_v36  ;;  %v1256_v14 = vsel %vm1255_vm9, %v1254_v6, 0  ;;  %v4465_v60 = vmul.u32 %v985_v43, %v984_v1 }
  0xe4   : > { %6313 = vst [vmem:[#allocation32_spill] sm:$0xff] %v4454_v19  ;;  %v1110_v44 = vshrl.u32 %v6317_v38, %v1104_v11  ;;  %v1112_v39 = vshll.u32 %v6317_v38, %v1103_v36  ;;  %v990_v25 = vmul.u32 %v986_v5, %v984_v1  ;;  %v1107_v23 = vshrl.u32 %v6319_v18, %v1104_v11 }
  0xe5   : > { %6316 = vst [vmem:[#allocation33_spill] sm:$0xff] %v4459_v61  ;;  %v1120_v7 = vor.u32 %v1119_v13, %v1118_v50  ;;  %v4468_v51 = vmul.u32 %v1007_v17, %v983_v10  ;;  %v1109_v62 = vshll.u32 %v6319_v18, %v1103_v36  ;;  %v1117_v52 = vor.u32 %v1116_v27, %v1115_v40 }
  0xe6   : > { %6318 = vst [vmem:[#allocation34_spill] sm:$0xff] %v4465_v60  ;;  %v1114_v57 = vor.u32 %v1113_v37, %v1112_v39  ;;  %v4471_v0 = vmul.u32 %v1008_v3, %v983_v10  ;;  %v6322_v32 = vmov 683565275   ;;  %v4474_v24 = vand.u32 31, %v1256_v14 }
  0xe7   : > { %6320 = vst [vmem:[#allocation35_spill] sm:$0xff] %v4468_v51  ;;  %v1106_v56 = vshll.u32 %v6322_v32, %v1103_v36  ;;  %v4477_v6 = vadd.f32 %v4107_v16, %v463_v54  ;;  %v991_v43 = vshll.u32 %v4459_v61, 16  ;;  %v4480_v5 = vmul.u32 %v1007_v17, %v984_v1 }
  0xe8   : > { %6321 = vst [vmem:[#allocation36_spill] sm:$0xff] %v4471_v0  ;;  %v1111_v13 = vor.u32 %v1110_v44, %v1109_v62  ;;  %vm1124_vm10 = vcmp.lt.s32.totalorder %v1102_v34, 4  ;;  %v4482_v50 = vmul.u32 %v1008_v3, %v984_v1  ;;  %v6326_v10 = vand.u32 2147483647, %v4407_v28 }
  0xe9   : > { %6323 = vst [vmem:[#allocation37_spill] sm:$0xff] %v4477_v6  ;;  %v1108_v51 = vor.u32 %v1107_v23, %v1106_v56  ;;  %v1134_v37 = vsel %vm1124_vm10, %v1120_v7, 1326507024  ;;  %v1126_v27 = vsel %vm1124_vm10, %v1114_v57, 2102212464  ;;  %v4488_v54 = vsub.s32 32, %v4474_v24 }
  0xea   : > { %6324 = vst [vmem:[#allocation38_spill] sm:$0xff] %v4480_v5  ;;  %v1251_v39 = vand.u32 8388607, %v6326_v10  ;;  %v1130_v40 = vsel %vm1124_vm10, %v1117_v52, 920167782  ;;  %v1105_v61 = vshrl.u32 %v6322_v32, %v1104_v11  ;;  %vm1121_vm11 = vcmp.lt.s32.totalorder %v1102_v34, 1 }
  0xeb   : > { %6325 = vst [vmem:[#allocation39_spill] sm:$0xff] %v4482_v50  ;;  %vm1123_vm12 = vcmp.lt.s32.totalorder %v1102_v34, 3  ;;  %v1402_v17 = vand.u32 2139095040, %v4477_v6  ;;  %vm995_vm13 = vc.u32 %v987_v42, %v991_v43  ;;  %v1133_v1 = vsel %vm1121_vm11, %v1111_v13, %v1114_v57 }
  0xec   : > { %v1135_v56 = vsel %vm1123_vm12, %v1117_v52, %v1134_v37  ;;  %v1138_v7 = vand.u32 65535, %v4454_v19  ;;  %v1125_v3 = vsel %vm1121_vm11, %v1105_v61, %v1108_v51  ;;  %v1127_v23 = vsel %vm1123_vm12, %v1111_v13, %v1126_v27 }
  0xed   : > { %v1129_v44 = vsel %vm1121_vm11, %v1108_v51, %v1111_v13  ;;  %v1131_v62 = vsel %vm1123_vm12, %v1114_v57, %v1130_v40  ;;  %vm1122_vm14 = vcmp.lt.s32.totalorder %v1102_v34, 2  ;;  %v4494_v10 = vshrl.u32 %v4454_v19, 16 }
  0xee   : > { %v1252_v36 = vor.u32 8388608, %v1251_v39  ;;  %v1274_v11 = vshrl.u32 %v6312_v29, %v4488_v54  ;;  %v996_v28 = vsel %vm995_vm13, 1, %v6305_v22  ;;  %v4499_v50 = vadd.s32 %v991_v43, %v987_v42 }
  0xef   : > { %v1136_v5 = vsel %vm1122_vm14, %v1133_v1, %v1135_v56  ;;  %v1403_v52 = vshrl.u32 %v1402_v17, 23  ;;  %v4501_v37 = vsel %vm1122_vm14, %v1125_v3, %v1127_v23  ;;  %v4503_v61 = vsel %vm1122_vm14, %v1129_v44, %v1131_v62 }
  0xf0   : > { %6327 = vst [vmem:[#allocation40_spill] sm:$0xff] %v4499_v50  ;;  %v4505_v51 = vshrl.u32 %v1256_v14, 5  ;;  %v1273_v57 = vshll.u32 %v6315_v46, %v4474_v24  ;;  %v1265_v34 = vshrl.u32 %v6317_v38, %v4488_v54  ;;  %v1268_v13 = vshrl.u32 %v6314_v8, %v4488_v54 }
  0xf1   : > { %6328 = vst [vmem:[#allocation41_spill] sm:$0xff] %v4501_v37  ;;  %v1271_v42 = vshrl.u32 %v6315_v46, %v4488_v54  ;;  %v3528_v43 = vadd.s32 4294967169, %v1403_v52  ;;  %v4515_v39 = vadd.s32 %v996_v28, %v990_v25  ;;  %v1140_v27 = vand.u32 65535, %v1136_v5 }
  0xf2   : > { %v1275_v40 = vor.u32 %v1274_v11, %v1273_v57  ;;  %v4517_v17 = vshll.u32 %v1252_v36, 8  ;;  %v1141_v14 = vshrl.u32 %v1136_v5, 16  ;;  %v1264_v1 = vshll.u32 %v6319_v18, %v4474_v24  ;;  %v466_v36 = vpop.f32.mrf.mxu1 }
  0xf3   : > { %6329 = vst [vmem:[#allocation42_spill] sm:$0xff] %v4515_v39  ;;  %v1267_v56 = vshll.u32 %v6317_v38, %v4474_v24  ;;  %v1270_v3 = vshll.u32 %v6314_v8, %v4474_v24  ;;  %v1409_v28 = vadd.s32 1, %v3528_v43  ;;  %vm1279_vm15 = vcmp.lt.s32.totalorder %v4505_v51, 4 }
  0xf4   : > { %6330 = vst [vmem:[#allocation43_spill] sm:$0xff] %v4517_v17  ;;  %v4529_v62 = vor.u32 %v1265_v34, %v1264_v1  ;;  %v1289_v52 = vsel %vm1279_vm15, %v1275_v40, 1326507024  ;;  %v4535_v57 = vand.u32 65535, %v4517_v17  ;;  %v4538_v23 = vshrl.u32 %v4517_v17, 16 }
  0xf5   : > { %v1269_v5 = vor.u32 %v1268_v13, %v1267_v56  ;;  %v1272_v11 = vor.u32 %v1271_v42, %v1270_v3  ;;  %v4541_v25 = vmul.u32 %v1140_v27, %v1138_v7  ;;  %v4543_v43 = vmul.u32 %v1141_v14, %v1138_v7 }
  0xf6   : > { %vm1410_vm0 = vcmp.gt.s32.totalorder %v1409_v28, 0  ;;  %v4546_v34 = vadd.f32 %v4107_v16, %v466_v36  ;;  %v1262_v13 = vshrl.u32 %v6319_v18, %v4488_v54  ;;  %vm1276_vm1 = vcmp.lt.s32.totalorder %v4505_v51, 1 }
  0xf7   : > { %vm1278_vm2 = vcmp.lt.s32.totalorder %v4505_v51, 3  ;;  %v1411_v42 = vsel %vm1410_vm0, %v1409_v28, 0  ;;  %v4553_v40 = vmul.u32 %v1140_v27, %v4494_v10  ;;  %v1288_v1 = vsel %vm1276_vm1, %v4529_v62, %v1269_v5 }
  0xf8   : > { %6331 = vst [vmem:[#allocation44_spill] sm:$0xff] %v4546_v34  ;;  %v1290_v56 = vsel %vm1278_vm2, %v1272_v11, %v1289_v52  ;;  %v1413_v16 = vand.u32 31, %v1411_v42  ;;  %v4561_v3 = vmul.u32 %v1141_v14, %v4494_v10  ;;  %v6332_v36 = vand.u32 65535, %v4503_v61 }
  0xf9   : > { %v6334_v28 = vshrl.u32 %v4503_v61, 16  ;;  %v1261_v27 = vshll.u32 %v6322_v32, %v4474_v24  ;;  %vm1277_vm3 = vcmp.lt.s32.totalorder %v4505_v51, 2  ;;  %v6336_v19 = vand.u32 2147483647, %v4477_v6 }
  0xfa   : > { %v4565_v44 = vmul.u32 %v6332_v36, %v1138_v7  ;;  %v4576_v39 = vsub.s32 32, %v1413_v16  ;;  %v1557_v14 = vand.u32 2139095040, %v4546_v34  ;;  %v4581_v36 = vsel %vm1277_vm3, %v1288_v1, %v1290_v56 }
  0xfb   : > { %v4569_v37 = vmul.u32 %v6334_v28, %v1138_v7  ;;  %v1406_v52 = vand.u32 8388607, %v6336_v19  ;;  %v1263_v0 = vor.u32 %v1262_v13, %v1261_v27  ;;  %v1419_v7 = vshll.u32 %v6319_v18, %v1413_v16  ;;  %v1729_v13 = vld [vmem:[%s6194_s4 + $0x28] sm:$0xff] }
  0xfc   : > { %6333 = vst [vmem:[#allocation45_spill] sm:$0xff] %v4565_v44  ;;  %v4583_v44 = vshrl.u32 %v1411_v42, 5  ;;  %v1420_v24 = vshrl.u32 %v6317_v38, %v4576_v39  ;;  %v1422_v28 = vshll.u32 %v6317_v38, %v1413_v16  ;;  %v1423_v19 = vshrl.u32 %v6314_v8, %v4576_v39  ;;  %v1806_v42 = vld [vmem:[%s6194_s4 + $0x48] sm:$0xff]  ;;  %1766 = vmatpush.msra.mxu2 %v1729_v13 }
  0xfd   : > { %6335 = vst [vmem:[#allocation46_spill] sm:$0xff] %v4569_v37  ;;  %v1425_v6 = vshll.u32 %v6314_v8, %v1413_v16  ;;  %v1285_v1 = vsel %vm1279_vm15, %v1272_v11, 920167782  ;;  %v1426_v56 = vshrl.u32 %v6315_v46, %v4576_v39  ;;  %v1428_v27 = vshll.u32 %v6315_v46, %v1413_v16  ;;  %1819 = vmatpush.msra.mxu3 %v1806_v42 }
  0xfe   : > { %v1429_v37 = vshrl.u32 %v6312_v29, %v4576_v39  ;;  %v1146_v50 = vshll.u32 %v4543_v43, 16  ;;  %v1421_v60 = vor.u32 %v1420_v24, %v1419_v7  ;;  %v1424_v30 = vor.u32 %v1423_v19, %v1422_v28 }
  0xff   : > { %v1558_v49 = vshrl.u32 %v1557_v14, 23  ;;  %v1260_v63 = vshrl.u32 %v6322_v32, %v4488_v54  ;;  %v1296_v11 = vshrl.u32 %v4581_v36, 16  ;;  %v1427_v2 = vor.u32 %v1426_v56, %v1425_v6 }
 0x100   : > { %v1430_v33 = vor.u32 %v1429_v37, %v1428_v27  ;;  %v1281_v31 = vsel %vm1279_vm15, %v1269_v5, 2102212464  ;;  %v1284_v13 = vsel %vm1276_vm1, %v1263_v0, %v4529_v62  ;;  %v1286_v42 = vsel %vm1278_vm2, %v1269_v5, %v1285_v1 }
 0x101   : > { %vm1434_vm4 = vcmp.lt.s32.totalorder %v4583_v44, 4  ;;  %v1407_v14 = vor.u32 8388608, %v1406_v52  ;;  %vm1431_vm5 = vcmp.lt.s32.totalorder %v4583_v44, 1  ;;  %vm1433_vm6 = vcmp.lt.s32.totalorder %v4583_v44, 3 }
 0x102   : > { %v1444_v6 = vsel %vm1434_vm4, %v1430_v33, 1326507024  ;;  %v1417_v54 = vshrl.u32 %v6319_v18, %v4576_v39  ;;  %v1443_v37 = vsel %vm1431_vm5, %v1421_v60, %v1424_v30  ;;  %v3531_v5 = vadd.s32 4294967169, %v1558_v49 }
 0x103   : > { %v1445_v7 = vsel %vm1433_vm6, %v1427_v2, %v1444_v6  ;;  %vm4628_vm7 = vc.u32 %v4541_v25, %v1146_v50  ;;  %v6339_v24 = vand.u32 65535, %v4503_v61  ;;  %v4638_v33 = vmul.u32 %v1296_v11, %v4535_v57 }
 0x104   : > { %v1280_v1 = vsel %vm1276_vm1, %v1260_v63, %v1263_v0  ;;  %v1282_v49 = vsel %vm1278_vm2, %v4529_v62, %v1281_v31  ;;  %v1416_v56 = vshll.u32 %v6322_v32, %v1413_v16  ;;  %vm1432_vm8 = vcmp.lt.s32.totalorder %v4583_v44, 2  ;;  %v369_v44 = vpop.f32.mrf.mxu0 }
 0x105   : > { %v4635_v28 = vmul.u32 %v6339_v24, %v4494_v10  ;;  %v1287_v27 = vsel %vm1277_vm3, %v1284_v13, %v1286_v42  ;;  %v1295_v6 = vand.u32 65535, %v4581_v36  ;;  %v1446_v24 = vsel %vm1432_vm8, %v1443_v37, %v1445_v7 }
 0x106   : > { %v4653_v19 = vshll.u32 %v1407_v14, 8  ;;  %v6342_v0 = vshrl.u32 %v4503_v61, 16  ;;  %v1418_v62 = vor.u32 %v1417_v54, %v1416_v56  ;;  %v1564_v16 = vadd.s32 1, %v3531_v5 }
 0x107   : > { %6340 = vst [vmem:[#allocation47_spill] sm:$0xff] %v4635_v28  ;;  %v4662_v28 = vadd.s32 %v1146_v50, %v4541_v25  ;;  %v1301_v13 = vshll.u32 %v4638_v33, 16  ;;  %v1440_v36 = vsel %vm1434_vm4, %v1427_v2, 920167782  ;;  %v6343_v42 = vand.u32 2147483647, %v4546_v34 }
 0x108   : > { %6341 = vst [vmem:[#allocation48_spill] sm:$0xff] %v4653_v19  ;;  %v4659_v31 = vmul.u32 %v6342_v0, %v4494_v10  ;;  %v1151_v37 = vsel %vm4628_vm7, 1, %v6305_v22  ;;  %v4674_v10 = vsel %vm1277_vm3, %v1280_v1, %v1282_v49  ;;  %v1317_v61 = vand.u32 65535, %v1287_v27 }
 0x109   : > { %v1561_v14 = vand.u32 8388607, %v6343_v42  ;;  %6344 = vst [vmem:[#allocation49_spill] sm:$0xff] %v4674_v10  ;;  %v1451_v54 = vshrl.u32 %v1446_v24, 16  ;;  %v1297_v50 = vmul.u32 %v1295_v6, %v4535_v57  ;;  %v1318_v25 = vshrl.u32 %v1287_v27, 16 }
 0x10a   : > { %v1436_v7 = vsel %vm1434_vm4, %v1424_v30, 2102212464  ;;  %v1448_v2 = vand.u32 65535, %v4653_v19  ;;  %v1415_v5 = vshrl.u32 %v6322_v32, %v4576_v39  ;;  %v1439_v52 = vsel %vm1431_vm5, %v1418_v62, %v1421_v60 }
 0x10b   : > { %v1441_v51 = vsel %vm1433_vm6, %v1424_v30, %v1440_v36  ;;  %vm1565_vm9 = vcmp.gt.s32.totalorder %v1564_v16, 0  ;;  %v4687_v1 = vadd.s32 %v1151_v37, %v4561_v3  ;;  %vm1305_vm10 = vc.u32 %v1297_v50, %v1301_v13 }
 0x10c   : > { %v1562_v56 = vor.u32 8388608, %v1561_v14  ;;  %v4692_v27 = vmul.u32 %v1295_v6, %v4538_v23  ;;  %v1435_v39 = vsel %vm1431_vm5, %v1415_v5, %v1418_v62  ;;  %v1437_v0 = vsel %vm1433_vm6, %v1421_v60, %v1436_v7 }
 0x10d   : > { %v4698_v42 = vmul.u32 %v1451_v54, %v1448_v2  ;;  %v1300_v30 = vmul.u32 %v1296_v11, %v4538_v23  ;;  %v4702_v3 = vmul.u32 %v1317_v61, %v4535_v57  ;;  %v1442_v36 = vsel %vm1432_vm8, %v1439_v52, %v1441_v51 }
 0x10e   : > { %v1566_v14 = vsel %vm1565_vm9, %v1564_v16, 0  ;;  %v1306_v6 = vsel %vm1305_vm10, 1, %v6305_v22  ;;  %v4708_v37 = vmul.u32 %v1318_v25, %v4535_v57  ;;  %v4711_v62 = vmul.u32 %v1317_v61, %v4538_v23  ;;  %v4725_v16 = vld [vmem:[%s6195_s5] ss:$0 sm:$0xff] }
 0x10f   : > { %6345 = vst [vmem:[#allocation50_spill] sm:$0xff] %v4698_v42  ;;  %v1450_v60 = vand.u32 65535, %v1446_v24  ;;  %v4714_v7 = vmul.u32 %v1318_v25, %v4538_v23  ;;  %v4718_v11 = vsel %vm1432_vm8, %v1435_v39, %v1437_v0  ;;  %v4720_v5 = vshll.u32 %v1562_v56, 8 }
 0x110   : > { %6346 = vst [vmem:[#allocation51_spill] sm:$0xff] %v4718_v11  ;;  %v6348_v57 = vshll.u32 %v4241_v9, 16  ;;  %v1449_v24 = vshrl.u32 %v4653_v19, 16  ;;  %v1456_v23 = vshll.u32 %v4698_v42, 16  ;;  %v1472_v61 = vand.u32 65535, %v1442_v36 }
 0x111   : > { %6347 = vst [vmem:[#allocation52_spill] sm:$0xff] %v4720_v5  ;;  %v1568_v25 = vand.u32 31, %v1566_v14  ;;  %v4733_v51 = vadd.s32 %v1301_v13, %v1297_v50  ;;  %v4735_v56 = vadd.s32 %v1306_v6, %v1300_v30  ;;  %v1473_v39 = vshrl.u32 %v1442_v36, 16 }
 0x112   : > { %vm534_vm11 = vc.u32 %v4291_v53, %v6348_v57  ;;  %v1452_v0 = vmul.u32 %v1450_v60, %v1448_v2  ;;  %v4737_v49 = vmul.u32 %v1450_v60, %v1449_v24  ;;  %v4742_v63 = vmul.u32 %v1451_v54, %v1449_v24 }
 0x113   : > { %v535_v57 = vsel %vm534_vm11, 1, %v6305_v22  ;;  %v4745_v34 = vand.u32 65535, %v4720_v5  ;;  %v4748_v52 = vshrl.u32 %v4720_v5, 16  ;;  %v4751_v13 = vadd.f32 %v4725_v16, %v369_v44 }
 0x114   : > { %vm1460_vm12 = vc.u32 %v1452_v0, %v1456_v23  ;;  %v4753_v50 = vmul.u32 %v1472_v61, %v1448_v2  ;;  %v1569_v30 = vsub.s32 32, %v1568_v25  ;;  %v548_v36 = vshll.u32 %v4256_v20, 16 }
 0x115   : > { %6349 = vst [vmem:[#allocation53_spill] sm:$0xff] %v4748_v52  ;;  %v4756_v6 = vmul.u32 %v1473_v39, %v1448_v2  ;;  %v4758_v60 = vmul.u32 %v1472_v61, %v1449_v24  ;;  %v4760_v54 = vmul.u32 %v1473_v39, %v1449_v24  ;;  %v537_v53 = vadd.s32 %v535_v57, %v4304_v58 }
 0x116   : > { %v4764_v11 = vshrl.u32 %v1566_v14, 5  ;;  %v527_v44 = vshrl.u32 %v4204_v41, 16  ;;  %v529_v19 = vshrl.u32 %v4241_v9, 16  ;;  %v4769_v52 = vsel %vm1460_vm12, 1, %v6305_v22 }
 0x117   : > { %6350 = vst [vmem:[#allocation54_spill] sm:$0xff] %v4758_v60  ;;  %v4771_v10 = vadd.s32 %v1456_v23, %v1452_v0  ;;  %v1571_v2 = vshll.u32 %v6322_v32, %v1568_v25  ;;  %v1574_v24 = vshll.u32 %v6319_v18, %v1568_v25  ;;  %v1572_v61 = vshrl.u32 %v6319_v18, %v1569_v30 }
 0x118   : > { %6351 = vst [vmem:[#allocation55_spill] sm:$0xff] %v4760_v54  ;;  %v1575_v58 = vshrl.u32 %v6317_v38, %v1569_v30  ;;  %v1577_v14 = vshll.u32 %v6317_v38, %v1568_v25  ;;  %vm552_vm13 = vc.u32 %v4253_v15, %v548_v36  ;;  %v538_v41 = vadd.s32 %v537_v53, %v527_v44 }
 0x119   : > { %v550_v9 = vshll.u32 %v4258_v21, 16  ;;  %v553_v39 = vsel %vm552_vm13, 1, %v6305_v22  ;;  %v554_v23 = vadd.s32 %v548_v36, %v4253_v15  ;;  %v1570_v0 = vshrl.u32 %v6322_v32, %v1569_v30 }
 0x11a   : > { %v1578_v57 = vshrl.u32 %v6314_v8, %v1569_v30  ;;  %v1580_v5 = vshll.u32 %v6314_v8, %v1568_v25  ;;  %v555_v18 = vadd.s32 %v553_v39, %v4267_v26  ;;  %v1581_v17 = vshrl.u32 %v6315_v46, %v1569_v30 }
 0x11b   : > { %v4788_v38 = vshll.u32 %v6315_v46, %v1568_v25  ;;  %v4791_v53 = vshrl.u32 %v6312_v29, %v1569_v30  ;;  %vm556_vm14 = vc.u32 %v554_v23, %v550_v9  ;;  %v4793_v44 = vor.u32 %v1572_v61, %v1571_v2 }
 0x11c   : > { %v4795_v15 = vor.u32 %v1575_v58, %v1574_v24  ;;  %v557_v32 = vsel %vm556_vm14, 1, %v6305_v22  ;;  %v703_v36 = vshll.u32 %v4354_v4, 16  ;;  %vm1586_vm15 = vcmp.lt.s32.totalorder %v4764_v11, 1 }
 0x11d   : > { %v4800_v26 = vadd.s32 %v538_v41, %v529_v19  ;;  %v549_v8 = vshrl.u32 %v4256_v20, 16  ;;  %v551_v46 = vshrl.u32 %v4258_v21, 16  ;;  %v559_v25 = vadd.s32 %v557_v32, %v555_v18 }
 0x11e   : > { %v6352_v29 = vshll.u32 %v4333_v48, 16  ;;  %v705_v30 = vshll.u32 %v4362_v12, 16  ;;  %vm707_vm1 = vc.u32 %v4344_v55, %v703_v36  ;;  %v709_v2 = vadd.s32 %v703_v36, %v4344_v55 }
 0x11f   : > { %v560_v24 = vadd.s32 %v559_v25, %v549_v8  ;;  %v682_v61 = vshrl.u32 %v4294_v45, 16  ;;  %v708_v20 = vsel %vm707_vm1, 1, %v6305_v22  ;;  %v4813_v58 = vadd.s32 %v554_v23, %v550_v9 }
 0x120   : > { %vm689_vm0 = vc.u32 %v4380_v47, %v6352_v29  ;;  %v710_v41 = vadd.s32 %v708_v20, %v4365_v35  ;;  %vm711_vm2 = vc.u32 %v709_v2, %v705_v30  ;;  %v1579_v47 = vor.u32 %v1578_v57, %v1577_v14  ;;  %v6353_v35 = vld [vmem:[#allocation26_spill] sm:$0xff]  ;;  %v6354_v29 = vld [vmem:[#allocation27_spill] sm:$0xff] }
 0x121   : > { %v690_v19 = vsel %vm689_vm0, 1, %v6305_v22  ;;  %v561_v39 = vadd.s32 %v560_v24, %v551_v46  ;;  %v684_v18 = vshrl.u32 %v4333_v48, 16  ;;  %v712_v55 = vsel %vm711_vm2, 1, %v6305_v22  ;;  %v6355_v24 = vld [vmem:[#allocation25_spill] sm:$0xff]  ;;  %v6361_v20 = vld [vmem:[#allocation30_spill] sm:$0xff] }
 0x122   : > { %v692_v21 = vadd.s32 %v690_v19, %v4382_v59  ;;  %vm564_vm3 = vc.u32 %v4800_v26, %v4813_v58  ;;  %v704_v32 = vshrl.u32 %v4354_v4, 16  ;;  %v714_v36 = vadd.s32 %v712_v55, %v710_v41 }
 0x123   : > { %v1582_v9 = vor.u32 %v1581_v17, %v1580_v5  ;;  %v1585_v59 = vor.u32 %v4791_v53, %v4788_v38  ;;  %v565_v23 = vadd.s32 1, %v561_v39  ;;  %v858_v8 = vshll.u32 %v6353_v35, 16  ;;  %v6356_v38 = vld [vmem:[#allocation13_spill] sm:$0xff] }
 0x124   : > { %v693_v45 = vadd.s32 %v692_v21, %v682_v61  ;;  %v706_v48 = vshrl.u32 %v4362_v12, 16  ;;  %v4828_v57 = vadd.s32 %v709_v2, %v705_v30  ;;  %v715_v46 = vadd.s32 %v714_v36, %v704_v32  ;;  %v6357_v12 = vld [vmem:[#allocation15_spill] sm:$0xff]  ;;  %v6359_v61 = vld [vmem:[#allocation24_spill] sm:$0xff]  ;;  %v6363_v32 = vld [vmem:[#allocation22_spill] sm:$0xff] }
 0x125   : > { %vm1588_vm4 = vcmp.lt.s32.totalorder %v4764_v11, 3  ;;  %v566_v25 = vsel %vm564_vm3, %v565_v23, %v561_v39  ;;  %v860_v4 = vshll.u32 %v6354_v29, 16  ;;  %vm862_vm5 = vc.u32 %v6355_v24, %v858_v8  ;;  %v6364_v23 = vld [vmem:[#allocation31_spill] sm:$0xff] }
 0x126   : > { %v4825_v14 = vadd.s32 %v693_v45, %v684_v18  ;;  %v864_v17 = vadd.s32 %v858_v8, %v6355_v24  ;;  %vm1589_vm6 = vcmp.lt.s32.totalorder %v4764_v11, 4  ;;  %v1590_v5 = vsel %vm1586_vm15, %v1570_v0, %v4793_v44  ;;  %v6362_v0 = vld [vmem:[#allocation29_spill] sm:$0xff] }
 0x127   : > { %v6358_v53 = vmul.u32 %v6356_v38, %v6357_v12  ;;  %v716_v2 = vadd.s32 %v715_v46, %v706_v48  ;;  %v6360_v19 = vshll.u32 %v6359_v61, 16  ;;  %v863_v21 = vsel %vm862_vm5, 1, %v6305_v22 }
 0x128   : > { %vm719_vm7 = vc.u32 %v4825_v14, %v4828_v57  ;;  %vm866_vm9 = vc.u32 %v864_v17, %v860_v4  ;;  %v865_v55 = vadd.s32 %v863_v21, %v6362_v0  ;;  %v1591_v45 = vsel %vm1589_vm6, %v1579_v47, 2102212464 }
 0x129   : > { %v567_v30 = vadd.s32 %v566_v25, %v6358_v53  ;;  %vm844_vm8 = vc.u32 %v6361_v20, %v6360_v19  ;;  %v720_v39 = vadd.s32 1, %v716_v2  ;;  %v837_v36 = vshrl.u32 %v6363_v32, 16  ;;  %v6365_v53 = vld [vmem:[#allocation16_spill] sm:$0xff]  ;;  %v6366_v19 = vld [vmem:[#allocation17_spill] sm:$0xff] }
 0x12a   : > { %v845_v18 = vsel %vm844_vm8, 1, %v6305_v22  ;;  %v867_v48 = vsel %vm866_vm9, 1, %v6305_v22  ;;  %v859_v24 = vshrl.u32 %v6353_v35, 16  ;;  %v1599_v12 = vsel %vm1589_vm6, %v1585_v59, 1326507024 }
 0x12b   : > { %v568_v41 = vadd.s32 536870912, %v567_v30  ;;  %v847_v8 = vadd.s32 %v845_v18, %v6364_v23  ;;  %v721_v25 = vsel %vm719_vm7, %v720_v39, %v716_v2  ;;  %v869_v38 = vadd.s32 %v867_v48, %v865_v55 }
 0x12c   : > { %v6367_v20 = vmul.u32 %v6365_v53, %v6366_v19  ;;  %v839_v0 = vshrl.u32 %v6359_v61, 16  ;;  %v1595_v18 = vsel %vm1589_vm6, %v1582_v9, 920167782  ;;  %v861_v2 = vshrl.u32 %v6354_v29, 16  ;;  %v6372_v53 = vld [vmem:[#allocation40_spill] sm:$0xff] }
 0x12d   : > { %v4854_v46 = vshrl.u32 %v568_v41, 30  ;;  %v848_v32 = vadd.s32 %v847_v8, %v837_v36  ;;  %v870_v39 = vadd.s32 %v869_v38, %v859_v24  ;;  %v1598_v35 = vsel %vm1586_vm15, %v4795_v15, %v1579_v47  ;;  %v6373_v19 = vld [vmem:[#allocation36_spill] sm:$0xff] }
 0x12e   : > { %v722_v21 = vadd.s32 %v721_v25, %v6367_v20  ;;  %v4872_v23 = vadd.s32 %v864_v17, %v860_v4  ;;  %v1592_v61 = vsel %vm1588_vm4, %v4795_v15, %v1591_v45  ;;  %v1600_v36 = vsel %vm1588_vm4, %v1582_v9, %v1599_v12 }
 0x12f   : > { %v570_v41 = vshll.u32 %v4854_v46, 30  ;;  %v4870_v55 = vadd.s32 %v848_v32, %v839_v0  ;;  %v871_v48 = vadd.s32 %v870_v39, %v861_v2  ;;  %vm1587_vm10 = vcmp.lt.s32.totalorder %v4764_v11, 2  ;;  %v6374_v0 = vld [vmem:[#allocation19_spill] sm:$0xff]  ;;  %v6375_v32 = vld [vmem:[#allocation20_spill] sm:$0xff]  ;;  %v6377_v11 = vld [vmem:[#allocation10_spill] sm:$0xff] }
 0x130   : > { %v723_v59 = vadd.s32 536870912, %v722_v21  ;;  %v1594_v29 = vsel %vm1586_vm15, %v4793_v44, %v4795_v15  ;;  %v1596_v4 = vsel %vm1588_vm4, %v1579_v47, %v1595_v18  ;;  %v4896_v45 = vsel %vm1587_vm10, %v1590_v5, %v1592_v61  ;;  %v6370_v47 = vld [vmem:[#allocation34_spill] sm:$0xff] }
 0x131   : > { %v571_v8 = vsub.s32 %v567_v30, %v570_v41  ;;  %vm874_vm11 = vc.u32 %v4870_v55, %v4872_v23  ;;  %v875_v9 = vadd.s32 1, %v871_v48  ;;  %v4892_v30 = vadd.s32 %v4769_v52, %v4742_v63  ;;  %6369 = vst [vmem:[#allocation27_spill] sm:$0xff] %v4896_v45  ;;  %v6386_v45 = vld [vmem:[#allocation39_spill] sm:$0xff] }
 0x132   : > { %v4884_v25 = vshrl.u32 %v723_v59, 30  ;;  %v4900_v44 = vsel %vm1587_vm10, %v1598_v35, %v1600_v36  ;;  %v6371_v12 = vshll.u32 %v6370_v47, 16  ;;  %v1013_v20 = vshll.u32 %v6373_v19, 16 }
 0x133   : > { %vm572_vm12 = vcmp.lt.s32.totalorder %v571_v8, 0  ;;  %v573_v17 = vsub.s32 0, %v571_v8  ;;  %6368 = vst [vmem:[#allocation26_spill] sm:$0xff] %v4892_v30  ;;  %v876_v38 = vsel %vm874_vm11, %v875_v9, %v871_v48  ;;  %v4909_v63 = vsel %vm1587_vm10, %v1594_v29, %v1596_v4  ;;  %v6378_v48 = vld [vmem:[#allocation11_spill] sm:$0xff]  ;;  %v6379_v4 = vld [vmem:[#allocation33_spill] sm:$0xff] }
 0x134   : > { %v725_v15 = vshll.u32 %v4884_v25, 30  ;;  %vm999_vm13 = vc.u32 %v6372_v53, %v6371_v12  ;;  %v6376_v18 = vmul.u32 %v6374_v0, %v6375_v32  ;;  %v563_v35 = vadd.s32 %v4813_v58, %v4800_v26  ;;  %v6380_v26 = vld [vmem:[#allocation35_spill] sm:$0xff]  ;;  %v6381_v12 = vld [vmem:[#allocation42_spill] sm:$0xff] }
 0x135   : > { %v574_v24 = vsel %vm572_vm12, %v573_v17, %v571_v8  ;;  %v718_v59 = vadd.s32 %v4828_v57, %v4825_v14  ;;  %vm471_vm14 = vcmp.lt.s32.totalorder %v6377_v11, 0  ;;  %v1000_v36 = vsel %vm999_vm13, 1, %v6305_v22  ;;  %v6382_v32 = vld [vmem:[#allocation38_spill] sm:$0xff] }
 0x136   : > { %v575_v52 = vclz %v574_v24  ;;  %v4911_v5 = vsub.s32 %v722_v21, %v725_v15  ;;  %v877_v41 = vadd.s32 %v876_v38, %v6376_v18  ;;  %vm626_vm0 = vcmp.lt.s32.totalorder %v6378_v48, 0 }
 0x137   : > { %v992_v17 = vshrl.u32 %v6379_v4, 16  ;;  %v994_v9 = vshrl.u32 %v6370_v47, 16  ;;  %vm1017_vm1 = vc.u32 %v6380_v26, %v1013_v20  ;;  %v593_v58 = vsub.s32 4, %v4854_v46 }
 0x138   : > { %v3511_v61 = vadd.s32 4294967294, %v575_v52  ;;  %vm727_vm15 = vcmp.lt.s32.totalorder %v4911_v5, 0  ;;  %v728_v21 = vsub.s32 0, %v4911_v5  ;;  %v878_v29 = vadd.s32 536870912, %v877_v41 }
 0x139   : > { %v1019_v57 = vadd.s32 %v1013_v20, %v6380_v26  ;;  %v1002_v53 = vadd.s32 %v1000_v36, %v6381_v12  ;;  %v1015_v18 = vshll.u32 %v6382_v32, 16  ;;  %v1018_v47 = vsel %vm1017_vm1, 1, %v6305_v22 }
 0x13a   : > { %vm3512_vm2 = vcmp.lt.s32.totalorder %v3511_v61, 0  ;;  %v729_v14 = vsel %vm727_vm15, %v728_v21, %v4911_v5  ;;  %v4933_v38 = vshrl.u32 %v878_v29, 30  ;;  %v6383_v4 = vand.u32 2147483647, %v6377_v11 }
 0x13b   : > { %v578_v15 = vsel %vm3512_vm2, 0, %v3511_v61  ;;  %v730_v24 = vclz %v729_v14  ;;  %v748_v20 = vsub.s32 4, %v4884_v25  ;;  %v1014_v29 = vshrl.u32 %v6373_v19, 16 }
 0x13c   : > { %v579_v52 = vsub.s32 32, %v578_v15  ;;  %v583_v0 = vsub.s32 4294967266, %v578_v15  ;;  %vm4940_vm3 = vcmp.le.f32.partialorder %v6383_v4, 0.7853982  ;;  %v880_v61 = vshll.u32 %v4933_v38, 30 }
 0x13d   : > { %v3514_v21 = vadd.s32 4294967294, %v730_v24  ;;  %v580_v36 = vshll.u32 %v571_v8, %v578_v15  ;;  %vm1021_vm4 = vc.u32 %v1019_v57, %v1015_v18  ;;  %v1003_v39 = vadd.s32 %v1002_v53, %v992_v17  ;;  %v6387_v15 = vld [vmem:[#allocation12_spill] sm:$0xff]  ;;  %v1728_v53 = vld [vmem:[%s6194_s4 + $0x20] sm:$0xff] }
 0x13e   : > { %v581_v26 = vshrl.u32 %v563_v35, %v579_v52  ;;  %v584_v14 = vadd.s32 127, %v583_v0  ;;  %v4947_v12 = vsub.s32 %v877_v41, %v880_v61  ;;  %v1020_v4 = vadd.s32 %v1018_v47, %v6386_v45  ;;  %1767 = vmatpush.msra.mxu2 %v1728_v53 }
 0x13f   : > { %vm3515_vm5 = vcmp.lt.s32.totalorder %v3514_v21, 0  ;;  %v1022_v24 = vsel %vm1021_vm4, 1, %v6305_v22  ;;  %v594_v42 = vsel %vm471_vm14, %v593_v58, %v4854_v46  ;;  %v1016_v35 = vshrl.u32 %v6382_v32, 16  ;;  %v1805_v46 = vld [vmem:[%s6194_s4 + $0x40] sm:$0xff] }
 0x140   : > { %v582_v54 = vor.u32 %v581_v26, %v580_v36  ;;  %v585_v60 = vshll.u32 %v584_v14, 23  ;;  %v733_v30 = vsel %vm3515_vm5, 0, %v3514_v21  ;;  %vm781_vm6 = vcmp.lt.s32.totalorder %v6387_v15, 0  ;;  %1820 = vmatpush.msra.mxu3 %v1805_v46  ;;  %v1804_v21 = vld [vmem:[%s6194_s4 + $0x38] sm:$0xff]  ;;  %v1726_v36 = vld [vmem:[%s6194_s4 + $0x10] sm:$0xff] }
 0x141   : > { %v734_v19 = vsub.s32 32, %v733_v30  ;;  %v738_v8 = vsub.s32 4294967266, %v733_v30  ;;  %v749_v45 = vsel %vm626_vm0, %v748_v20, %v4884_v25  ;;  %vm882_vm7 = vcmp.lt.s32.totalorder %v4947_v12, 0 }
 0x142   : > { %v586_v41 = vor.u32 4788187, %v585_v60  ;;  %v883_v17 = vsub.s32 0, %v4947_v12  ;;  %v1727_v60 = vld [vmem:[%s6194_s4 + $0x18] sm:$0xff]  ;;  %v735_v58 = vshll.u32 %v4911_v5, %v733_v30  ;;  %v1024_v0 = vadd.s32 %v1022_v24, %v1020_v4  ;;  %v1803_v30 = vld [vmem:[%s6194_s4 + $0x30] sm:$0xff]  ;;  %1821 = vmatpush.msra.mxu3 %v1804_v21 }
 0x143   : > { %v736_v52 = vshrl.u32 %v718_v59, %v734_v19  ;;  %v739_v25 = vadd.s32 127, %v738_v8  ;;  %v589_v47 = vcvt.s32.f32 %v582_v54  ;;  %v4975_v61 = vadd.s32 %v1003_v39, %v994_v9  ;;  %1768 = vmatpush.msra.mxu2 %v1727_v60 }
 0x144   : > { %v587_v32 = vand.u32 2147483647, %v586_v41  ;;  %v884_v20 = vsel %vm882_vm7, %v883_v17, %v4947_v12  ;;  %v1025_v26 = vadd.s32 %v1024_v0, %v1014_v29  ;;  %v596_v4 = vsel %vm4940_vm3, 0, %v594_v42  ;;  %1822 = vmatpush.msra.mxu3 %v1803_v30 }
 0x145   : > { %v737_v5 = vor.u32 %v736_v52, %v735_v58  ;;  %v740_v54 = vshll.u32 %v739_v25, 23  ;;  %v885_v59 = vclz %v884_v20  ;;  %v6388_v39 = vand.u32 2147483647, %v6378_v48  ;;  %1769 = vmatpush.msra.mxu2 %v1726_v36 }
 0x146   : > { %v590_v14 = vmul.f32 %v589_v47, %v587_v32  ;;  %v4991_v24 = vadd.s32 %v1019_v57, %v1015_v18  ;;  %v903_v41 = vsub.s32 4, %v4933_v38  ;;  %v1026_v17 = vadd.s32 %v1025_v26, %v1016_v35 }
 0x147   : > { %vm4987_vm8 = vcmp.le.f32.partialorder %v6388_v39, 0.7853982  ;;  %v741_v19 = vor.u32 4788187, %v740_v54  ;;  %v3517_v8 = vadd.s32 4294967294, %v885_v59  ;;  %v744_v18 = vcvt.s32.f32 %v737_v5  ;;  %v6394_v5 = vld [vmem:[#allocation21_spill] sm:$0xff] }
 0x148   : > { %v591_v29 = vxor.u32 2147483648, %v590_v14  ;;  %v751_v42 = vsel %vm4987_vm8, 0, %v749_v45  ;;  %v6391_v53 = vand.u32 2147483647, %v6387_v15  ;;  %vm1029_vm10 = vc.u32 %v4975_v61, %v4991_v24  ;;  %v6395_v54 = vld [vmem:[#allocation28_spill] sm:$0xff] }
 0x149   : > { %v742_v57 = vand.u32 2147483647, %v741_v19  ;;  %vm3518_vm11 = vcmp.lt.s32.totalorder %v3517_v8, 0  ;;  %v1030_v60 = vadd.s32 1, %v1026_v17  ;;  %v613_v58 = vadd.s32 3, %v596_v4 }
 0x14a   : > { %vm4998_vm9 = vcmp.le.f32.partialorder %v6391_v53, 0.7853982  ;;  %v592_v35 = vsel %vm471_vm14, %v591_v29, %v590_v14  ;;  %v873_v45 = vadd.s32 %v4872_v23, %v4870_v55  ;;  %v888_v52 = vsel %vm3518_vm11, 0, %v3517_v8 }
 0x14b   : > { %v5011_v25 = vsel %vm4940_vm3, %v6377_v11, %v592_v35  ;;  %v745_v0 = vmul.f32 %v744_v18, %v742_v57  ;;  %v889_v32 = vsub.s32 32, %v888_v52  ;;  %v904_v47 = vsel %vm781_vm6, %v903_v41, %v4933_v38 }
 0x14c   : > { %v597_v21 = vmul.f32 %v5011_v25, %v5011_v25  ;;  %v768_v20 = vadd.s32 3, %v751_v42  ;;  %v893_v36 = vsub.s32 4294967266, %v888_v52  ;;  %v1031_v55 = vsel %vm1029_vm10, %v1030_v60, %v1026_v17  ;;  %v372_v42 = vpop.f32.mrf.mxu0 }
 0x14d   : > { %v746_v23 = vxor.u32 2147483648, %v745_v0  ;;  %v890_v2 = vshll.u32 %v4947_v12, %v888_v52  ;;  %v891_v30 = vshrl.u32 %v873_v45, %v889_v32  ;;  %v6396_v59 = vmul.u32 %v6394_v5, %v6395_v54 }
 0x14e   : > { %v598_v14 = vmul.f32 -0.001358992, %v597_v21  ;;  %v605_v4 = vmul.f32 -0.00019511016, %v597_v21  ;;  %v894_v38 = vadd.s32 127, %v893_v36  ;;  %v906_v39 = vsel %vm4998_vm9, 0, %v904_v47 }
 0x14f   : > { %v1032_v26 = vadd.s32 %v1031_v55, %v6396_v59  ;;  %v5027_v19 = vand.u32 3, %v613_v58  ;;  %v747_v8 = vsel %vm626_vm0, %v746_v23, %v745_v0  ;;  %v892_v41 = vor.u32 %v891_v30, %v890_v2 }
 0x150   : > { %v599_v29 = vadd.f32 0.041655596, %v598_v14  ;;  %v606_v12 = vadd.f32 0.008332121, %v605_v4  ;;  %v5034_v53 = vsel %vm4987_vm8, %v6378_v48, %v747_v8  ;;  %v895_v57 = vshll.u32 %v894_v38, 23 }
 0x151   : > { %v1033_v17 = vadd.s32 536870912, %v1032_v26  ;;  %v1628_v18 = vshrl.u32 %v4909_v63, 16  ;;  %v752_v60 = vmul.f32 %v5034_v53, %v5034_v53  ;;  %v923_v35 = vadd.s32 3, %v906_v39 }
 0x152   : > { %v600_v45 = vmul.f32 %v599_v29, %v597_v21  ;;  %v607_v52 = vmul.f32 %v606_v12, %v597_v21  ;;  %v5041_v0 = vand.u32 3, %v768_v20  ;;  %v896_v32 = vor.u32 4788187, %v895_v57 }
 0x153   : > { %v5039_v58 = vshrl.u32 %v1033_v17, 30  ;;  %v5044_v47 = vadd.f32 %v4725_v16, %v372_v42  ;;  %v753_v9 = vmul.f32 -0.001358992, %v752_v60  ;;  %v760_v36 = vmul.f32 -0.00019511016, %v752_v60 }
 0x154   : > { %v601_v23 = vadd.f32 -0.4999988, %v600_v45  ;;  %v608_v2 = vadd.f32 -0.16666654, %v607_v52  ;;  %vm619_vm12 = vcmp.eq.s32.totalorder %v5027_v19, 2  ;;  %v899_v5 = vcvt.s32.f32 %v892_v41 }
 0x155   : > { %v1035_v55 = vshll.u32 %v5039_v58, 30  ;;  %v897_v30 = vand.u32 2147483647, %v896_v32  ;;  %vm616_vm13 = vcmp.eq.s32.totalorder %v5027_v19, 0  ;;  %v754_v54 = vadd.f32 0.041655596, %v753_v9 }
 0x156   : > { %v761_v59 = vadd.f32 0.008332121, %v760_v36  ;;  %v5049_v20 = vand.u32 3, %v923_v35  ;;  %v602_v4 = vmul.f32 %v601_v23, %v597_v21  ;;  %v609_v38 = vmul.f32 %v608_v2, %v597_v21 }
 0x157   : > { %v5051_v14 = vsub.s32 %v1032_v26, %v1035_v55  ;;  %vm615_vm14 = vcmp.lt.s32.totalorder %v5027_v19, 2  ;;  %v900_v39 = vmul.f32 %v899_v5, %v897_v30  ;;  %v6397_v8 = vshll.u32 %v4553_v40, 16 }
 0x158   : > { %vm612_vm0 = vweird.f32 %v6377_v11  ;;  %v755_v41 = vmul.f32 %v754_v54, %v752_v60  ;;  %v762_v17 = vmul.f32 %v761_v59, %v752_v60  ;;  %v603_v12 = vadd.f32 1.0, %v602_v4 }
 0x159   : > { %vm1154_vm15 = vc.u32 %v4662_v28, %v6397_v8  ;;  %vm1037_vm1 = vcmp.lt.s32.totalorder %v5051_v14, 0  ;;  %v1038_v29 = vsub.s32 0, %v5051_v14  ;;  %v610_v26 = vadd.f32 1.0, %v609_v38 }
 0x15a   : > { %vm1717_vm2 = vcmask 261120   ;;  %v901_v42 = vxor.u32 2147483648, %v900_v39  ;;  %v1028_v21 = vadd.s32 %v4991_v24, %v4975_v61  ;;  %v756_v57 = vadd.f32 -0.4999988, %v755_v41 }
 0x15b   : > { %v763_v35 = vadd.f32 -0.16666654, %v762_v17  ;;  %vm774_vm3 = vcmp.eq.s32.totalorder %v5041_v0, 2  ;;  %v1039_v28 = vsel %vm1037_vm1, %v1038_v29, %v5051_v14  ;;  %v1155_v45 = vsel %vm1154_vm15, 1, %v6305_v22 }
 0x15c   : > { %v611_v52 = vmul.f32 %v610_v26, %v5011_v25  ;;  %v620_v32 = vxor.u32 2147483648, %v603_v12  ;;  %vm771_vm4 = vcmp.eq.s32.totalorder %v5041_v0, 0  ;;  %v902_v9 = vsel %vm781_vm6, %v901_v42, %v900_v39 }
 0x15d   : > { %v1040_v36 = vclz %v1039_v28  ;;  %v757_v55 = vmul.f32 %v756_v57, %v752_v60  ;;  %v764_v23 = vmul.f32 %v763_v35, %v752_v60  ;;  %vm770_vm5 = vcmp.lt.s32.totalorder %v5041_v0, 2  ;;  %v6399_v28 = vld [vmem:[#allocation46_spill] sm:$0xff]  ;;  %v375_v0 = vpop.f32.mrf.mxu0 }
 0x15e   : > { %v5073_v61 = vsel %vm4998_vm9, %v6387_v15, %v902_v9  ;;  %v1147_v24 = vshrl.u32 %v4543_v43, 16  ;;  %v617_v2 = vxor.u32 2147483648, %v611_v52  ;;  %vm767_vm7 = vweird.f32 %v6378_v48 }
 0x15f   : > { %v907_v25 = vmul.f32 %v5073_v61, %v5073_v61  ;;  %v3520_v30 = vadd.s32 4294967294, %v1040_v36  ;;  %v1149_v5 = vshrl.u32 %v4553_v40, 16  ;;  %v621_v60 = vsel %vm619_vm12, %v620_v32, %v611_v52 }
 0x160   : > { %v758_v54 = vadd.f32 1.0, %v757_v55  ;;  %v765_v59 = vadd.f32 1.0, %v764_v23  ;;  %v1157_v46 = vadd.s32 %v1155_v45, %v4687_v1  ;;  %v618_v4 = vsel %vm616_vm13, %v603_v12, %v617_v2  ;;  %v6398_v1 = vld [vmem:[#allocation14_spill] sm:$0xff] }
 0x161   : > { %v908_v43 = vmul.f32 -0.001358992, %v907_v25  ;;  %v915_v38 = vmul.f32 -0.00019511016, %v907_v25  ;;  %vm3521_vm6 = vcmp.lt.s32.totalorder %v3520_v30, 0  ;;  %v622_v39 = vsel %vm615_vm14, %v618_v4, %v621_v60 }
 0x162   : > { %v766_v8 = vmul.f32 %v765_v59, %v5034_v53  ;;  %v775_v41 = vxor.u32 2147483648, %v758_v54  ;;  %v1043_v40 = vsel %vm3521_vm6, 0, %v3520_v30  ;;  %v623_v17 = vsel %vm612_vm0, nan, %v622_v39  ;;  %v6401_v59 = vld [vmem:[#allocation45_spill] sm:$0xff] }
 0x163   : > { %v909_v29 = vadd.f32 0.041655596, %v908_v43  ;;  %v916_v26 = vadd.f32 0.008332121, %v915_v38  ;;  %v1044_v42 = vsub.s32 32, %v1043_v40  ;;  %vm936_vm8 = vcmp.lt.s32.totalorder %v6398_v1, 0 }
 0x164   : > { %v1709_v12 = vadd.f32 %v623_v17, %v4751_v13  ;;  %v772_v57 = vxor.u32 2147483648, %v766_v8  ;;  %v1158_v35 = vadd.s32 %v1157_v46, %v1147_v24  ;;  %v1168_v45 = vshll.u32 %v6399_v28, 16  ;;  %v6400_v24 = vld [vmem:[#allocation47_spill] sm:$0xff] }
 0x165   : > { %v776_v19 = vsel %vm774_vm3, %v775_v41, %v766_v8  ;;  %v910_v53 = vmul.f32 %v909_v29, %v907_v25  ;;  %v917_v52 = vmul.f32 %v916_v26, %v907_v25  ;;  %v1048_v32 = vsub.s32 4294967266, %v1043_v40 }
 0x166   : > { %1718 = vst.msk [vmem:[#allocation2] sm:$0xff] %vm1717_vm2, %v1709_v12  ;;  %3534 = vmatmul.msk.f32.vlgmr.msra.gmra.mxu2 %vm1717_vm2, %v1709_v12  ;;  %3542 = vmatmul.msk.f32.vlgmr.msra.gmra.mxu3 %vm1717_vm2, %v1709_v12  ;;  %v773_v11 = vsel %vm771_vm4, %v758_v54, %v772_v57  ;;  %v1045_v13 = vshll.u32 %v5051_v14, %v1043_v40  ;;  %v1170_v2 = vshll.u32 %v6400_v24, 16  ;;  %vm926_vm9 = vcmp.eq.s32.totalorder %v5049_v20, 0 }
 0x167   : > { %v1046_v9 = vshrl.u32 %v1028_v21, %v1044_v42  ;;  %v777_v36 = vsel %vm770_vm5, %v773_v11, %v776_v19  ;;  %v911_v55 = vadd.f32 -0.4999988, %v910_v53  ;;  %v918_v23 = vadd.f32 -0.16666654, %v917_v52 }
 0x168   : > { %v778_v30 = vsel %vm767_vm7, nan, %v777_v36  ;;  %vm929_vm10 = vcmp.eq.s32.totalorder %v5049_v20, 2  ;;  %v1049_v60 = vadd.s32 127, %v1048_v32  ;;  %vm1172_vm11 = vc.u32 %v6401_v59, %v1168_v45 }
 0x169   : > { %v1174_v14 = vadd.s32 %v1168_v45, %v6401_v59  ;;  %v1710_v21 = vadd.f32 %v778_v30, %v5044_v47  ;;  %v912_v54 = vmul.f32 %v911_v55, %v907_v25  ;;  %v919_v46 = vmul.f32 %v918_v23, %v907_v25 }
 0x16a   : > { %vm925_vm12 = vcmp.lt.s32.totalorder %v5049_v20, 2  ;;  %v1058_v4 = vsub.s32 4, %v5039_v58  ;;  %vm922_vm13 = vweird.f32 %v6387_v15  ;;  %v1047_v48 = vor.u32 %v1046_v9, %v1045_v13 }
 0x16b   : > { %v1050_v43 = vshll.u32 %v1049_v60, 23  ;;  %v1173_v38 = vsel %vm1172_vm11, 1, %v6305_v22  ;;  %vm1176_vm14 = vc.u32 %v1174_v14, %v1170_v2  ;;  %1719 = vst.msk [vmem:[#allocation2 + $0x8] sm:$0xff] %vm1717_vm2, %v1710_v21  ;;  %v913_v39 = vadd.f32 1.0, %v912_v54 }
 0x16c   : > { %v920_v8 = vadd.f32 1.0, %v919_v46  ;;  %v1175_v47 = vadd.s32 %v1173_v38, %v4659_v31  ;;  %v1177_v41 = vsel %vm1176_vm14, 1, %v6305_v22  ;;  %v376_v25 = vadd.f32 %v4725_v16, %v375_v0  ;;  %v6407_v46 = vld [vmem:[#allocation32_spill] sm:$0xff] }
 0x16d   : > { %v6402_v40 = vand.u32 2147483647, %v6398_v1  ;;  %v1051_v29 = vor.u32 4788187, %v1050_v43  ;;  %v5125_v26 = vadd.s32 %v1158_v35, %v1149_v5  ;;  %v1169_v42 = vshrl.u32 %v6399_v28, 16 }
 0x16e   : > { %v921_v12 = vmul.f32 %v920_v8, %v5073_v61  ;;  %v930_v57 = vxor.u32 2147483648, %v913_v39  ;;  %v1059_v31 = vsel %vm936_vm8, %v1058_v4, %v5039_v58  ;;  %v1179_v45 = vadd.s32 %v1177_v41, %v1175_v47  ;;  %3535 = vmatmul.msk.f32.gmra.mxu2 %vm1717_vm2, %v1710_v21  ;;  %3543 = vmatmul.msk.f32.gmra.mxu3 %vm1717_vm2, %v1710_v21  ;;  %v6408_v4 = vld [vmem:[#allocation41_spill] sm:$0xff] }
 0x16f   : > { %vm5121_vm15 = vcmp.le.f32.partialorder %v6402_v40, 0.7853982  ;;  %v1052_v19 = vand.u32 2147483647, %v1051_v29  ;;  %v1054_v53 = vcvt.s32.f32 %v1047_v48  ;;  %v5134_v52 = vadd.s32 %v1174_v14, %v1170_v2 }
 0x170   : > { %v6405_v5 = vshll.u32 %v4692_v27, 16  ;;  %v927_v35 = vxor.u32 2147483648, %v921_v12  ;;  %v1171_v61 = vshrl.u32 %v6400_v24, 16  ;;  %v1180_v28 = vadd.s32 %v1179_v45, %v1169_v42 }
 0x171   : > { %v1055_v58 = vmul.f32 %v1054_v53, %v1052_v19  ;;  %vm1184_vm1 = vc.u32 %v5125_v26, %v5134_v52  ;;  %v1323_v13 = vshll.u32 %v4708_v37, 16  ;;  %v1302_v55 = vshrl.u32 %v4638_v33, 16 }
 0x172   : > { %vm1309_vm0 = vc.u32 %v4733_v51, %v6405_v5  ;;  %v928_v9 = vsel %vm926_vm9, %v913_v39, %v927_v35  ;;  %v931_v51 = vsel %vm929_vm10, %v930_v57, %v921_v12  ;;  %v1181_v36 = vadd.s32 %v1180_v28, %v1171_v61 }
 0x173   : > { %v1310_v32 = vsel %vm1309_vm0, 1, %v6305_v22  ;;  %v932_v23 = vsel %vm925_vm12, %v928_v9, %v931_v51  ;;  %v1056_v24 = vxor.u32 2147483648, %v1055_v58  ;;  %v1325_v2 = vshll.u32 %v4711_v62, 16 }
 0x174   : > { %v1312_v11 = vadd.s32 %v1310_v32, %v4735_v56  ;;  %vm1327_vm3 = vc.u32 %v4702_v3, %v1323_v13  ;;  %v933_v56 = vsel %vm922_vm13, nan, %v932_v23  ;;  %v1185_v30 = vadd.s32 1, %v1181_v36 }
 0x175   : > { %v1328_v60 = vsel %vm1327_vm3, 1, %v6305_v22  ;;  %v1329_v59 = vadd.s32 %v1323_v13, %v4702_v3  ;;  %v1711_v14 = vadd.f32 %v933_v56, %v376_v25  ;;  %v1057_v33 = vsel %vm936_vm8, %v1056_v24, %v1055_v58  ;;  %v6413_v56 = vld [vmem:[#allocation26_spill] sm:$0xff] }
 0x176   : > { %v1313_v21 = vadd.s32 %v1312_v11, %v1302_v55  ;;  %v1330_v20 = vadd.s32 %v1328_v60, %v4714_v7  ;;  %v6406_v0 = vshrl.u32 %v4900_v44, 16  ;;  %v5169_v15 = vsel %vm5121_vm15, %v6398_v1, %v1057_v33  ;;  %v6414_v60 = vld [vmem:[#allocation54_spill] sm:$0xff] }
 0x177   : > { %v1186_v3 = vsel %vm1184_vm1, %v1185_v30, %v1181_v36  ;;  %vm1331_vm4 = vc.u32 %v1329_v59, %v1325_v2  ;;  %1720 = vst.msk [vmem:[#allocation2 + $0x10] sm:$0xff] %vm1717_vm2, %v1711_v14  ;;  %3536 = vmatmul.msk.f32.gmra.mxu2 %vm1717_vm2, %v1711_v14  ;;  %3544 = vmatmul.msk.f32.gmra.mxu3 %vm1717_vm2, %v1711_v14  ;;  %v1304_v38 = vshrl.u32 %v4692_v27, 16  ;;  %v6410_v8 = vand.u32 65535, %v4900_v44  ;;  %v6415_v14 = vld [vmem:[#allocation55_spill] sm:$0xff] }
 0x178   : > { %v5164_v54 = vmul.u32 %v6406_v0, %v4745_v34  ;;  %v1062_v7 = vmul.f32 %v5169_v15, %v5169_v15  ;;  %v6409_v48 = vmul.u32 %v6407_v46, %v6408_v4  ;;  %v1332_v39 = vsel %vm1331_vm4, 1, %v6305_v22  ;;  %v6416_v46 = vld [vmem:[#allocation43_spill] sm:$0xff]  ;;  %v6417_v4 = vld [vmem:[#allocation49_spill] sm:$0xff] }
 0x179   : > { %v5187_v47 = vmul.u32 %v6410_v8, %v4745_v34  ;;  %v1061_v41 = vsel %vm5121_vm15, 0, %v1059_v31  ;;  %v1324_v25 = vshrl.u32 %v4708_v37, 16  ;;  %v1334_v40 = vadd.s32 %v1332_v39, %v1330_v20 }
 0x17a   : > { %v1187_v43 = vadd.s32 %v1186_v3, %v6409_v48  ;;  %v1063_v29 = vmul.f32 -0.001358992, %v1062_v7  ;;  %v1070_v42 = vmul.f32 -0.00019511016, %v1062_v7  ;;  %v5192_v57 = vadd.s32 %v1313_v21, %v1304_v38  ;;  %v378_v21 = vpop.f32.mrf.mxu0 }
 0x17b   : > { %v1611_v27 = vshll.u32 %v5164_v54, 16  ;;  %v1326_v45 = vshrl.u32 %v4711_v62, 16  ;;  %v1335_v19 = vadd.s32 %v1334_v40, %v1324_v25  ;;  %v1478_v53 = vshll.u32 %v4756_v6, 16 }
 0x17c   : > { %v1188_v12 = vadd.s32 536870912, %v1187_v43  ;;  %v1064_v5 = vadd.f32 0.041655596, %v1063_v29  ;;  %v1071_v35 = vadd.f32 0.008332121, %v1070_v42  ;;  %v5199_v17 = vadd.s32 %v1329_v59, %v1325_v2 }
 0x17d   : > { %v1078_v37 = vadd.s32 3, %v1061_v41  ;;  %v1336_v31 = vadd.s32 %v1335_v19, %v1326_v45  ;;  %v6411_v28 = vshll.u32 %v4737_v49, 16  ;;  %vm1482_vm7 = vc.u32 %v4753_v50, %v1478_v53 }
 0x17e   : > { %v5197_v61 = vshrl.u32 %v1188_v12, 30  ;;  %v1065_v32 = vmul.f32 %v1064_v5, %v1062_v7  ;;  %v1072_v58 = vmul.f32 %v1071_v35, %v1062_v7  ;;  %vm1339_vm6 = vc.u32 %v5192_v57, %v5199_v17  ;;  %v6419_v35 = vld [vmem:[#allocation18_spill] sm:$0xff] }
 0x17f   : > { %vm1464_vm5 = vc.u32 %v4771_v10, %v6411_v28  ;;  %v1340_v11 = vadd.s32 1, %v1336_v31  ;;  %v1483_v9 = vsel %vm1482_vm7, 1, %v6305_v22  ;;  %v1484_v51 = vadd.s32 %v1478_v53, %v4753_v50  ;;  %v6412_v10 = vld [vmem:[#allocation50_spill] sm:$0xff] }
 0x180   : > { %v1190_v62 = vshll.u32 %v5197_v61, 30  ;;  %v1465_v13 = vsel %vm1464_vm5, 1, %v6305_v22  ;;  %v1066_v36 = vadd.f32 -0.4999988, %v1065_v32  ;;  %v1073_v55 = vadd.f32 -0.16666654, %v1072_v58 }
 0x181   : > { %v1457_v24 = vshrl.u32 %v6412_v10, 16  ;;  %v1341_v2 = vsel %vm1339_vm6, %v1340_v11, %v1336_v31  ;;  %v1467_v30 = vadd.s32 %v1465_v13, %v6413_v56  ;;  %v1480_v59 = vshll.u32 %v6414_v60, 16 }
 0x182   : > { %v5211_v23 = vsub.s32 %v1187_v43, %v1190_v62  ;;  %v1485_v33 = vadd.s32 %v1483_v9, %v6415_v14  ;;  %v1067_v20 = vmul.f32 %v1066_v36, %v1062_v7  ;;  %v1074_v0 = vmul.f32 %v1073_v55, %v1062_v7 }
 0x183   : > { %vm1077_vm9 = vweird.f32 %v6398_v1  ;;  %v1079_v3 = vand.u32 3, %v1078_v37  ;;  %v6418_v48 = vmul.u32 %v6416_v46, %v6417_v4  ;;  %v1468_v38 = vadd.s32 %v1467_v30, %v1457_v24  ;;  %v6420_v30 = vld [vmem:[#allocation53_spill] sm:$0xff] }
 0x184   : > { %vm1192_vm8 = vcmp.lt.s32.totalorder %v5211_v23, 0  ;;  %v1193_v50 = vsub.s32 0, %v5211_v23  ;;  %vm1486_vm10 = vc.u32 %v1484_v51, %v1480_v59  ;;  %v1068_v39 = vadd.f32 1.0, %v1067_v20 }
 0x185   : > { %v1342_v43 = vadd.s32 %v1341_v2, %v6418_v48  ;;  %v1075_v8 = vadd.f32 1.0, %v1074_v0  ;;  %v1487_v25 = vsel %vm1486_vm10, 1, %v6305_v22  ;;  %v379_v7 = vadd.f32 %v4725_v16, %v378_v21 }
 0x186   : > { %v1194_v41 = vsel %vm1192_vm8, %v1193_v50, %v5211_v23  ;;  %v1459_v42 = vshrl.u32 %v4737_v49, 16  ;;  %v1085_v45 = vxor.u32 2147483648, %v1068_v39  ;;  %v1479_v19 = vshrl.u32 %v4756_v6, 16 }
 0x187   : > { %v1195_v40 = vclz %v1194_v41  ;;  %v1343_v29 = vadd.s32 536870912, %v1342_v43  ;;  %v1076_v12 = vmul.f32 %v1075_v8, %v5169_v15  ;;  %v1489_v53 = vadd.s32 %v1487_v25, %v1485_v33  ;;  %v6427_v25 = vld [vmem:[#allocation27_spill] sm:$0xff] }
 0x188   : > { %vm1080_vm11 = vcmp.lt.s32.totalorder %v1079_v3, 2  ;;  %vm1081_vm12 = vcmp.eq.s32.totalorder %v1079_v3, 0  ;;  %vm1084_vm13 = vcmp.eq.s32.totalorder %v1079_v3, 2  ;;  %vm1091_vm14 = vcmp.lt.s32.totalorder %v6419_v35, 0 }
 0x189   : > { %v3523_v5 = vadd.s32 4294967294, %v1195_v40  ;;  %v1082_v37 = vxor.u32 2147483648, %v1076_v12  ;;  %v5230_v31 = vshrl.u32 %v1343_v29, 30  ;;  %v5232_v16 = vadd.s32 %v1468_v38, %v1459_v42  ;;  %v6424_v38 = vld [vmem:[#allocation48_spill] sm:$0xff] }
 0x18a   : > { %v1490_v28 = vadd.s32 %v1489_v53, %v1479_v19  ;;  %v1183_v49 = vadd.s32 %v5134_v52, %v5125_v26  ;;  %v1481_v15 = vshrl.u32 %v6414_v60, 16  ;;  %v5237_v6 = vadd.s32 %v1484_v51, %v1480_v59 }
 0x18b   : > { %vm3524_vm15 = vcmp.lt.s32.totalorder %v3523_v5, 0  ;;  %v1083_v32 = vsel %vm1081_vm12, %v1068_v39, %v1082_v37  ;;  %v1086_v58 = vsel %vm1084_vm13, %v1085_v45, %v1076_v12  ;;  %v1345_v11 = vshll.u32 %v5230_v31, 30  ;;  %v6425_v39 = vld [vmem:[#allocation51_spill] sm:$0xff] }
 0x18c   : > { %v1198_v62 = vsel %vm3524_vm15, 0, %v3523_v5  ;;  %v1087_v13 = vsel %vm1080_vm11, %v1083_v32, %v1086_v58  ;;  %v1213_v55 = vsub.s32 4, %v5197_v61  ;;  %v1491_v52 = vadd.s32 %v1490_v28, %v1481_v15 }
 0x18d   : > { %v1199_v9 = vsub.s32 32, %v1198_v62  ;;  %v1203_v36 = vsub.s32 4294967266, %v1198_v62  ;;  %v1088_v10 = vsel %vm1077_vm9, nan, %v1087_v13  ;;  %v5244_v26 = vsub.s32 %v1342_v43, %v1345_v11 }
 0x18e   : > { %vm1494_vm0 = vc.u32 %v5232_v16, %v5237_v6  ;;  %v1712_v51 = vadd.f32 %v1088_v10, %v379_v7  ;;  %v1200_v24 = vshll.u32 %v5211_v23, %v1198_v62  ;;  %v6421_v60 = vand.u32 65535, %v4900_v44  ;;  %v6428_v7 = vld [vmem:[#allocation52_spill] sm:$0xff] }
 0x18f   : > { %v1201_v2 = vshrl.u32 %v1183_v49, %v1199_v9  ;;  %v1204_v56 = vadd.s32 127, %v1203_v36  ;;  %vm1347_vm1 = vcmp.lt.s32.totalorder %v5244_v26, 0  ;;  %v1348_v1 = vsub.s32 0, %v5244_v26 }
 0x190   : > { %v5252_v59 = vmul.u32 %v6421_v60, %v6420_v30  ;;  %v1495_v14 = vadd.s32 1, %v1491_v52  ;;  %vm5259_vm3 = vc.u32 %v5187_v47, %v1611_v27  ;;  %v1627_v23 = vand.u32 65535, %v4909_v63  ;;  %1721 = vst.msk [vmem:[#allocation2 + $0x18] sm:$0xff] %vm1717_vm2, %v1712_v51  ;;  %3537 = vmatmul.msk.f32.gmra.mxu2 %vm1717_vm2, %v1712_v51  ;;  %3545 = vmatmul.msk.f32.gmra.mxu3 %vm1717_vm2, %v1712_v51 }
 0x191   : > { %v1202_v21 = vor.u32 %v1201_v2, %v1200_v24  ;;  %v1205_v20 = vshll.u32 %v1204_v56, 23  ;;  %v1617_v0 = vadd.s32 %v1611_v27, %v5187_v47  ;;  %v5273_v50 = vmul.u32 %v1628_v18, %v4745_v34 }
 0x192   : > { %v1349_v3 = vsel %vm1347_vm1, %v1348_v1, %v5244_v26  ;;  %v1496_v46 = vsel %vm1494_vm0, %v1495_v14, %v1491_v52  ;;  %v1214_v48 = vsel %vm1091_vm14, %v1213_v55, %v5197_v61  ;;  %v6426_v47 = vmul.u32 %v6424_v38, %v6425_v39  ;;  %v6433_v14 = vld [vmem:[#allocation23_spill] sm:$0xff] }
 0x193   : > { %v1206_v4 = vor.u32 4788187, %v1205_v20  ;;  %v1350_v43 = vclz %v1349_v3  ;;  %v1613_v8 = vshll.u32 %v5252_v59, 16  ;;  %v1616_v41 = vsel %vm5259_vm3, 1, %v6305_v22 }
 0x194   : > { %v1497_v27 = vadd.s32 %v1496_v46, %v6426_v47  ;;  %v1647_v40 = vmul.u32 %v6428_v7, %v6427_v25  ;;  %v6429_v29 = vand.u32 2147483647, %v6419_v35  ;;  %v1209_v12 = vcvt.s32.f32 %v1202_v21  ;;  %v381_v47 = vpop.f32.mrf.mxu0 }
 0x195   : > { %v1207_v61 = vand.u32 2147483647, %v1206_v4  ;;  %v3526_v45 = vadd.s32 4294967294, %v1350_v43  ;;  %v6432_v53 = vshrl.u32 %v4900_v44, 16  ;;  %v1629_v37 = vmul.u32 %v1627_v23, %v4745_v34 }
 0x196   : > { %vm5293_vm4 = vcmp.le.f32.partialorder %v6429_v29, 0.7853982  ;;  %v1498_v19 = vadd.s32 536870912, %v1497_v27  ;;  %v1633_v49 = vshll.u32 %v5273_v50, 16  ;;  %vm1619_vm7 = vc.u32 %v1617_v0, %v1613_v8 }
 0x197   : > { %v1610_v5 = vmul.u32 %v6432_v53, %v6420_v30  ;;  %v1216_v28 = vsel %vm5293_vm4, 0, %v1214_v48  ;;  %v1210_v15 = vmul.f32 %v1209_v12, %v1207_v61  ;;  %vm3527_vm5 = vcmp.lt.s32.totalorder %v3526_v45, 0 }
 0x198   : > { %v5304_v32 = vshrl.u32 %v1498_v19, 30  ;;  %v5307_v62 = vmul.u32 %v1627_v23, %v6420_v30  ;;  %v1338_v44 = vadd.s32 %v5199_v17, %v5192_v57  ;;  %v1353_v11 = vsel %vm3527_vm5, 0, %v3526_v45 }
 0x199   : > { %v1618_v58 = vadd.s32 %v1616_v41, %v1610_v5  ;;  %v1211_v13 = vxor.u32 2147483648, %v1210_v15  ;;  %v1354_v34 = vsub.s32 32, %v1353_v11  ;;  %v1358_v9 = vsub.s32 4294967266, %v1353_v11 }
 0x19a   : > { %vm1637_vm6 = vc.u32 %v1629_v37, %v1633_v49  ;;  %v1233_v36 = vadd.s32 3, %v1216_v28  ;;  %v1500_v55 = vshll.u32 %v5304_v32, 30  ;;  %v1620_v10 = vsel %vm1619_vm7, 1, %v6305_v22 }
 0x19b   : > { %v1639_v52 = vadd.s32 %v1633_v49, %v1629_v37  ;;  %v1212_v51 = vsel %vm1091_vm14, %v1211_v13, %v1210_v15  ;;  %v1355_v24 = vshll.u32 %v5244_v26, %v1353_v11  ;;  %v1356_v2 = vshrl.u32 %v1338_v44, %v1354_v34 }
 0x19c   : > { %v1359_v56 = vadd.s32 127, %v1358_v9  ;;  %v5319_v57 = vsel %vm5293_vm4, %v6419_v35, %v1212_v51  ;;  %v5321_v17 = vsub.s32 %v1497_v27, %v1500_v55  ;;  %v1635_v60 = vshll.u32 %v5307_v62, 16 }
 0x19d   : > { %v1638_v1 = vsel %vm1637_vm6, 1, %v6305_v22  ;;  %vm1246_vm8 = vcmp.lt.s32.totalorder %v6433_v14, 0  ;;  %v1632_v33 = vmul.u32 %v1628_v18, %v6420_v30  ;;  %v1217_v26 = vmul.f32 %v5319_v57, %v5319_v57 }
 0x19e   : > { %v1357_v23 = vor.u32 %v1356_v2, %v1355_v24  ;;  %v1360_v21 = vshll.u32 %v1359_v56, 23  ;;  %vm1502_vm9 = vcmp.lt.s32.totalorder %v5321_v17, 0  ;;  %v1503_v20 = vsub.s32 0, %v5321_v17 }
 0x19f   : > { %v1622_v0 = vadd.s32 %v1620_v10, %v1618_v58  ;;  %vm1641_vm10 = vc.u32 %v1639_v52, %v1635_v60  ;;  %v1218_v3 = vmul.f32 -0.001358992, %v1217_v26  ;;  %v1225_v46 = vmul.f32 -0.00019511016, %v1217_v26 }
 0x1a0   : > { %v6434_v4 = vand.u32 2147483647, %v6433_v14  ;;  %v1361_v63 = vor.u32 4788187, %v1360_v21  ;;  %v1640_v18 = vadd.s32 %v1638_v1, %v1632_v33  ;;  %v5339_v30 = vand.u32 3, %v1233_v36 }
 0x1a1   : > { %v1504_v43 = vsel %vm1502_vm9, %v1503_v20, %v5321_v17  ;;  %v1612_v38 = vshrl.u32 %v5164_v54, 16  ;;  %v1642_v39 = vsel %vm1641_vm10, 1, %v6305_v22  ;;  %v1219_v27 = vadd.f32 0.041655596, %v1218_v3  ;;  %v5349_v54 = vld [vmem:[%s6195_s5] ss:$0 sm:$0xff] }
 0x1a2   : > { %vm5335_vm11 = vcmp.le.f32.partialorder %v6434_v4, 0.7853982  ;;  %v1226_v8 = vadd.f32 0.008332121, %v1225_v46  ;;  %v1362_v41 = vand.u32 2147483647, %v1361_v63  ;;  %v1364_v29 = vcvt.s32.f32 %v1357_v23 }
 0x1a3   : > { %v1368_v42 = vsub.s32 4, %v5230_v31  ;;  %v1505_v61 = vclz %v1504_v43  ;;  %v1623_v12 = vadd.s32 %v1622_v0, %v1612_v38  ;;  %v1634_v45 = vshrl.u32 %v5273_v50, 16 }
 0x1a4   : > { %v1220_v19 = vmul.f32 %v1219_v27, %v1217_v26  ;;  %v1227_v53 = vmul.f32 %v1226_v8, %v1217_v26  ;;  %v1365_v5 = vmul.f32 %v1364_v29, %v1362_v41  ;;  %v1644_v37 = vadd.s32 %v1642_v39, %v1640_v18 }
 0x1a5   : > { %v382_v22 = vadd.f32 %v5349_v54, %v381_v47  ;;  %v1493_v28 = vadd.s32 %v5237_v6, %v5232_v16  ;;  %v3529_v49 = vadd.s32 4294967294, %v1505_v61  ;;  %v1614_v15 = vshrl.u32 %v5252_v59, 16 }
 0x1a6   : > { %v1221_v58 = vadd.f32 -0.4999988, %v1220_v19  ;;  %v1228_v44 = vadd.f32 -0.16666654, %v1227_v53  ;;  %v1366_v50 = vxor.u32 2147483648, %v1365_v5  ;;  %v1645_v11 = vadd.s32 %v1644_v37, %v1634_v45 }
 0x1a7   : > { %v1369_v13 = vsel %vm1246_vm8, %v1368_v42, %v5230_v31  ;;  %vm3530_vm12 = vcmp.lt.s32.totalorder %v3529_v49, 0  ;;  %v5358_v34 = vadd.s32 %v1623_v12, %v1614_v15  ;;  %v1636_v9 = vshrl.u32 %v5307_v62, 16 }
 0x1a8   : > { %v1222_v36 = vmul.f32 %v1221_v58, %v1217_v26  ;;  %v1229_v55 = vmul.f32 %v1228_v44, %v1217_v26  ;;  %vm1235_vm13 = vcmp.lt.s32.totalorder %v5339_v30, 2  ;;  %v1367_v16 = vsel %vm1246_vm8, %v1366_v50, %v1365_v5  ;;  %v384_v50 = vpop.f32.mrf.mxu0 }
 0x1a9   : > { %v1508_v6 = vsel %vm3530_vm12, 0, %v3529_v49  ;;  %vm1232_vm14 = vweird.f32 %v6419_v35  ;;  %v1370_v59 = vsel %vm5335_vm11, %v6433_v14, %v1367_v16  ;;  %v5368_v51 = vadd.s32 %v1639_v52, %v1635_v60 }
 0x1aa   : > { %v1509_v31 = vsub.s32 32, %v1508_v6  ;;  %v1513_v10 = vsub.s32 4294967266, %v1508_v6  ;;  %v1223_v24 = vadd.f32 1.0, %v1222_v36  ;;  %v1230_v62 = vadd.f32 1.0, %v1229_v55 }
 0x1ab   : > { %v1372_v2 = vmul.f32 %v1370_v59, %v1370_v59  ;;  %v1646_v56 = vadd.s32 %v1645_v11, %v1636_v9  ;;  %v1510_v1 = vshll.u32 %v5321_v17, %v1508_v6  ;;  %vm1649_vm15 = vc.u32 %v5358_v34, %v5368_v51 }
 0x1ac   : > { %v1511_v33 = vshrl.u32 %v1493_v28, %v1509_v31  ;;  %v1514_v26 = vadd.s32 127, %v1513_v10  ;;  %v1231_v23 = vmul.f32 %v1230_v62, %v5319_v57  ;;  %v1240_v21 = vxor.u32 2147483648, %v1223_v24 }
 0x1ad   : > { %v1373_v20 = vmul.f32 -0.001358992, %v1372_v2  ;;  %v1380_v0 = vmul.f32 -0.00019511016, %v1372_v2  ;;  %vm1239_vm0 = vcmp.eq.s32.totalorder %v5339_v30, 2  ;;  %v1650_v3 = vadd.s32 1, %v1646_v56 }
 0x1ae   : > { %v1512_v52 = vor.u32 %v1511_v33, %v1510_v1  ;;  %v1515_v60 = vshll.u32 %v1514_v26, 23  ;;  %v1237_v46 = vxor.u32 2147483648, %v1231_v23  ;;  %v1371_v4 = vsel %vm5335_vm11, 0, %v1369_v13 }
 0x1af   : > { %v1374_v17 = vadd.f32 0.041655596, %v1373_v20  ;;  %v1381_v63 = vadd.f32 0.008332121, %v1380_v0  ;;  %vm1236_vm1 = vcmp.eq.s32.totalorder %v5339_v30, 0  ;;  %v1241_v18 = vsel %vm1239_vm0, %v1240_v21, %v1231_v23 }
 0x1b0   : > { %v1516_v43 = vor.u32 4788187, %v1515_v60  ;;  %v1651_v57 = vsel %vm1649_vm15, %v1650_v3, %v1646_v56  ;;  %v1238_v38 = vsel %vm1236_vm1, %v1223_v24, %v1237_v46  ;;  %v1388_v8 = vadd.s32 3, %v1371_v4 }
 0x1b1   : > { %v1375_v39 = vmul.f32 %v1374_v17, %v1372_v2  ;;  %v1382_v47 = vmul.f32 %v1381_v63, %v1372_v2  ;;  %v1652_v27 = vadd.s32 %v1651_v57, %v1647_v40  ;;  %v1242_v48 = vsel %vm1235_vm13, %v1238_v38, %v1241_v18  ;;  %v6437_v40 = vld [vmem:[#allocation37_spill] sm:$0xff] }
 0x1b2   : > { %v1517_v41 = vand.u32 2147483647, %v1516_v43  ;;  %v1519_v29 = vcvt.s32.f32 %v1512_v52  ;;  %v1243_v42 = vsel %vm1232_vm14, nan, %v1242_v48  ;;  %v1389_v25 = vand.u32 3, %v1388_v8 }
 0x1b3   : > { %v1376_v61 = vadd.f32 -0.4999988, %v1375_v39  ;;  %v1383_v12 = vadd.f32 -0.16666654, %v1382_v47  ;;  %v1653_v45 = vadd.s32 536870912, %v1652_v27  ;;  %v1713_v19 = vadd.f32 %v1243_v42, %v382_v22 }
 0x1b4   : > { %v1520_v53 = vmul.f32 %v1519_v29, %v1517_v41  ;;  %vm1401_vm3 = vcmp.lt.s32.totalorder %v6437_v40, 0  ;;  %v6438_v22 = vand.u32 2147483647, %v6437_v40  ;;  %v1523_v44 = vsub.s32 4, %v5304_v32  ;;  %v387_v41 = vpop.f32.mrf.mxu0 }
 0x1b5   : > { %v1377_v5 = vmul.f32 %v1376_v61, %v1372_v2  ;;  %v1384_v37 = vmul.f32 %v1383_v12, %v1372_v2  ;;  %v5388_v28 = vshrl.u32 %v1653_v45, 30  ;;  %1722 = vst.msk [vmem:[#allocation2 + $0x20] sm:$0xff] %vm1717_vm2, %v1713_v19  ;;  %3538 = vmatmul.msk.f32.gmra.mxu2 %vm1717_vm2, %v1713_v19  ;;  %3546 = vmatmul.msk.f32.gmra.mxu3 %vm1717_vm2, %v1713_v19  ;;  %vm1387_vm5 = vweird.f32 %v6433_v14 }
 0x1b6   : > { %v1521_v7 = vxor.u32 2147483648, %v1520_v53  ;;  %vm5397_vm4 = vcmp.le.f32.partialorder %v6438_v22, 0.7853982  ;;  %vm1391_vm7 = vcmp.eq.s32.totalorder %v1389_v25, 0  ;;  %vm1394_vm6 = vcmp.eq.s32.totalorder %v1389_v25, 2  ;;  %v6441_v22 = vld [vmem:[#allocation44_spill] sm:$0xff] }
 0x1b7   : > { %v1378_v35 = vadd.f32 1.0, %v1377_v5  ;;  %v1385_v30 = vadd.f32 1.0, %v1384_v37  ;;  %v1655_v49 = vshll.u32 %v5388_v28, 30  ;;  %v385_v31 = vadd.f32 %v5349_v54, %v384_v50 }
 0x1b8   : > { %v1522_v58 = vsel %vm1401_vm3, %v1521_v7, %v1520_v53  ;;  %vm1390_vm9 = vcmp.lt.s32.totalorder %v1389_v25, 2  ;;  %v1648_v18 = vadd.s32 %v5368_v51, %v5358_v34  ;;  %v388_v19 = vadd.f32 %v5349_v54, %v387_v41 }
 0x1b9   : > { %v1386_v11 = vmul.f32 %v1385_v30, %v1370_v59  ;;  %v1395_v13 = vxor.u32 2147483648, %v1378_v35  ;;  %v1525_v9 = vsel %vm5397_vm4, %v6437_v40, %v1522_v58  ;;  %v1656_v36 = vsub.s32 %v1652_v27, %v1655_v49 }
 0x1ba   : > { %v1527_v55 = vmul.f32 %v1525_v9, %v1525_v9  ;;  %v1524_v59 = vsel %vm1401_vm3, %v1523_v44, %v5304_v32  ;;  %vm1542_vm14 = vweird.f32 %v6437_v40  ;;  %vm1556_vm15 = vcmp.lt.s32.totalorder %v6441_v22, 0 }
 0x1bb   : > { %v1392_v16 = vxor.u32 2147483648, %v1386_v11  ;;  %vm1657_vm8 = vcmp.lt.s32.totalorder %v1656_v36, 0  ;;  %v1658_v6 = vsub.s32 0, %v1656_v36  ;;  %v1396_v2 = vsel %vm1394_vm6, %v1395_v13, %v1386_v11 }
 0x1bc   : > { %v1528_v10 = vmul.f32 -0.001358992, %v1527_v55  ;;  %v1535_v24 = vmul.f32 -0.00019511016, %v1527_v55  ;;  %v1526_v20 = vsel %vm5397_vm4, 0, %v1524_v59  ;;  %v1678_v40 = vsub.s32 4, %v5388_v28 }
 0x1bd   : > { %v1393_v62 = vsel %vm1391_vm7, %v1378_v35, %v1392_v16  ;;  %v1659_v56 = vsel %vm1657_vm8, %v1658_v6, %v1656_v36  ;;  %v1543_v4 = vadd.s32 3, %v1526_v20  ;;  %v6442_v15 = vand.u32 2147483647, %v6441_v22 }
 0x1be   : > { %v1397_v1 = vsel %vm1390_vm9, %v1393_v62, %v1396_v2  ;;  %v1529_v33 = vadd.f32 0.041655596, %v1528_v10  ;;  %v1536_v26 = vadd.f32 0.008332121, %v1535_v24  ;;  %v1660_v23 = vclz %v1659_v56 }
 0x1bf   : > { %v1398_v21 = vsel %vm1387_vm5, nan, %v1397_v1  ;;  %v1544_v27 = vand.u32 3, %v1543_v4  ;;  %vm1555_vm0 = vcmp.le.f32.partialorder %v6442_v15, 0.7853982  ;;  %vm1697_vm5 = vweird.f32 %v6441_v22 }
 0x1c0   : > { %v1714_v0 = vadd.f32 %v1398_v21, %v385_v31  ;;  %v1530_v52 = vmul.f32 %v1529_v33, %v1527_v55  ;;  %v1537_v60 = vmul.f32 %v1536_v26, %v1527_v55  ;;  %v3532_v32 = vadd.s32 4294967294, %v1660_v23  ;;  %v390_v26 = vpop.f32.mrf.mxu0 }
 0x1c1   : > { %vm1546_vm11 = vcmp.eq.s32.totalorder %v1544_v27, 0  ;;  %vm1549_vm12 = vcmp.eq.s32.totalorder %v1544_v27, 2  ;;  %vm1545_vm13 = vcmp.lt.s32.totalorder %v1544_v27, 2  ;;  %v3937_v27 = vmov 0.0  }
 0x1c2   : > { %1723 = vst.msk [vmem:[#allocation2 + $0x28] sm:$0xff] %vm1717_vm2, %v1714_v0  ;;  %3539 = vmatmul.msk.f32.gmra.mxu2 %vm1717_vm2, %v1714_v0  ;;  %3547 = vmatmul.msk.f32.gmra.mxu3 %vm1717_vm2, %v1714_v0  ;;  %v1531_v3 = vadd.f32 -0.4999988, %v1530_v52  ;;  %v1538_v46 = vadd.f32 -0.16666654, %v1537_v60  ;;  %vm3533_vm10 = vcmp.lt.s32.totalorder %v3532_v32, 0  ;;  %v391_v0 = vadd.f32 %v5349_v54, %v390_v26 }
 0x1c3   : > { %v1663_v17 = vsel %vm3533_vm10, 0, %v3532_v32  ;;  %1856 = vst.msk [vmem:[#allocation4] sm:$0xff] %vm1717_vm2, %v3937_v27  ;;  %vm1864_vm7 = vcmask 7168   ;;  %vm1873_vm6 = vcmask 519168  }
 0x1c4   : > { %v1532_v14 = vmul.f32 %v1531_v3, %v1527_v55  ;;  %v1539_v63 = vmul.f32 %v1538_v46, %v1527_v55  ;;  %v1664_v43 = vsub.s32 32, %v1663_v17  ;;  %v1668_v57 = vsub.s32 4294967266, %v1663_v17  ;;  %1857 = vst.msk [vmem:[#allocation4 + $0x8] sm:$0xff] %vm1717_vm2, %v3937_v27 }
 0x1c5   : > { %v1665_v48 = vshll.u32 %v1656_v36, %v1663_v17  ;;  %1858 = vst.msk [vmem:[#allocation4 + $0x10] sm:$0xff] %vm1717_vm2, %v3937_v27 }
 0x1c6   : > { %v1533_v38 = vadd.f32 1.0, %v1532_v14  ;;  %v1540_v39 = vadd.f32 1.0, %v1539_v63  ;;  %v1666_v47 = vshrl.u32 %v1648_v18, %v1664_v43  ;;  %v1669_v8 = vadd.s32 127, %v1668_v57  ;;  %1859 = vst.msk [vmem:[#allocation4 + $0x18] sm:$0xff] %vm1717_vm2, %v3937_v27 }
 0x1c7   : > { %1860 = vst.msk [vmem:[#allocation4 + $0x20] sm:$0xff] %vm1717_vm2, %v3937_v27 }
 0x1c8   : > { %v1541_v29 = vmul.f32 %v1540_v39, %v1525_v9  ;;  %v1550_v42 = vxor.u32 2147483648, %v1533_v38  ;;  %v1667_v61 = vor.u32 %v1666_v47, %v1665_v48  ;;  %v1670_v12 = vshll.u32 %v1669_v8, 23  ;;  %1861 = vst.msk [vmem:[#allocation4 + $0x28] sm:$0xff] %vm1717_vm2, %v3937_v27 }
 0x1c9   : > { %v1679_v9 = vsel %vm1556_vm15, %v1678_v40, %v5388_v28  ;;  %1862 = vst.msk [vmem:[#allocation4 + $0x30] sm:$0xff] %vm1717_vm2, %v3937_v27 }
 0x1ca   : > { %v1547_v45 = vxor.u32 2147483648, %v1541_v29  ;;  %v1671_v53 = vor.u32 4788187, %v1670_v12  ;;  %v1551_v51 = vsel %vm1549_vm12, %v1550_v42, %v1541_v29  ;;  %v1674_v25 = vcvt.s32.f32 %v1667_v61  ;;  %1863 = vst.msk [vmem:[#allocation4 + $0x38] sm:$0xff] %vm1717_vm2, %v3937_v27 }
 0x1cb   : > { %v1681_v16 = vsel %vm1555_vm0, 0, %v1679_v9  ;;  %1865 = vst.msk [vmem:[#allocation5] sm:$0xff] %vm1864_vm7, %v3937_v27 }
 0x1cc   : > { %v1548_v34 = vsel %vm1546_vm11, %v1533_v38, %v1547_v45  ;;  %v1672_v37 = vand.u32 2147483647, %v1671_v53  ;;  %v1698_v24 = vadd.s32 3, %v1681_v16  ;;  %1866 = vst.msk [vmem:[#allocation5 + $0x8] sm:$0xff] %vm1864_vm7, %v3937_v27 }
 0x1cd   : > { %v1552_v5 = vsel %vm1545_vm13, %v1548_v34, %v1551_v51  ;;  %1867 = vst.msk [vmem:[#allocation5 + $0x10] sm:$0xff] %vm1864_vm7, %v3937_v27 }
 0x1ce   : > { %v1553_v7 = vsel %vm1542_vm14, nan, %v1552_v5  ;;  %v1675_v30 = vmul.f32 %v1674_v25, %v1672_v37  ;;  %v1699_v33 = vand.u32 3, %v1698_v24  ;;  %1868 = vst.msk [vmem:[#allocation5 + $0x18] sm:$0xff] %vm1864_vm7, %v3937_v27 }
 0x1cf   : > { %v1715_v35 = vadd.f32 %v1553_v7, %v388_v19  ;;  %1869 = vst.msk [vmem:[#allocation5 + $0x20] sm:$0xff] %vm1864_vm7, %v3937_v27 }
 0x1d0   : > { %v1676_v49 = vxor.u32 2147483648, %v1675_v30  ;;  %vm1701_vm1 = vcmp.eq.s32.totalorder %v1699_v33, 0  ;;  %vm1704_vm3 = vcmp.eq.s32.totalorder %v1699_v33, 2  ;;  %vm1700_vm4 = vcmp.lt.s32.totalorder %v1699_v33, 2  ;;  %1870 = vst.msk [vmem:[#allocation5 + $0x28] sm:$0xff] %vm1864_vm7, %v3937_v27 }
 0x1d1   : > { %1724 = vst.msk [vmem:[#allocation2 + $0x30] sm:$0xff] %vm1717_vm2, %v1715_v35  ;;  %3540 = vmatmul.msk.f32.gmra.mxu2 %vm1717_vm2, %v1715_v35  ;;  %3548 = vmatmul.msk.f32.gmra.mxu3 %vm1717_vm2, %v1715_v35 }
 0x1d2   : > { %v1677_v58 = vsel %vm1556_vm15, %v1676_v49, %v1675_v30  ;;  %1871 = vst.msk [vmem:[#allocation5 + $0x30] sm:$0xff] %vm1864_vm7, %v3937_v27 }
 0x1d3   : > { %v1680_v44 = vsel %vm1555_vm0, %v6441_v22, %v1677_v58  ;;  %1872 = vst.msk [vmem:[#allocation5 + $0x38] sm:$0xff] %vm1864_vm7, %v3937_v27 }
 0x1d4   : > { %v1682_v50 = vmul.f32 %v1680_v44, %v1680_v44  ;;  %1874 = vst.msk [vmem:[#allocation6] sm:$0xf] %vm1873_vm6, %v3937_v27 }
 0x1d6   : > { %v1683_v11 = vmul.f32 -0.001358992, %v1682_v50  ;;  %v1690_v13 = vmul.f32 -0.00019511016, %v1682_v50 }
 0x1d8   : > { %v1684_v36 = vadd.f32 0.041655596, %v1683_v11  ;;  %v1691_v55 = vadd.f32 0.008332121, %v1690_v13 }
 0x1da   : > { %v1685_v6 = vmul.f32 %v1684_v36, %v1682_v50  ;;  %v1692_v31 = vmul.f32 %v1691_v55, %v1682_v50 }
 0x1dc   : > { %v1686_v59 = vadd.f32 -0.4999988, %v1685_v6  ;;  %v1693_v10 = vadd.f32 -0.16666654, %v1692_v31 }
 0x1de   : > { %v1687_v62 = vmul.f32 %v1686_v59, %v1682_v50  ;;  %v1694_v2 = vmul.f32 %v1693_v10, %v1682_v50 }
 0x1e0   : > { %v1688_v56 = vadd.f32 1.0, %v1687_v62  ;;  %v1695_v1 = vadd.f32 1.0, %v1694_v2 }
 0x1e2   : > { %v1696_v23 = vmul.f32 %v1695_v1, %v1680_v44  ;;  %v1705_v21 = vxor.u32 2147483648, %v1688_v56 }
 0x1e4   : > { %v1702_v20 = vxor.u32 2147483648, %v1696_v23  ;;  %v1706_v52 = vsel %vm1704_vm3, %v1705_v21, %v1696_v23 }
 0x1e6   : > { %v1703_v28 = vsel %vm1701_vm1, %v1688_v56, %v1702_v20 }
 0x1e7   : > { %v1707_v60 = vsel %vm1700_vm4, %v1703_v28, %v1706_v52 }
 0x1e8   : > { %v1708_v32 = vsel %vm1697_vm5, nan, %v1707_v60 }
 0x1e9   : > { %v1716_v3 = vadd.f32 %v1708_v32, %v391_v0  ;;  %v1771_v46 = vpop.f32.mrf.mxu2  ;;  %v1824_v4 = vpop.f32.mrf.mxu3 }
 0x1ea   : > { %1795 = vst.msk [vmem:[#allocation3] sm:$0xff] %vm1717_vm2, %v1771_v46 }
 0x1eb   : > { %1725 = vst.msk [vmem:[#allocation2 + $0x38] sm:$0xff] %vm1717_vm2, %v1716_v3  ;;  %3541 = vmatmul.msk.f32.gmra.mxu2 %vm1717_vm2, %v1716_v3  ;;  %3549 = vmatmul.msk.f32.gmra.mxu3 %vm1717_vm2, %v1716_v3 }
 0x1ec   : > { %1848 = vst.msk [vmem:[#allocation3 + $0x40] sm:$0xff] %vm1717_vm2, %v1824_v4 }
 0x1f1   : > { %v1774_v54 = vpop.f32.mrf.mxu2  ;;  %v1827_v17 = vpop.f32.mrf.mxu3 }
 0x1f2   : > { %1796 = vst.msk [vmem:[#allocation3 + $0x8] sm:$0xff] %vm1717_vm2, %v1774_v54 }
 0x1f3   : > { %1849 = vst.msk [vmem:[#allocation3 + $0x48] sm:$0xff] %vm1717_vm2, %v1827_v17 }
 0x1fa   : > { %v1777_v14 = vpop.f32.mrf.mxu2  ;;  %v1830_v63 = vpop.f32.mrf.mxu3 }
 0x1fb   : > { %1797 = vst.msk [vmem:[#allocation3 + $0x10] sm:$0xff] %vm1717_vm2, %v1777_v14 }
 0x1fc   : > { %1850 = vst.msk [vmem:[#allocation3 + $0x50] sm:$0xff] %vm1717_vm2, %v1830_v63 }
 0x213   : > { %v1780_v18 = vpop.f32.mrf.mxu2  ;;  %v1833_v43 = vpop.f32.mrf.mxu3 }
 0x214   : > { %1798 = vst.msk [vmem:[#allocation3 + $0x18] sm:$0xff] %vm1717_vm2, %v1780_v18 }
 0x215   : > { %1851 = vst.msk [vmem:[#allocation3 + $0x58] sm:$0xff] %vm1717_vm2, %v1833_v43 }
 0x238   : > { %v1783_v57 = vpop.f32.mrf.mxu2  ;;  %v1836_v38 = vpop.f32.mrf.mxu3 }
 0x239   : > { %1799 = vst.msk [vmem:[#allocation3 + $0x20] sm:$0xff] %vm1717_vm2, %v1783_v57 }
 0x23a   : > { %1852 = vst.msk [vmem:[#allocation3 + $0x60] sm:$0xff] %vm1717_vm2, %v1836_v38 }
 0x245   : > { %v1786_v39 = vpop.f32.mrf.mxu2  ;;  %v1839_v47 = vpop.f32.mrf.mxu3 }
 0x246   : > { %1800 = vst.msk [vmem:[#allocation3 + $0x28] sm:$0xff] %vm1717_vm2, %v1786_v39 }
 0x247   : > { %1853 = vst.msk [vmem:[#allocation3 + $0x68] sm:$0xff] %vm1717_vm2, %v1839_v47 }
 0x254   : > { %v1789_v48 = vpop.f32.mrf.mxu2  ;;  %v1842_v8 = vpop.f32.mrf.mxu3 }
 0x255   : > { %1801 = vst.msk [vmem:[#allocation3 + $0x30] sm:$0xff] %vm1717_vm2, %v1789_v48 }
 0x256   : > { %1854 = vst.msk [vmem:[#allocation3 + $0x70] sm:$0xff] %vm1717_vm2, %v1842_v8 }
 0x26e   : > { %v1792_v41 = vpop.f32.mrf.mxu2  ;;  %v1845_v29 = vpop.f32.mrf.mxu3 }
 0x26f   : > { %1802 = vst.msk [vmem:[#allocation3 + $0x38] sm:$0xff] %vm1717_vm2, %v1792_v41 }
 0x270   : > { %1855 = vst.msk [vmem:[#allocation3 + $0x78] sm:$0xff] %vm1717_vm2, %v1845_v29 }
 0x271 PF: > { %v1876_v42 = vld [vmem:[%s306_s16] sm:$0x1]  ;;  %v1877_v61 = vlaneseq  ;;  %v6443_v30 = vmov 0  ;;  %v6445_v15 = vmov 0  ;;  %v6447_v44 = vmov 0  ;;  %p3566_p9 = scmp.ne.s32.totalorder %s3916_s28, 0 }
 0x272   : > { %v1911_v45 = vadd.s32 64, %v1876_v42  ;;  %v5471_v19 = vld [vmem:[%s309_s19] ss:$0 sm:$0xff]  ;;  %v6449_v50 = vmov 0  ;;  %v3938_v11 = vmov 0.0   ;;  %v6451_v9 = vmov 0 }
 0x273   : > { %v1878_v12 = vshrl.u32 %v1877_v61, 7  ;;  %v6453_v31 = vmov 0  ;;  %v6455_v24 = vmov 0  ;;  %v6460_v26 = vmov 0 }
 0x274   : > { %v5473_v51 = vperm.slane %v1911_v45, 0  ;;  %v6464_v21 = vmov 0  ;;  %v6467_v0 = vmov 0  ;;  %v6469_v52 = vmov 0 }
 0x275   : > { %v1879_v53 = vadd.s32 8, %v1878_v12  ;;  %v1880_v34 = vadd.s32 16, %v1878_v12  ;;  %v1881_v5 = vadd.s32 24, %v1878_v12  ;;  %v1882_v37 = vadd.s32 32, %v1878_v12 }
 0x276   : > { %vm1895_vm2 = vcmp.eq.s32.totalorder %v1878_v12, %v5471_v19  ;;  %v1883_v25 = vadd.s32 40, %v1878_v12  ;;  %v1884_v7 = vadd.s32 48, %v1878_v12  ;;  %v1885_v35 = vadd.s32 56, %v1878_v12 }
 0x277   : > { %vm1896_vm8 = vcmp.eq.s32.totalorder %v1879_v53, %v5471_v19  ;;  %vm1897_vm9 = vcmp.eq.s32.totalorder %v1880_v34, %v5471_v19  ;;  %vm1913_vm10 = vcmp.eq.s32.totalorder %v1878_v12, %v5473_v51  ;;  %vm1898_vm11 = vcmp.eq.s32.totalorder %v1881_v5, %v5471_v19 }
 0x278   : > { %vm1914_vm12 = vcmp.eq.s32.totalorder %v1879_v53, %v5473_v51  ;;  %vm1915_vm13 = vcmp.eq.s32.totalorder %v1880_v34, %v5473_v51  ;;  %vm1916_vm14 = vcmp.eq.s32.totalorder %v1881_v5, %v5473_v51  ;;  %vm5483_vm15 = vmor %vm1895_vm2, %vm1913_vm10  ;;  %v1886_v49 = vadd.s32 64, %v1878_v12 }
 0x279   : > { %v6444_v30 = vsel %vm5483_vm15, 4294967295, %v6443_v30  ;;  %v1887_v22 = vadd.s32 72, %v1878_v12  ;;  %vm1899_vm0 = vcmp.eq.s32.totalorder %v1882_v37, %v5471_v19  ;;  %vm1917_vm1 = vcmp.eq.s32.totalorder %v1882_v37, %v5473_v51  ;;  %vm5489_vm3 = vmor %vm1896_vm8, %vm1914_vm12 }
 0x27a   : > { %v6446_v15 = vsel %vm5489_vm3, 4294967295, %v6445_v15  ;;  %v1888_v58 = vadd.s32 80, %v1878_v12  ;;  %v1889_v40 = vadd.s32 88, %v1878_v12  ;;  %vm1900_vm4 = vcmp.eq.s32.totalorder %v1883_v25, %v5471_v19  ;;  %vm5497_vm7 = vmor %vm1897_vm9, %vm1915_vm13 }
 0x27b   : > { %vm1918_vm5 = vcmp.eq.s32.totalorder %v1883_v25, %v5473_v51  ;;  %v6448_v44 = vsel %vm5497_vm7, 4294967295, %v6447_v44  ;;  %vm1901_vm6 = vcmp.eq.s32.totalorder %v1884_v7, %v5471_v19  ;;  %vm1902_vm2 = vcmp.eq.s32.totalorder %v1885_v35, %v5471_v19  ;;  %vm5508_vm10 = vmor %vm1898_vm11, %vm1916_vm14 }
 0x27c   : > { %vm1919_vm8 = vcmp.eq.s32.totalorder %v1884_v7, %v5473_v51  ;;  %v6450_v50 = vsel %vm5508_vm10, 4294967295, %v6449_v50  ;;  %v3550_v13 = vsel %vm5483_vm15, 1.0, %v3938_v11  ;;  %vm1920_vm9 = vcmp.eq.s32.totalorder %v1885_v35, %v5473_v51  ;;  %vm5517_vm12 = vmor %vm1899_vm0, %vm1917_vm1 }
 0x27d   : > { %v6452_v9 = vsel %vm5517_vm12, 4294967295, %v6451_v9  ;;  %v3551_v36 = vsel %vm5489_vm3, 1.0, %v3938_v11  ;;  %v3552_v55 = vsel %vm5497_vm7, 1.0, %v3938_v11  ;;  %v3553_v16 = vsel %vm5508_vm10, 1.0, %v3938_v11  ;;  %vm5533_vm14 = vmor %vm1900_vm4, %vm1918_vm5 }
 0x27e   : > { %v1890_v6 = vadd.s32 96, %v1878_v12  ;;  %vm1921_vm13 = vcmp.eq.s32.totalorder %v1886_v49, %v5473_v51  ;;  %v6454_v31 = vsel %vm5533_vm14, 4294967295, %v6453_v31  ;;  %v3554_v59 = vsel %vm5517_vm12, 1.0, %v3938_v11  ;;  %vm5545_vm11 = vmor %vm1901_vm6, %vm1919_vm8 }
 0x27f   : > { %v1891_v10 = vadd.s32 104, %v1878_v12  ;;  %v6456_v24 = vsel %vm5545_vm11, 4294967295, %v6455_v24  ;;  %v3555_v62 = vsel %vm5533_vm14, 1.0, %v3938_v11  ;;  %v1892_v2 = vadd.s32 112, %v1878_v12  ;;  %vm5557_vm0 = vmor %vm1902_vm2, %vm1920_vm9 }
 0x280   : > { %vm1923_vm5 = vcmp.eq.s32.totalorder %v1888_v58, %v5473_v51  ;;  %v3556_v1 = vsel %vm5545_vm11, 1.0, %v3938_v11  ;;  %v1893_v33 = vadd.s32 120, %v1878_v12  ;;  %vm1906_vm6 = vcmp.eq.s32.totalorder %v1889_v40, %v5471_v19 }
 0x281   : > { %vm1924_vm8 = vcmp.eq.s32.totalorder %v1889_v40, %v5473_v51  ;;  %vm6459_vm4 = vcmp.eq.s32.totalorder %v1886_v49, %v5471_v19  ;;  %v3557_v23 = vsel %vm5557_vm0, 1.0, %v3938_v11  ;;  %vm1907_vm2 = vcmp.eq.s32.totalorder %v1890_v6, %v5471_v19 }
 0x282   : > { %vm5569_vm1 = vmor %vm6459_vm4, %vm1921_vm13  ;;  %vm1925_vm9 = vcmp.eq.s32.totalorder %v1890_v6, %v5473_v51  ;;  %vm6462_vm15 = vcmp.eq.s32.totalorder %v1887_v22, %v5473_v51  ;;  %vm6463_vm3 = vcmp.eq.s32.totalorder %v1887_v22, %v5471_v19  ;;  %vm1908_vm13 = vcmp.eq.s32.totalorder %v1891_v10, %v5471_v19 }
 0x283   : > { %v6461_v26 = vsel %vm5569_vm1, 4294967295, %v6460_v26  ;;  %vm5581_vm7 = vmor %vm6463_vm3, %vm6462_vm15  ;;  %v3558_v20 = vsel %vm5569_vm1, 1.0, %v3938_v11  ;;  %vm1926_vm4 = vcmp.eq.s32.totalorder %v1891_v10, %v5473_v51  ;;  %vm6466_vm10 = vcmp.eq.s32.totalorder %v1888_v58, %v5471_v19 }
 0x284   : > { %v6465_v21 = vsel %vm5581_vm7, 4294967295, %v6464_v21  ;;  %vm5591_vm12 = vmor %vm6466_vm10, %vm1923_vm5  ;;  %v3559_v28 = vsel %vm5581_vm7, 1.0, %v3938_v11  ;;  %vm1909_vm15 = vcmp.eq.s32.totalorder %v1892_v2, %v5471_v19  ;;  %vm1927_vm3 = vcmp.eq.s32.totalorder %v1892_v2, %v5473_v51 }
 0x285   : > { %v6468_v0 = vsel %vm5591_vm12, 4294967295, %v6467_v0  ;;  %vm5599_vm14 = vmor %vm1906_vm6, %vm1924_vm8  ;;  %v3560_v60 = vsel %vm5591_vm12, 1.0, %v3938_v11  ;;  %vm1910_vm1 = vcmp.eq.s32.totalorder %v1893_v33, %v5471_v19  ;;  %vm1928_vm10 = vcmp.eq.s32.totalorder %v1893_v33, %v5473_v51 }
 0x286   : > { %v6470_v52 = vsel %vm5599_vm14, 4294967295, %v6469_v52  ;;  %vm5607_vm5 = vmor %vm1907_vm2, %vm1925_vm9  ;;  %v6471_v32 = vmov 0  ;;  %v3561_v3 = vsel %vm5599_vm14, 1.0, %v3938_v11  ;;  %1979 = sbr.rel (%p3566_p9) target bundleno = 1452 (0x5ac), region = 56 }
 0x287   : > { %v6472_v32 = vsel %vm5607_vm5, 4294967295, %v6471_v32  ;;  %vm5613_vm7 = vmor %vm1908_vm13, %vm1926_vm4  ;;  %v3562_v4 = vsel %vm5607_vm5, 1.0, %v3938_v11 }
 0x288   : > { %vm5619_vm6 = vmor %vm1909_vm15, %vm1927_vm3  ;;  %v3563_v17 = vsel %vm5613_vm7, 1.0, %v3938_v11 }
 0x289   : > { %vm5625_vm8 = vmor %vm1910_vm1, %vm1928_vm10  ;;  %v3564_v63 = vsel %vm5619_vm6, 1.0, %v3938_v11 }
 0x28a   : > { %v5633_v18 = vsel %vm5625_vm8, 1.0, %v3938_v11 }
 0x28b   : > { %1998 = vxpose.xlu0.b32.start [1/16] %v3550_v13, 128  ;;  %2612 = vadd.xlane.f32.xlu2 %v3552_v55  ;;  %v1995_v43 = vld [vmem:[#allocation3 + $0x78] sm:$0xff]  ;;  %v1994_v57 = vld [vmem:[#allocation3 + $0x70] sm:$0xff]  ;;  %v1993_v38 = vld [vmem:[#allocation3 + $0x68] sm:$0xff]  ;;  %vm2421_vm4 = vcmask 261120  }
 0x28c   : > { %2608 = vadd.xlane.f32.xlu1 %v3550_v13  ;;  %2030 = vmatpush.msra.mxu0 %v1995_v43  ;;  %v1992_v39 = vld [vmem:[#allocation3 + $0x60] sm:$0xff]  ;;  %v1991_v47 = vld [vmem:[#allocation3 + $0x58] sm:$0xff]  ;;  %v1990_v27 = vld [vmem:[#allocation3 + $0x50] sm:$0xff] }
 0x28d   : > { %3646 = vmatpush.msra.mxu3 %v1995_v43  ;;  %v1989_v48 = vld [vmem:[#allocation3 + $0x48] sm:$0xff]  ;;  %v1988_v8 = vld [vmem:[#allocation3 + $0x40] sm:$0xff]  ;;  %v1987_v41 = vld [vmem:[#allocation3 + $0x38] sm:$0xff] }
 0x28e   : > { %2031 = vmatpush.msra.mxu0 %v1994_v57  ;;  %v1986_v29 = vld [vmem:[#allocation3 + $0x30] sm:$0xff]  ;;  %v1985_v42 = vld [vmem:[#allocation3 + $0x28] sm:$0xff]  ;;  %v1984_v61 = vld [vmem:[#allocation3 + $0x20] sm:$0xff] }
 0x28f   : > { %3647 = vmatpush.msra.mxu3 %v1994_v57  ;;  %v1983_v12 = vld [vmem:[#allocation3 + $0x18] sm:$0xff]  ;;  %v1982_v45 = vld [vmem:[#allocation3 + $0x10] sm:$0xff]  ;;  %v1981_v19 = vld [vmem:[#allocation3 + $0x8] sm:$0xff] }
 0x290   : > { %2032 = vmatpush.msra.mxu0 %v1993_v38  ;;  %v1980_v53 = vld [vmem:[#allocation3] sm:$0xff]  ;;  %v2418_v6 = vld [vmem:[%s6194_s4 + $0x68] sm:$0xff]  ;;  %v2416_v2 = vld [vmem:[%s6194_s4 + $0x58] sm:$0xff] }
 0x291   : > { %3648 = vmatpush.msra.mxu3 %v1993_v38  ;;  %2482 = vmatpush.msra.mxu1 %v2418_v6  ;;  %v2417_v10 = vld [vmem:[%s6194_s4 + $0x60] sm:$0xff]  ;;  %v2415_v33 = vld [vmem:[%s6194_s4 + $0x50] sm:$0xff] }
 0x292   : > { %2033 = vmatpush.msra.mxu0 %v1992_v39 }
 0x293   : > { %1999 = vxpose.xlu0.b32.cont [2/16] %v3551_v36, 128  ;;  %2614 = vadd.xlane.f32.xlu2 %v3553_v16 }
 0x294   : > { %2610 = vadd.xlane.f32.xlu1 %v3551_v36  ;;  %3649 = vmatpush.msra.mxu3 %v1992_v39 }
 0x295   : > { %2034 = vmatpush.msra.mxu0 %v1991_v47  ;;  %2483 = vmatpush.msra.mxu1 %v2417_v10 }
 0x296   : > { %3650 = vmatpush.msra.mxu3 %v1991_v47 }
 0x297   : > { %2035 = vmatpush.msra.mxu0 %v1990_v27  ;;  %2484 = vmatpush.msra.mxu1 %v2416_v2 }
 0x298   : > { %3651 = vmatpush.msra.mxu3 %v1990_v27 }
 0x299   : > { %2036 = vmatpush.msra.mxu0 %v1989_v48  ;;  %2485 = vmatpush.msra.mxu1 %v2415_v33 }
 0x29a   : > { %3652 = vmatpush.msra.mxu3 %v1989_v48 }
 0x29b   : > { %2000 = vxpose.xlu0.b32.cont [3/16] %v3552_v55, 128  ;;  %2618 = vadd.xlane.f32.xlu2 %v3555_v62 }
 0x29c   : > { %2616 = vadd.xlane.f32.xlu1 %v3554_v59  ;;  %2037 = vmatpush.msra.mxu0 %v1988_v8 }
 0x29d   : > { %3653 = vmatpush.msra.mxu3 %v1988_v8 }
 0x29e   : > { %2038 = vmatpush.msra.mxu0 %v1987_v41 }
 0x29f   : > { %3654 = vmatpush.msra.mxu3 %v1987_v41 }
 0x2a0   : > { %2039 = vmatpush.msra.mxu0 %v1986_v29 }
 0x2a1   : > { %3655 = vmatpush.msra.mxu3 %v1986_v29 }
 0x2a2   : > { %2040 = vmatpush.msra.mxu0 %v1985_v42 }
 0x2a3   : > { %2001 = vxpose.xlu0.b32.cont [4/16] %v3553_v16, 128  ;;  %2622 = vadd.xlane.f32.xlu2 %v3557_v23 }
 0x2a4   : > { %2620 = vadd.xlane.f32.xlu1 %v3556_v1  ;;  %3656 = vmatpush.msra.mxu3 %v1985_v42 }
 0x2a5   : > { %2041 = vmatpush.msra.mxu0 %v1984_v61 }
 0x2a6   : > { %3657 = vmatpush.msra.mxu3 %v1984_v61 }
 0x2a7   : > { %2042 = vmatpush.msra.mxu0 %v1983_v12 }
 0x2a8   : > { %3658 = vmatpush.msra.mxu3 %v1983_v12 }
 0x2a9   : > { %2043 = vmatpush.msra.mxu0 %v1982_v45 }
 0x2aa   : > { %3659 = vmatpush.msra.mxu3 %v1982_v45 }
 0x2ab   : > { %2002 = vxpose.xlu0.b32.cont [5/16] %v3554_v59, 128  ;;  %2044 = vmatpush.msra.mxu0 %v1981_v19  ;;  %v5643_v59 = vld [vmem:[%s6195_s5 + $0x2] ss:$0 sm:$0xff] }
 0x2ac   : > { %3660 = vmatpush.msra.mxu3 %v1981_v19 }
 0x2ad   : > { %2045 = vmatpush.msra.mxu0 %v1980_v53 }
 0x2ae   : > { %3661 = vmatpush.msra.mxu3 %v1980_v53 }
 0x2b3   : > { %2003 = vxpose.xlu0.b32.cont [6/16] %v3555_v62, 128 }
 0x2bb   : > { %2004 = vxpose.xlu0.b32.cont [7/16] %v3556_v1, 128 }
 0x2c3   : > { %2005 = vxpose.xlu0.b32.cont [8/16] %v3557_v23, 128 }
 0x2cb   : > { %2006 = vxpose.xlu0.b32.cont [9/16] %v3558_v20, 128 }
 0x2d3   : > { %2007 = vxpose.xlu0.b32.cont [10/16] %v3559_v28, 128 }
 0x2db   : > { %2008 = vxpose.xlu0.b32.cont [11/16] %v3560_v60, 128 }
 0x2e3   : > { %2009 = vxpose.xlu0.b32.cont [12/16] %v3561_v3, 128 }
 0x2eb   : > { %2010 = vxpose.xlu0.b32.cont [13/16] %v3562_v4, 128 }
 0x2f3   : > { %2011 = vxpose.xlu0.b32.cont [14/16] %v3563_v17, 128 }
 0x2fb   : > { %2012 = vxpose.xlu0.b32.cont [15/16] %v3564_v63, 128 }
 0x303   : > { %2013 = vxpose.xlu0.b32.end [16/16] %v5633_v18, 128 }
 0x32f   : > { %v2014_v34 = vpop.trf.xlu0 }
 0x330   : > { %2046 = vmatmul.f32.vlgmr.msra.gmra.mxu0 %v2014_v34 }
 0x337   : > { %v2015_v51 = vpop.trf.xlu0 }
 0x338   : > { %2049 = vmatmul.f32.gmra.mxu0 %v2015_v51 }
 0x33f   : > { %v2016_v5 = vpop.trf.xlu0 }
 0x340   : > { %2052 = vmatmul.f32.gmra.mxu0 %v2016_v5 }
 0x347   : > { %v2017_v37 = vpop.trf.xlu0 }
 0x348   : > { %2055 = vmatmul.f32.gmra.mxu0 %v2017_v37 }
 0x34f   : > { %v2018_v25 = vpop.trf.xlu0 }
 0x350   : > { %2058 = vmatmul.f32.gmra.mxu0 %v2018_v25 }
 0x357   : > { %v2019_v7 = vpop.trf.xlu0 }
 0x358   : > { %2061 = vmatmul.f32.gmra.mxu0 %v2019_v7 }
 0x35f   : > { %v2020_v35 = vpop.trf.xlu0 }
 0x360   : > { %2064 = vmatmul.f32.gmra.mxu0 %v2020_v35 }
 0x367   : > { %v2021_v49 = vpop.trf.xlu0 }
 0x368   : > { %2067 = vmatmul.f32.gmra.mxu0 %v2021_v49 }
 0x36f   : > { %v2022_v22 = vpop.trf.xlu0 }
 0x370   : > { %2070 = vmatmul.f32.gmra.mxu0 %v2022_v22 }
 0x377   : > { %v2023_v58 = vpop.trf.xlu0 }
 0x378   : > { %2073 = vmatmul.f32.gmra.mxu0 %v2023_v58 }
 0x37f   : > { %v2024_v40 = vpop.trf.xlu0 }
 0x380   : > { %2076 = vmatmul.f32.vlgmr.msra.gmra.mxu3 %v2024_v40 }
 0x387   : > { %v2025_v11 = vpop.trf.xlu0 }
 0x388   : > { %2079 = vmatmul.f32.gmra.mxu3 %v2025_v11 }
 0x38f   : > { %v2026_v13 = vpop.trf.xlu0 }
 0x390   : > { %2082 = vmatmul.f32.gmra.mxu3 %v2026_v13 }
 0x397   : > { %v2027_v36 = vpop.trf.xlu0 }
 0x398   : > { %2085 = vmatmul.f32.gmra.mxu3 %v2027_v36 }
 0x39f   : > { %v2028_v55 = vpop.trf.xlu0 }
 0x3a0   : > { %2088 = vmatmul.f32.gmra.mxu3 %v2028_v55 }
 0x3a7   : > { %v2029_v16 = vpop.trf.xlu0 }
 0x3a8   : > { %2091 = vmatmul.f32.gmra.mxu3 %v2029_v16 }
 0x3ad   : > { %v2047_v62 = vpop.f32.mrf.mxu0 }
 0x3ae   : > { %v2048_v1 = vadd.f32 %v5643_v59, %v2047_v62 }
 0x3b0   : > { %v2095_v23 = vsub.f32 0.0, %v2048_v1 }
 0x3b2   : > { %v2111_v20 = vmul.f32 1.442695, %v2095_v23 }
 0x3b4   : > { %3738 = vpow2.f32 %v2111_v20 }
 0x3b5   : > { %v2050_v28 = vpop.f32.mrf.mxu0 }
 0x3b6   : > { %v5656_v60 = vadd.f32 %v5643_v59, %v2050_v28 }
 0x3b8   : > { %v2096_v3 = vsub.f32 0.0, %v5656_v60 }
 0x3ba   : > { %v3739_v4 = vpop.eup %3738  ;;  %v2113_v17 = vmul.f32 1.442695, %v2096_v3 }
 0x3bb   : > { %v2143_v63 = vadd.f32 1.0, %v3739_v4 }
 0x3bc   : > { %3740 = vpow2.f32 %v2113_v17 }
 0x3bd   : > { %3742 = vrcp.f32 %v2143_v63  ;;  %v2053_v18 = vpop.f32.mrf.mxu0  ;;  %v2170_v42 = vand.u32 2147483648, %v2143_v63  ;;  %v2168_v12 = vand.u32 2147483647, %v2143_v63  ;;  %vm2164_vm2 = vweird.f32 %v2143_v63 }
 0x3be   : > { %v5660_v43 = vadd.f32 %v5643_v59, %v2053_v18 }
 0x3bf   : > { %v2171_v5 = vor.u32 1.1754944e-38, %v2170_v42  ;;  %vm2169_vm13 = vcmp.eq.f32.partialorder %v2168_v12, 8.507059e+37 }
 0x3c0   : > { %v2097_v57 = vsub.f32 0.0, %v5660_v43 }
 0x3c2   : > { %v3741_v38 = vpop.eup %3740  ;;  %v2115_v39 = vmul.f32 1.442695, %v2097_v57 }
 0x3c3   : > { %v3743_v47 = vpop.eup %3742  ;;  %v2144_v27 = vadd.f32 1.0, %v3741_v38 }
 0x3c4   : > { %v2160_v48 = vmul.f32 %v3743_v47, %v2143_v63  ;;  %3744 = vpow2.f32 %v2115_v39  ;;  %vm2165_vm1 = vweird.f32 %v3743_v47 }
 0x3c5   : > { %3746 = vrcp.f32 %v2144_v27  ;;  %v2056_v8 = vpop.f32.mrf.mxu0  ;;  %vm2166_vm9 = vmor %vm2164_vm2, %vm2165_vm1  ;;  %v2185_v11 = vand.u32 2147483648, %v2144_v27  ;;  %v2183_v36 = vand.u32 2147483647, %v2144_v27  ;;  %vm2179_vm3 = vweird.f32 %v2144_v27 }
 0x3c6   : > { %v2161_v41 = vsub.f32 1.0, %v2160_v48  ;;  %v5664_v29 = vadd.f32 %v5643_v59, %v2056_v8 }
 0x3c7   : > { %v2186_v2 = vor.u32 1.1754944e-38, %v2185_v11  ;;  %vm2184_vm1 = vcmp.eq.f32.partialorder %v2183_v36, 8.507059e+37 }
 0x3c8   : > { %v2162_v61 = vmul.f32 %v3743_v47, %v2161_v41  ;;  %v2098_v45 = vsub.f32 0.0, %v5664_v29 }
 0x3ca   : > { %v3745_v19 = vpop.eup %3744  ;;  %v2163_v53 = vadd.f32 %v3743_v47, %v2162_v61  ;;  %v2117_v34 = vmul.f32 1.442695, %v2098_v45 }
 0x3cb   : > { %v3747_v51 = vpop.eup %3746  ;;  %v2145_v37 = vadd.f32 1.0, %v3745_v19 }
 0x3cc   : > { %v2167_v25 = vsel %vm2166_vm9, %v3743_v47, %v2163_v53  ;;  %v2175_v7 = vmul.f32 %v3747_v51, %v2144_v27  ;;  %3748 = vpow2.f32 %v2117_v34  ;;  %vm2180_vm15 = vweird.f32 %v3747_v51 }
 0x3cd   : > { %v2172_v35 = vsel %vm2169_vm13, %v2171_v5, %v2167_v25  ;;  %3750 = vrcp.f32 %v2145_v37  ;;  %v2059_v49 = vpop.f32.mrf.mxu0  ;;  %vm2181_vm10 = vmor %vm2179_vm3, %vm2180_vm15  ;;  %v2200_v63 = vand.u32 2147483648, %v2145_v37  ;;  %v2198_v57 = vand.u32 2147483647, %v2145_v37 }
 0x3ce   : > { %v2399_v22 = vmul.f32 %v2172_v35, %v2048_v1  ;;  %v2176_v58 = vsub.f32 1.0, %v2175_v7  ;;  %v5668_v40 = vadd.f32 %v5643_v59, %v2059_v49  ;;  %vm2194_vm9 = vweird.f32 %v2145_v37 }
 0x3cf   : > { %v2201_v8 = vor.u32 1.1754944e-38, %v2200_v63  ;;  %vm2199_vm15 = vcmp.eq.f32.partialorder %v2198_v57, 8.507059e+37 }
 0x3d0   : > { %v2177_v13 = vmul.f32 %v3747_v51, %v2176_v58  ;;  %v2099_v55 = vsub.f32 0.0, %v5668_v40  ;;  %3567 = vmatmul.msk.f32.vlgmr.msra.gmra.mxu1 %vm2421_vm4, %v2399_v22 }
 0x3d2   : > { %v3749_v16 = vpop.eup %3748  ;;  %v2178_v6 = vadd.f32 %v3747_v51, %v2177_v13  ;;  %v2119_v10 = vmul.f32 1.442695, %v2099_v55 }
 0x3d3   : > { %v3751_v62 = vpop.eup %3750  ;;  %v2146_v1 = vadd.f32 1.0, %v3749_v16 }
 0x3d4   : > { %v2182_v33 = vsel %vm2181_vm10, %v3747_v51, %v2178_v6  ;;  %v2190_v23 = vmul.f32 %v3751_v62, %v2145_v37  ;;  %3752 = vpow2.f32 %v2119_v10  ;;  %vm2195_vm2 = vweird.f32 %v3751_v62 }
 0x3d5   : > { %v2187_v20 = vsel %vm2184_vm1, %v2186_v2, %v2182_v33  ;;  %3754 = vrcp.f32 %v2146_v1  ;;  %v2062_v28 = vpop.f32.mrf.mxu0  ;;  %vm2196_vm13 = vmor %vm2194_vm9, %vm2195_vm2  ;;  %v2215_v34 = vand.u32 2147483648, %v2146_v1  ;;  %v2213_v5 = vand.u32 2147483647, %v2146_v1 }
 0x3d6   : > { %v2400_v3 = vmul.f32 %v2187_v20, %v5656_v60  ;;  %v2191_v4 = vsub.f32 1.0, %v2190_v23  ;;  %v5674_v17 = vadd.f32 %v5643_v59, %v2062_v28  ;;  %vm2209_vm10 = vweird.f32 %v2146_v1 }
 0x3d7   : > { %v2216_v22 = vor.u32 1.1754944e-38, %v2215_v34  ;;  %vm2214_vm2 = vcmp.eq.f32.partialorder %v2213_v5, 8.507059e+37 }
 0x3d8   : > { %v2192_v18 = vmul.f32 %v3751_v62, %v2191_v4  ;;  %v2100_v38 = vsub.f32 0.0, %v5674_v17  ;;  %3568 = vmatmul.msk.f32.gmra.mxu1 %vm2421_vm4, %v2400_v3 }
 0x3da   : > { %v3753_v39 = vpop.eup %3752  ;;  %v2193_v47 = vadd.f32 %v3751_v62, %v2192_v18  ;;  %v2121_v27 = vmul.f32 1.442695, %v2100_v38 }
 0x3db   : > { %v3755_v48 = vpop.eup %3754  ;;  %v2147_v60 = vadd.f32 1.0, %v3753_v39 }
 0x3dc   : > { %v2197_v41 = vsel %vm2196_vm13, %v3751_v62, %v2193_v47  ;;  %v2205_v42 = vmul.f32 %v3755_v48, %v2146_v1  ;;  %3756 = vpow2.f32 %v2121_v27  ;;  %vm2210_vm3 = vweird.f32 %v3755_v48 }
 0x3dd   : > { %v2202_v61 = vsel %vm2199_vm15, %v2201_v8, %v2197_v41  ;;  %3758 = vrcp.f32 %v2147_v60  ;;  %v2065_v12 = vpop.f32.mrf.mxu0  ;;  %vm2211_vm1 = vmor %vm2209_vm10, %vm2210_vm3  ;;  %v2230_v10 = vand.u32 2147483648, %v2147_v60  ;;  %v2228_v2 = vand.u32 2147483647, %v2147_v60 }
 0x3de   : > { %v2401_v45 = vmul.f32 %v2202_v61, %v5660_v43  ;;  %v2206_v19 = vsub.f32 1.0, %v2205_v42  ;;  %v5680_v53 = vadd.f32 %v5643_v59, %v2065_v12  ;;  %vm2224_vm13 = vweird.f32 %v2147_v60 }
 0x3df   : > { %v2231_v3 = vor.u32 1.1754944e-38, %v2230_v10  ;;  %vm2229_vm3 = vcmp.eq.f32.partialorder %v2228_v2, 8.507059e+37 }
 0x3e0   : > { %v2207_v51 = vmul.f32 %v3755_v48, %v2206_v19  ;;  %v2101_v37 = vsub.f32 0.0, %v5680_v53  ;;  %3569 = vmatmul.msk.f32.gmra.mxu1 %vm2421_vm4, %v2401_v45 }
 0x3e2   : > { %v3757_v25 = vpop.eup %3756  ;;  %v2208_v7 = vadd.f32 %v3755_v48, %v2207_v51  ;;  %v2123_v35 = vmul.f32 1.442695, %v2101_v37 }
 0x3e3   : > { %v3759_v49 = vpop.eup %3758  ;;  %v2148_v43 = vadd.f32 1.0, %v3757_v25 }
 0x3e4   : > { %v2212_v58 = vsel %vm2211_vm1, %v3755_v48, %v2208_v7  ;;  %v2220_v11 = vmul.f32 %v3759_v49, %v2147_v60  ;;  %3760 = vpow2.f32 %v2123_v35  ;;  %vm2225_vm9 = vweird.f32 %v3759_v49 }
 0x3e5   : > { %v2217_v13 = vsel %vm2214_vm2, %v2216_v22, %v2212_v58  ;;  %3762 = vrcp.f32 %v2148_v43  ;;  %v2068_v36 = vpop.f32.mrf.mxu0  ;;  %vm2226_vm15 = vmor %vm2224_vm13, %vm2225_vm9  ;;  %v2245_v27 = vand.u32 2147483648, %v2148_v43  ;;  %v2243_v8 = vand.u32 2147483647, %v2148_v43 }
 0x3e6   : > { %v2402_v55 = vmul.f32 %v2217_v13, %v5664_v29  ;;  %v2221_v16 = vsub.f32 1.0, %v2220_v11  ;;  %v5686_v6 = vadd.f32 %v5643_v59, %v2068_v36  ;;  %vm2239_vm1 = vweird.f32 %v2148_v43 }
 0x3e7   : > { %v2246_v45 = vor.u32 1.1754944e-38, %v2245_v27  ;;  %vm2244_vm9 = vcmp.eq.f32.partialorder %v2243_v8, 8.507059e+37 }
 0x3e8   : > { %v2222_v62 = vmul.f32 %v3759_v49, %v2221_v16  ;;  %v2102_v1 = vsub.f32 0.0, %v5686_v6  ;;  %3570 = vmatmul.msk.f32.gmra.mxu1 %vm2421_vm4, %v2402_v55 }
 0x3ea   : > { %v3761_v33 = vpop.eup %3760  ;;  %v2223_v23 = vadd.f32 %v3759_v49, %v2222_v62  ;;  %v2125_v20 = vmul.f32 1.442695, %v2102_v1 }
 0x3eb   : > { %v3763_v28 = vpop.eup %3762  ;;  %v2149_v29 = vadd.f32 1.0, %v3761_v33 }
 0x3ec   : > { %v2227_v4 = vsel %vm2226_vm15, %v3759_v49, %v2223_v23  ;;  %v2235_v63 = vmul.f32 %v3763_v28, %v2148_v43  ;;  %3764 = vpow2.f32 %v2125_v20  ;;  %vm2240_vm10 = vweird.f32 %v3763_v28 }
 0x3ed   : > { %v2232_v18 = vsel %vm2229_vm3, %v2231_v3, %v2227_v4  ;;  %3766 = vrcp.f32 %v2149_v29  ;;  %v2071_v57 = vpop.f32.mrf.mxu0  ;;  %vm2241_vm2 = vmor %vm2239_vm1, %vm2240_vm10  ;;  %v2260_v35 = vand.u32 2147483648, %v2149_v29  ;;  %v2258_v22 = vand.u32 2147483647, %v2149_v29 }
 0x3ee   : > { %v2403_v38 = vmul.f32 %v2232_v18, %v5668_v40  ;;  %v2236_v39 = vsub.f32 1.0, %v2235_v63  ;;  %v5692_v47 = vadd.f32 %v5643_v59, %v2071_v57  ;;  %vm2254_vm15 = vweird.f32 %v2149_v29 }
 0x3ef   : > { %v2261_v55 = vor.u32 1.1754944e-38, %v2260_v35  ;;  %vm2259_vm10 = vcmp.eq.f32.partialorder %v2258_v22, 8.507059e+37 }
 0x3f0   : > { %v2237_v48 = vmul.f32 %v3763_v28, %v2236_v39  ;;  %v2103_v60 = vsub.f32 0.0, %v5692_v47  ;;  %3571 = vmatmul.msk.f32.gmra.mxu1 %vm2421_vm4, %v2403_v38 }
 0x3f2   : > { %v3765_v41 = vpop.eup %3764  ;;  %v2238_v42 = vadd.f32 %v3763_v28, %v2237_v48  ;;  %v2127_v61 = vmul.f32 1.442695, %v2103_v60 }
 0x3f3   : > { %v3767_v12 = vpop.eup %3766  ;;  %v2150_v40 = vadd.f32 1.0, %v3765_v41 }
 0x3f4   : > { %v2242_v19 = vsel %vm2241_vm2, %v3763_v28, %v2238_v42  ;;  %v2250_v34 = vmul.f32 %v3767_v12, %v2149_v29  ;;  %3768 = vpow2.f32 %v2127_v61  ;;  %vm2255_vm13 = vweird.f32 %v3767_v12 }
 0x3f5   : > { %v2247_v51 = vsel %vm2244_vm9, %v2246_v45, %v2242_v19  ;;  %3770 = vrcp.f32 %v2150_v40  ;;  %v2074_v5 = vpop.f32.mrf.mxu0  ;;  %vm2256_vm3 = vmor %vm2254_vm15, %vm2255_vm13  ;;  %v2275_v33 = vand.u32 2147483648, %v2150_v40  ;;  %v2273_v20 = vand.u32 2147483647, %v2150_v40 }
 0x3f6   : > { %v2404_v37 = vmul.f32 %v2247_v51, %v5674_v17  ;;  %v2251_v25 = vsub.f32 1.0, %v2250_v34  ;;  %v5698_v7 = vadd.f32 %v5643_v59, %v2074_v5  ;;  %vm2269_vm2 = vweird.f32 %v2150_v40 }
 0x3f7   : > { %v2276_v4 = vor.u32 1.1754944e-38, %v2275_v33  ;;  %vm2274_vm13 = vcmp.eq.f32.partialorder %v2273_v20, 8.507059e+37 }
 0x3f8   : > { %v2252_v49 = vmul.f32 %v3767_v12, %v2251_v25  ;;  %v2104_v43 = vsub.f32 0.0, %v5698_v7  ;;  %3572 = vmatmul.msk.f32.gmra.mxu1 %vm2421_vm4, %v2404_v37 }
 0x3fa   : > { %v3769_v58 = vpop.eup %3768  ;;  %v2253_v11 = vadd.f32 %v3767_v12, %v2252_v49  ;;  %v2129_v13 = vmul.f32 1.442695, %v2104_v43 }
 0x3fb   : > { %v3771_v36 = vpop.eup %3770  ;;  %v2151_v17 = vadd.f32 1.0, %v3769_v58 }
 0x3fc   : > { %v2257_v16 = vsel %vm2256_vm3, %v3767_v12, %v2253_v11  ;;  %v2265_v10 = vmul.f32 %v3771_v36, %v2150_v40  ;;  %3772 = vpow2.f32 %v2129_v13  ;;  %vm2270_vm1 = vweird.f32 %v3771_v36 }
 0x3fd   : > { %v2262_v62 = vsel %vm2259_vm10, %v2261_v55, %v2257_v16  ;;  %3774 = vrcp.f32 %v2151_v17  ;;  %vm2271_vm9 = vmor %vm2269_vm2, %vm2270_vm1  ;;  %v2290_v60 = vand.u32 2147483648, %v2151_v17  ;;  %v2288_v42 = vand.u32 2147483647, %v2151_v17 }
 0x3fe   : > { %v2405_v2 = vmul.f32 %v2262_v62, %v5680_v53  ;;  %v2266_v1 = vsub.f32 1.0, %v2265_v10  ;;  %vm2284_vm3 = vweird.f32 %v2151_v17 }
 0x3ff   : > { %v2291_v40 = vor.u32 1.1754944e-38, %v2290_v60  ;;  %vm2289_vm1 = vcmp.eq.f32.partialorder %v2288_v42, 8.507059e+37 }
 0x400   : > { %v2267_v23 = vmul.f32 %v3771_v36, %v2266_v1  ;;  %3573 = vmatmul.msk.f32.gmra.mxu1 %vm2421_vm4, %v2405_v2 }
 0x402   : > { %v3773_v28 = vpop.eup %3772  ;;  %v2268_v3 = vadd.f32 %v3771_v36, %v2267_v23 }
 0x403   : > { %v3775_v29 = vpop.eup %3774  ;;  %v2152_v63 = vadd.f32 1.0, %v3773_v28  ;;  %v2077_v18 = vpop.f32.mrf.mxu3 }
 0x404   : > { %v2272_v57 = vsel %vm2271_vm9, %v3771_v36, %v2268_v3  ;;  %v2280_v38 = vmul.f32 %v3775_v29, %v2151_v17  ;;  %v5705_v53 = vadd.f32 %v5643_v59, %v2077_v18  ;;  %vm2285_vm15 = vweird.f32 %v3775_v29 }
 0x405   : > { %v2277_v39 = vsel %vm2274_vm13, %v2276_v4, %v2272_v57  ;;  %3776 = vrcp.f32 %v2152_v63  ;;  %vm2286_vm10 = vmor %vm2284_vm3, %vm2285_vm15  ;;  %v2305_v49 = vand.u32 2147483648, %v2152_v63  ;;  %v2303_v58 = vand.u32 2147483647, %v2152_v63 }
 0x406   : > { %v2406_v27 = vmul.f32 %v2277_v39, %v5686_v6  ;;  %v2281_v48 = vsub.f32 1.0, %v2280_v38  ;;  %v2105_v8 = vsub.f32 0.0, %v5705_v53  ;;  %vm2299_vm9 = vweird.f32 %v2152_v63 }
 0x407   : > { %v2306_v55 = vor.u32 1.1754944e-38, %v2305_v49  ;;  %vm2304_vm15 = vcmp.eq.f32.partialorder %v2303_v58, 8.507059e+37 }
 0x408   : > { %v2282_v41 = vmul.f32 %v3775_v29, %v2281_v48  ;;  %v2131_v61 = vmul.f32 1.442695, %v2105_v8  ;;  %3574 = vmatmul.msk.f32.gmra.mxu1 %vm2421_vm4, %v2406_v27 }
 0x40a   : > { %v2283_v12 = vadd.f32 %v3775_v29, %v2282_v41  ;;  %3778 = vpow2.f32 %v2131_v61 }
 0x40b   : > { %v3777_v45 = vpop.eup %3776  ;;  %v2080_v19 = vpop.f32.mrf.mxu3 }
 0x40c   : > { %v2287_v34 = vsel %vm2286_vm10, %v3775_v29, %v2283_v12  ;;  %v2295_v6 = vmul.f32 %v3777_v45, %v2152_v63  ;;  %v5711_v51 = vadd.f32 %v5643_v59, %v2080_v19  ;;  %vm2300_vm2 = vweird.f32 %v3777_v45 }
 0x40d   : > { %v2292_v5 = vsel %vm2289_vm1, %v2291_v40, %v2287_v34  ;;  %vm2301_vm13 = vmor %vm2299_vm9, %vm2300_vm2 }
 0x40e   : > { %v2407_v37 = vmul.f32 %v2292_v5, %v5692_v47  ;;  %v2296_v25 = vsub.f32 1.0, %v2295_v6  ;;  %v2106_v35 = vsub.f32 0.0, %v5711_v51 }
 0x410   : > { %v3779_v22 = vpop.eup %3778  ;;  %v2297_v43 = vmul.f32 %v3777_v45, %v2296_v25  ;;  %v2133_v11 = vmul.f32 1.442695, %v2106_v35  ;;  %3575 = vmatmul.msk.f32.gmra.mxu1 %vm2421_vm4, %v2407_v37 }
 0x411   : > { %v2153_v13 = vadd.f32 1.0, %v3779_v22 }
 0x412   : > { %v2298_v36 = vadd.f32 %v3777_v45, %v2297_v43  ;;  %3780 = vpow2.f32 %v2133_v11 }
 0x413   : > { %3782 = vrcp.f32 %v2153_v13  ;;  %v2083_v17 = vpop.f32.mrf.mxu3  ;;  %v2320_v63 = vand.u32 2147483648, %v2153_v13  ;;  %vm2314_vm10 = vweird.f32 %v2153_v13 }
 0x414   : > { %v2302_v47 = vsel %vm2301_vm13, %v3777_v45, %v2298_v36  ;;  %v5717_v16 = vadd.f32 %v5643_v59, %v2083_v17 }
 0x415   : > { %v2307_v10 = vsel %vm2304_vm15, %v2306_v55, %v2302_v47  ;;  %v2321_v8 = vor.u32 1.1754944e-38, %v2320_v63 }
 0x416   : > { %v2408_v62 = vmul.f32 %v2307_v10, %v5698_v7  ;;  %v2107_v2 = vsub.f32 0.0, %v5717_v16  ;;  %v2318_v7 = vand.u32 2147483647, %v2153_v13 }
 0x418   : > { %v3781_v1 = vpop.eup %3780  ;;  %v2135_v33 = vmul.f32 1.442695, %v2107_v2  ;;  %3576 = vmatmul.msk.f32.gmra.mxu1 %vm2421_vm4, %v2408_v62  ;;  %vm2319_vm2 = vcmp.eq.f32.partialorder %v2318_v7, 8.507059e+37 }
 0x419   : > { %v3783_v23 = vpop.eup %3782  ;;  %v2154_v20 = vadd.f32 1.0, %v3781_v1 }
 0x41a   : > { %v2310_v28 = vmul.f32 %v3783_v23, %v2153_v13  ;;  %3784 = vpow2.f32 %v2135_v33  ;;  %vm2315_vm3 = vweird.f32 %v3783_v23 }
 0x41b   : > { %3786 = vrcp.f32 %v2154_v20  ;;  %v2086_v3 = vpop.f32.mrf.mxu3  ;;  %vm2316_vm1 = vmor %vm2314_vm10, %vm2315_vm3  ;;  %v2335_v34 = vand.u32 2147483648, %v2154_v20  ;;  %v2333_v5 = vand.u32 2147483647, %v2154_v20  ;;  %vm2329_vm13 = vweird.f32 %v2154_v20 }
 0x41c   : > { %v2311_v29 = vsub.f32 1.0, %v2310_v28  ;;  %v5723_v4 = vadd.f32 %v5643_v59, %v2086_v3 }
 0x41d   : > { %v2336_v43 = vor.u32 1.1754944e-38, %v2335_v34  ;;  %vm2334_vm3 = vcmp.eq.f32.partialorder %v2333_v5, 8.507059e+37 }
 0x41e   : > { %v2312_v18 = vmul.f32 %v3783_v23, %v2311_v29  ;;  %v2108_v57 = vsub.f32 0.0, %v5723_v4 }
 0x420   : > { %v3785_v38 = vpop.eup %3784  ;;  %v2313_v39 = vadd.f32 %v3783_v23, %v2312_v18  ;;  %v2137_v27 = vmul.f32 1.442695, %v2108_v57 }
 0x421   : > { %v3787_v48 = vpop.eup %3786  ;;  %v2155_v60 = vadd.f32 1.0, %v3785_v38 }
 0x422   : > { %v2317_v41 = vsel %vm2316_vm1, %v3783_v23, %v2313_v39  ;;  %v2325_v42 = vmul.f32 %v3787_v48, %v2154_v20  ;;  %3788 = vpow2.f32 %v2137_v27  ;;  %vm2330_vm9 = vweird.f32 %v3787_v48 }
 0x423   : > { %v2322_v61 = vsel %vm2319_vm2, %v2321_v8, %v2317_v41  ;;  %3790 = vrcp.f32 %v2155_v60  ;;  %v2089_v12 = vpop.f32.mrf.mxu3  ;;  %vm2331_vm15 = vmor %vm2329_vm13, %vm2330_vm9  ;;  %v2350_v10 = vand.u32 2147483648, %v2155_v60  ;;  %v2348_v2 = vand.u32 2147483647, %v2155_v60 }
 0x424   : > { %v2409_v45 = vmul.f32 %v2322_v61, %v5705_v53  ;;  %v2326_v40 = vsub.f32 1.0, %v2325_v42  ;;  %v5728_v19 = vadd.f32 %v5643_v59, %v2089_v12  ;;  %vm2344_vm1 = vweird.f32 %v2155_v60 }
 0x425   : > { %v2351_v3 = vor.u32 1.1754944e-38, %v2350_v10  ;;  %vm2349_vm9 = vcmp.eq.f32.partialorder %v2348_v2, 8.507059e+37 }
 0x426   : > { %v2327_v6 = vmul.f32 %v3787_v48, %v2326_v40  ;;  %v2109_v37 = vsub.f32 0.0, %v5728_v19  ;;  %3577 = vmatmul.msk.f32.gmra.mxu1 %vm2421_vm4, %v2409_v45 }
 0x428   : > { %v3789_v25 = vpop.eup %3788  ;;  %v2328_v35 = vadd.f32 %v3787_v48, %v2327_v6  ;;  %v2139_v49 = vmul.f32 1.442695, %v2109_v37 }
 0x429   : > { %v3791_v22 = vpop.eup %3790  ;;  %v2156_v53 = vadd.f32 1.0, %v3789_v25 }
 0x42a   : > { %v2332_v58 = vsel %vm2331_vm15, %v3787_v48, %v2328_v35  ;;  %v2340_v11 = vmul.f32 %v3791_v22, %v2155_v60  ;;  %3792 = vpow2.f32 %v2139_v49  ;;  %vm2345_vm10 = vweird.f32 %v3791_v22 }
 0x42b   : > { %v2337_v13 = vsel %vm2334_vm3, %v2336_v43, %v2332_v58  ;;  %3794 = vrcp.f32 %v2156_v53  ;;  %v2092_v36 = vpop.f32.mrf.mxu3  ;;  %vm2346_vm2 = vmor %vm2344_vm1, %vm2345_vm10  ;;  %v2365_v57 = vand.u32 2147483648, %v2156_v53  ;;  %v2363_v39 = vand.u32 2147483647, %v2156_v53 }
 0x42c   : > { %v2410_v55 = vmul.f32 %v2337_v13, %v5711_v51  ;;  %v2341_v17 = vsub.f32 1.0, %v2340_v11  ;;  %v5734_v47 = vadd.f32 %v5643_v59, %v2092_v36  ;;  %vm2359_vm15 = vweird.f32 %v2156_v53 }
 0x42d   : > { %v2366_v60 = vor.u32 1.1754944e-38, %v2365_v57  ;;  %vm2364_vm10 = vcmp.eq.f32.partialorder %v2363_v39, 8.507059e+37  ;;  %v3939_v39 = vmov 1.0  }
 0x42e   : > { %v2342_v62 = vmul.f32 %v3791_v22, %v2341_v17  ;;  %v2110_v1 = vsub.f32 0.0, %v5734_v47  ;;  %3578 = vmatmul.msk.f32.gmra.mxu1 %vm2421_vm4, %v2410_v55  ;;  %3591 = vmatpush.xpose.msk.msrb.mxu3 %vm5557_vm0, %v3939_v39 }
 0x430   : > { %v3793_v33 = vpop.eup %3792  ;;  %v2343_v23 = vadd.f32 %v3791_v22, %v2342_v62  ;;  %v2141_v20 = vmul.f32 1.442695, %v2110_v1 }
 0x431   : > { %v3795_v28 = vpop.eup %3794  ;;  %v2157_v51 = vadd.f32 1.0, %v3793_v33 }
 0x432   : > { %v2347_v29 = vsel %vm2346_vm2, %v3791_v22, %v2343_v23  ;;  %v2355_v59 = vmul.f32 %v3795_v28, %v2156_v53  ;;  %3796 = vpow2.f32 %v2141_v20  ;;  %vm2360_vm13 = vweird.f32 %v3795_v28  ;;  %3592 = vmatpush.xpose.msk.msrb.mxu3 %vm5545_vm11, %v3939_v39 }
 0x433   : > { %v2352_v63 = vsel %vm2349_vm9, %v2351_v3, %v2347_v29  ;;  %3798 = vrcp.f32 %v2157_v51  ;;  %vm2361_vm3 = vmor %vm2359_vm15, %vm2360_vm13  ;;  %v2380_v40 = vand.u32 2147483648, %v2157_v51  ;;  %v2378_v6 = vand.u32 2147483647, %v2157_v51 }
 0x434   : > { %v2411_v18 = vmul.f32 %v2352_v63, %v5717_v16  ;;  %v2356_v7 = vsub.f32 1.0, %v2355_v59  ;;  %vm2374_vm2 = vweird.f32 %v2157_v51 }
 0x435   : > { %v2381_v25 = vor.u32 1.1754944e-38, %v2380_v40  ;;  %vm2379_vm13 = vcmp.eq.f32.partialorder %v2378_v6, 8.507059e+37 }
 0x436   : > { %v2357_v38 = vmul.f32 %v3795_v28, %v2356_v7  ;;  %3579 = vmatmul.msk.f32.gmra.mxu1 %vm2421_vm4, %v2411_v18 }
 0x438   : > { %v3797_v27 = vpop.eup %3796  ;;  %v2358_v48 = vadd.f32 %v3795_v28, %v2357_v38 }
 0x439   : > { %v3799_v8 = vpop.eup %3798  ;;  %v2158_v41 = vadd.f32 1.0, %v3797_v27 }
 0x43a   : > { %v2362_v42 = vsel %vm2361_vm3, %v3795_v28, %v2358_v48  ;;  %v2370_v61 = vmul.f32 %v3799_v8, %v2157_v51  ;;  %vm2375_vm1 = vweird.f32 %v3799_v8 }
 0x43b   : > { %v2367_v12 = vsel %vm2364_vm10, %v2366_v60, %v2362_v42  ;;  %3800 = vrcp.f32 %v2158_v41  ;;  %vm2376_vm9 = vmor %vm2374_vm2, %vm2375_vm1  ;;  %v2393_v11 = vand.u32 2147483647, %v2158_v41  ;;  %vm2389_vm3 = vweird.f32 %v2158_v41 }
 0x43c   : > { %v2412_v16 = vmul.f32 %v2367_v12, %v5723_v4  ;;  %v2371_v45 = vsub.f32 1.0, %v2370_v61  ;;  %v2395_v4 = vand.u32 2147483648, %v2158_v41  ;;  %vm6479_vm2 = vnez %v6454_v31 }
 0x43d   : > { %vm2394_vm1 = vcmp.eq.f32.partialorder %v2393_v11, 8.507059e+37  ;;  %3593 = vmatpush.xpose.msk.msrb.mxu3 %vm6479_vm2, %v3939_v39 }
 0x43e   : > { %v2372_v34 = vmul.f32 %v3799_v8, %v2371_v45  ;;  %3580 = vmatmul.msk.f32.gmra.mxu1 %vm2421_vm4, %v2412_v16  ;;  %v2396_v36 = vor.u32 1.1754944e-38, %v2395_v4  ;;  %v2535_v4 = vld [vmem:[#allocation4] sm:$0xff] }
 0x440   : > { %v2373_v5 = vadd.f32 %v3799_v8, %v2372_v34 }
 0x441   : > { %v3801_v37 = vpop.eup %3800 }
 0x442   : > { %v2377_v35 = vsel %vm2376_vm9, %v3799_v8, %v2373_v5  ;;  %v2385_v49 = vmul.f32 %v3801_v37, %v2158_v41  ;;  %vm2390_vm15 = vweird.f32 %v3801_v37  ;;  %vm6480_vm9 = vnez %v6452_v9 }
 0x443   : > { %v2382_v22 = vsel %vm2379_vm13, %v2381_v25, %v2377_v35  ;;  %vm2391_vm10 = vmor %vm2389_vm3, %vm2390_vm15  ;;  %3594 = vmatpush.xpose.msk.msrb.mxu3 %vm6480_vm9, %v3939_v39  ;;  %vm6481_vm13 = vnez %v6450_v50  ;;  %vm6482_vm15 = vnez %v6448_v44  ;;  %vm6483_vm3 = vnez %v6446_v15  ;;  %v2613_v25 = vpop.xlane.xlu2 %2612  ;;  %v2602_v35 = vld [vmem:[#allocation5 + $0x10] sm:$0xff] }
 0x444   : > { %v2413_v43 = vmul.f32 %v2382_v22, %v5728_v19  ;;  %v2386_v53 = vsub.f32 1.0, %v2385_v49  ;;  %v2609_v49 = vpop.xlane.xlu1 %2608  ;;  %v2600_v22 = vld [vmem:[#allocation5] sm:$0xff] }
 0x446   : > { %v2387_v58 = vmul.f32 %v3801_v37, %v2386_v53  ;;  %3581 = vmatmul.msk.f32.gmra.mxu1 %vm2421_vm4, %v2413_v43  ;;  %v2626_v43 = vadd.f32 %v2613_v25, %v2602_v35  ;;  %v2624_v53 = vadd.f32 %v2609_v49, %v2600_v22  ;;  %v2542_v25 = vld [vmem:[#allocation4 + $0x38] sm:$0xff] }
 0x447   : > { %3595 = vmatpush.xpose.msk.msrb.mxu3 %vm6481_vm13, %v3939_v39 }
 0x448   : > { %v2388_v13 = vadd.f32 %v3801_v37, %v2387_v58 }
 0x44a   : > { %v2392_v55 = vsel %vm2391_vm10, %v3801_v37, %v2388_v13  ;;  %vm6484_vm10 = vnez %v6444_v30 }
 0x44b   : > { %v2397_v17 = vsel %vm2394_vm1, %v2396_v36, %v2392_v55  ;;  %3596 = vmatpush.xpose.msk.msrb.mxu3 %vm6482_vm15, %v3939_v39  ;;  %vm2632_vm1 = vcmask 7168   ;;  %v2615_v13 = vpop.xlane.xlu2 %2614  ;;  %v2603_v36 = vld [vmem:[#allocation5 + $0x18] sm:$0xff] }
 0x44c   : > { %v2414_v10 = vmul.f32 %v2397_v17, %v5734_v47  ;;  %v3737_v47 = vld [vmem:[%s6195_s5 + $0x3] ss:$0 sm:$0xff]  ;;  %2635 = vst.msk [vmem:[#allocation5 + $0x10] sm:$0xff] %vm2632_vm1, %v2626_v43  ;;  %v2611_v55 = vpop.xlane.xlu1 %2610  ;;  %v2601_v17 = vld [vmem:[#allocation5 + $0x8] sm:$0xff] }
 0x44d   : > { %v2487_v62 = vpop.f32.mrf.mxu1  ;;  %2633 = vst.msk [vmem:[#allocation5] sm:$0xff] %vm2632_vm1, %v2624_v53 }
 0x44e   : > { %3582 = vmatmul.msk.f32.gmra.mxu1 %vm2421_vm4, %v2414_v10  ;;  %v2488_v37 = vadd.f32 %v3737_v47, %v2487_v62  ;;  %v2627_v10 = vadd.f32 %v2615_v13, %v2603_v36  ;;  %v2625_v62 = vadd.f32 %v2611_v55, %v2601_v17 }
 0x44f   : > { %3597 = vmatpush.xpose.msk.msrb.mxu3 %vm6483_vm3, %v3939_v39 }
 0x450   : > { %2636 = vst.msk [vmem:[#allocation5 + $0x18] sm:$0xff] %vm2632_vm1, %v2627_v10 }
 0x451   : > { %2634 = vst.msk [vmem:[#allocation5 + $0x8] sm:$0xff] %vm2632_vm1, %v2625_v62 }
 0x453   : > { %3598 = vmatpush.xpose.msk.msrb.mxu3 %vm6484_vm10, %v3939_v39 }
 0x455   : > { %v2490_v19 = vpop.f32.mrf.mxu1 }
 0x456   : > { %v2491_v5 = vadd.f32 %v3737_v47, %v2490_v19  ;;  %2658 = vmatmul.f32.vlgmr.msrb.gmra.mxu3 %v3939_v39  ;;  %v2536_v19 = vld [vmem:[#allocation4 + $0x8] sm:$0xff] }
 0x45d   : > { %v2493_v2 = vpop.f32.mrf.mxu1 }
 0x45e   : > { %v2494_v6 = vadd.f32 %v3737_v47, %v2493_v2 }
 0x465   : > { %v2496_v1 = vpop.f32.mrf.mxu1 }
 0x466   : > { %v2497_v34 = vadd.f32 %v3737_v47, %v2496_v1 }
 0x46d   : > { %v2499_v33 = vpop.f32.mrf.mxu1 }
 0x46e   : > { %v2500_v40 = vadd.f32 %v3737_v47, %v2499_v33  ;;  %v2619_v33 = vpop.xlane.xlu2 %2618 }
 0x475   : > { %v2502_v23 = vpop.f32.mrf.mxu1 }
 0x476   : > { %v2503_v45 = vadd.f32 %v3737_v47, %v2502_v23  ;;  %v2605_v23 = vld [vmem:[#allocation5 + $0x28] sm:$0xff] }
 0x47d   : > { %v2505_v20 = vpop.f32.mrf.mxu1 }
 0x47e   : > { %v2506_v16 = vadd.f32 %v3737_v47, %v2505_v20  ;;  %v2617_v20 = vpop.xlane.xlu1 %2616 }
 0x485   : > { %v2508_v28 = vpop.f32.mrf.mxu1 }
 0x486   : > { %v2509_v12 = vadd.f32 %v3737_v47, %v2508_v28  ;;  %v2604_v28 = vld [vmem:[#allocation5 + $0x20] sm:$0xff] }
 0x48d   : > { %v2511_v3 = vpop.f32.mrf.mxu1 }
 0x48e   : > { %v2512_v61 = vadd.f32 %v3737_v47, %v2511_v3  ;;  %v2629_v3 = vadd.f32 %v2619_v33, %v2605_v23 }
 0x490   : > { %2638 = vst.msk [vmem:[#allocation5 + $0x28] sm:$0xff] %vm2632_vm1, %v2629_v3 }
 0x495   : > { %v2514_v51 = vpop.f32.mrf.mxu1 }
 0x496   : > { %v2515_v42 = vadd.f32 %v3737_v47, %v2514_v51  ;;  %v2628_v51 = vadd.f32 %v2617_v20, %v2604_v28 }
 0x498   : > { %2637 = vst.msk [vmem:[#allocation5 + $0x20] sm:$0xff] %vm2632_vm1, %v2628_v51 }
 0x4a3   : > { %v2517_v29 = vpop.f32.mrf.mxu1 }
 0x4a4   : > { %v2518_v41 = vadd.f32 %v3737_v47, %v2517_v29  ;;  %v2537_v29 = vld [vmem:[#allocation4 + $0x10] sm:$0xff] }
 0x4ab   : > { %v2520_v59 = vpop.f32.mrf.mxu1 }
 0x4ac   : > { %v2521_v60 = vadd.f32 %v3737_v47, %v2520_v59 }
 0x4b3   : > { %v2523_v63 = vpop.f32.mrf.mxu1 }
 0x4b4   : > { %v2524_v8 = vadd.f32 %v3737_v47, %v2523_v63 }
 0x4bb   : > { %v2526_v18 = vpop.f32.mrf.mxu1 }
 0x4bc   : > { %v2527_v48 = vadd.f32 %v3737_v47, %v2526_v18  ;;  %v2623_v18 = vpop.xlane.xlu2 %2622 }
 0x4c3   : > { %v2529_v7 = vpop.f32.mrf.mxu1 }
 0x4c4   : > { %v2530_v27 = vadd.f32 %v3737_v47, %v2529_v7  ;;  %v2607_v7 = vld [vmem:[#allocation5 + $0x38] sm:$0xff] }
 0x4cb   : > { %v2532_v57 = vpop.f32.mrf.mxu1 }
 0x4cc   : > { %v2533_v38 = vadd.f32 %v3737_v47, %v2532_v57  ;;  %v2621_v47 = vpop.xlane.xlu1 %2620  ;;  %v2606_v57 = vld [vmem:[#allocation5 + $0x30] sm:$0xff] }
 0x4ce   : > { %2543 = vmatpush.msra.mxu2 %v2533_v38  ;;  %v2631_v38 = vadd.f32 %v2623_v18, %v2607_v7 }
 0x4d0   : > { %2544 = vmatpush.msra.mxu2 %v2530_v27  ;;  %v2538_v27 = vld [vmem:[#allocation4 + $0x18] sm:$0xff]  ;;  %2640 = vst.msk [vmem:[#allocation5 + $0x38] sm:$0xff] %vm2632_vm1, %v2631_v38 }
 0x4d2   : > { %2545 = vmatpush.msra.mxu2 %v2527_v48 }
 0x4d4   : > { %2546 = vmatpush.msra.mxu2 %v2524_v8 }
 0x4d6   : > { %2547 = vmatpush.msra.mxu2 %v2521_v60  ;;  %v2641_v60 = vld [vmem:[#allocation6 + $0x2] sm:$0x1] }
 0x4d8   : > { %2548 = vmatpush.msra.mxu2 %v2518_v41 }
 0x4d9   : > { %v2659_v41 = vpop.f32.mrf.mxu3 }
 0x4da   : > { %2549 = vmatpush.msra.mxu2 %v2515_v42  ;;  %v2662_v42 = vadd.f32 %v2659_v41, %v2641_v60 }
 0x4dc   : > { %2550 = vmatpush.msra.mxu2 %v2512_v61  ;;  %v2539_v61 = vld [vmem:[#allocation4 + $0x20] sm:$0xff] }
 0x4de   : > { %2551 = vmatpush.msra.mxu2 %v2509_v12 }
 0x4e0   : > { %2552 = vmatpush.msra.mxu2 %v2506_v16 }
 0x4e2   : > { %2553 = vmatpush.msra.mxu2 %v2503_v45  ;;  %v2540_v45 = vld [vmem:[#allocation4 + $0x28] sm:$0xff] }
 0x4e4   : > { %2554 = vmatpush.msra.mxu2 %v2500_v40 }
 0x4e6   : > { %2555 = vmatpush.msra.mxu2 %v2497_v34 }
 0x4e8   : > { %2556 = vmatpush.msra.mxu2 %v2494_v6  ;;  %v2541_v6 = vld [vmem:[#allocation4 + $0x30] sm:$0xff] }
 0x4ea   : > { %2557 = vmatpush.msra.mxu2 %v2491_v5 }
 0x4ec   : > { %2558 = vmatpush.msra.mxu2 %v2488_v37 }
 0x4ed   : > { %3583 = vmatmul.msk.f32.vlgmr.msra.gmra.mxu2 %vm6484_vm10, %v3939_v39 }
 0x4f5   : > { %3584 = vmatmul.msk.f32.gmra.mxu2 %vm6483_vm3, %v3939_v39 }
 0x4fd   : > { %3585 = vmatmul.msk.f32.gmra.mxu2 %vm6482_vm15, %v3939_v39 }
 0x505   : > { %3586 = vmatmul.msk.f32.gmra.mxu2 %vm6481_vm13, %v3939_v39 }
 0x50d   : > { %3587 = vmatmul.msk.f32.gmra.mxu2 %vm6480_vm9, %v3939_v39 }
 0x515   : > { %3588 = vmatmul.msk.f32.gmra.mxu2 %vm6479_vm2, %v3939_v39  ;;  %vm2663_vm2 = vcmask 516096  }
 0x516   : > { %2664 = vst.msk [vmem:[#allocation6 + $0x2] sm:$0x1] %vm2663_vm2, %v2662_v42 }
 0x51d   : > { %3589 = vmatmul.msk.f32.gmra.mxu2 %vm5545_vm11, %v3939_v39 }
 0x525   : > { %3590 = vmatmul.msk.f32.gmra.mxu2 %vm5557_vm0, %v3939_v39  ;;  %v2630_v39 = vadd.f32 %v2621_v47, %v2606_v57 }
 0x527   : > { %2639 = vst.msk [vmem:[#allocation5 + $0x30] sm:$0xff] %vm2632_vm1, %v2630_v39 }
 0x570   : > { %v2560_v58 = vpop.f32.mrf.mxu2 }
 0x571   : > { %v2584_v11 = vadd.f32 %v2560_v58, %v2535_v4 }
 0x573   : > { %2592 = vst.msk [vmem:[#allocation4] sm:$0xff] %vm2421_vm4, %v2584_v11 }
 0x578   : > { %v2563_v2 = vpop.f32.mrf.mxu2 }
 0x579   : > { %v2585_v1 = vadd.f32 %v2563_v2, %v2536_v19 }
 0x57b   : > { %2593 = vst.msk [vmem:[#allocation4 + $0x8] sm:$0xff] %vm2421_vm4, %v2585_v1 }
 0x580   : > { %v2566_v59 = vpop.f32.mrf.mxu2 }
 0x581   : > { %v2586_v63 = vadd.f32 %v2566_v59, %v2537_v29 }
 0x583   : > { %2594 = vst.msk [vmem:[#allocation4 + $0x10] sm:$0xff] %vm2421_vm4, %v2586_v63 }
 0x588   : > { %v2569_v48 = vpop.f32.mrf.mxu2 }
 0x589   : > { %v2587_v8 = vadd.f32 %v2569_v48, %v2538_v27 }
 0x58b   : > { %2595 = vst.msk [vmem:[#allocation4 + $0x18] sm:$0xff] %vm2421_vm4, %v2587_v8 }
 0x590   : > { %v2572_v12 = vpop.f32.mrf.mxu2 }
 0x591   : > { %v2588_v16 = vadd.f32 %v2572_v12, %v2539_v61 }
 0x593   : > { %2596 = vst.msk [vmem:[#allocation4 + $0x20] sm:$0xff] %vm2421_vm4, %v2588_v16 }
 0x598   : > { %v2575_v40 = vpop.f32.mrf.mxu2 }
 0x599   : > { %v2589_v34 = vadd.f32 %v2575_v40, %v2540_v45 }
 0x59b   : > { %2597 = vst.msk [vmem:[#allocation4 + $0x28] sm:$0xff] %vm2421_vm4, %v2589_v34 }
 0x5a0   : > { %v2578_v5 = vpop.f32.mrf.mxu2 }
 0x5a1   : > { %v2590_v37 = vadd.f32 %v2578_v5, %v2541_v6 }
 0x5a3   : > { %2598 = vst.msk [vmem:[#allocation4 + $0x30] sm:$0xff] %vm2421_vm4, %v2590_v37 }
 0x5a8   : > { %v2581_v35 = vpop.f32.mrf.mxu2 }
 0x5a9   : > { %v2591_v49 = vadd.f32 %v2581_v35, %v2542_v25 }
 0x5ab   : > { %2599 = vst.msk [vmem:[#allocation4 + $0x38] sm:$0xff] %vm2421_vm4, %v2591_v49 }
 0x5ac PF: > { %p2665_p10 = scmp.eq.s32.totalorder %s3912_s27, 1 }
 0x5ae   : > { %p2666_p11 = pnand %p2665_p10, %p310_p6 }
 0x5af   : > { %s3941_s25 = smov (!%p2666_p11), 32  }
 0x5b0   : > { %2669 = sbr.rel (%p2666_p11) target bundleno = 2299 (0x8fb), region = 60 }
 0x5b5   : > { %v2670_v22 = vld [vmem:[#allocation5] sm:$0xff]  ;;  %v2671_v43 = vld [vmem:[#allocation5 + $0x8] sm:$0xff]  ;;  %v2672_v53 = vld [vmem:[#allocation5 + $0x10] sm:$0xff]  ;;  %v3940_v4 = vmov 0  }
 0x5b6   : > { %3802 = vset.pattern.permute.xlu0 %v3940_v4  ;;  %v2678_v58 = vmax.f32 %v2670_v22, 1.0  ;;  %v5802_v11 = vmax.f32 %v2671_v43, 1.0  ;;  %3803 = vset.pattern.permute.xlu1 %v3940_v4  ;;  %v2680_v13 = vmax.f32 %v2672_v53, 1.0  ;;  %v2674_v36 = vld [vmem:[#allocation5 + $0x20] sm:$0xff]  ;;  %v2673_v55 = vld [vmem:[#allocation5 + $0x18] sm:$0xff]  ;;  %v2675_v10 = vld [vmem:[#allocation5 + $0x28] sm:$0xff] }
 0x5b7   : > { %3804 = vset.pattern.permute.xlu2 %v3940_v4  ;;  %v5804_v17 = vmax.f32 %v2674_v36, 1.0  ;;  %v5807_v62 = vmax.f32 %v2673_v55, 1.0  ;;  %v5810_v33 = vmax.f32 %v2675_v10, 1.0  ;;  %v2676_v48 = vld [vmem:[#allocation5 + $0x30] sm:$0xff] }
 0x5b8   : > { %3807 = vrcp.f32 %v2678_v58  ;;  %v2695_v19 = vand.u32 2147483647, %v2678_v58  ;;  %v2697_v2 = vand.u32 2147483648, %v2678_v58  ;;  %v2712_v1 = vand.u32 2147483648, %v5802_v11 }
 0x5b9   : > { %3809 = vrcp.f32 %v5802_v11  ;;  %v2725_v23 = vand.u32 2147483647, %v2680_v13  ;;  %v2727_v20 = vand.u32 2147483648, %v2680_v13  ;;  %vm2691_vm4 = vweird.f32 %v2678_v58 }
 0x5ba   : > { %3811 = vrcp.f32 %v2680_v13  ;;  %v2710_v28 = vand.u32 2147483647, %v5802_v11  ;;  %vm5816_vm13 = vcmp.eq.f32.partialorder %v2695_v19, 8.507059e+37  ;;  %v2698_v29 = vor.u32 1.1754944e-38, %v2697_v2  ;;  %v2808_v19 = vld [vmem:[#allocation4 + $0x10] sm:$0xff] }
 0x5bb   : > { %3813 = vrcp.f32 %v5804_v17  ;;  %v2755_v59 = vand.u32 2147483647, %v5804_v17  ;;  %v2757_v63 = vand.u32 2147483648, %v5804_v17  ;;  %v5824_v47 = vor.u32 1.1754944e-38, %v2712_v1 }
 0x5bc   : > { %3815 = vrcp.f32 %v5807_v62  ;;  %vm5829_vm3 = vcmp.eq.f32.partialorder %v2725_v23, 8.507059e+37  ;;  %v2728_v27 = vor.u32 1.1754944e-38, %v2727_v20  ;;  %v5840_v6 = vmax.f32 %v2676_v48, 1.0 }
 0x5bd   : > { %3817 = vrcp.f32 %v5810_v33  ;;  %vm5835_vm15 = vcmp.eq.f32.partialorder %v2755_v59, 8.507059e+37  ;;  %v2758_v12 = vor.u32 1.1754944e-38, %v2757_v63  ;;  %v2740_v35 = vand.u32 2147483647, %v5807_v62 }
 0x5be   : > { %v3808_v3 = vpop.eup %3807  ;;  %vm6497_vm5 = vweird.f32 %v5802_v11  ;;  %3819 = vrcp.f32 %v5840_v6  ;;  %v2772_v48 = vand.u32 2147483648, %v5810_v33 }
 0x5bf   : > { %v5822_v18 = vpop.eup %3809  ;;  %v2687_v7 = vmul.f32 %v3808_v3, %v2678_v58  ;;  %vm2692_vm1 = vweird.f32 %v3808_v3 }
 0x5c0   : > { %v3812_v57 = vpop.eup %3811  ;;  %v2702_v38 = vmul.f32 %v5822_v18, %v5802_v11  ;;  %vm5843_vm10 = vmor %vm2691_vm4, %vm2692_vm1  ;;  %vm2707_vm2 = vweird.f32 %v5822_v18  ;;  %vm6494_vm4 = vweird.f32 %v2680_v13 }
 0x5c1   : > { %v2688_v8 = vsub.f32 1.0, %v2687_v7  ;;  %v2717_v60 = vmul.f32 %v3812_v57, %v2680_v13  ;;  %v3814_v41 = vpop.eup %3813  ;;  %vm6493_vm12 = vweird.f32 %v3812_v57  ;;  %vm5863_vm11 = vmor %vm6497_vm5, %vm2707_vm2  ;;  %vm2766_vm5 = vweird.f32 %v5810_v33 }
 0x5c2   : > { %v2703_v42 = vsub.f32 1.0, %v2702_v38  ;;  %v3816_v16 = vpop.eup %3815  ;;  %v2747_v34 = vmul.f32 %v3814_v41, %v5804_v17  ;;  %vm2752_vm9 = vweird.f32 %v3814_v41  ;;  %vm5854_vm1 = vmor %vm6494_vm4, %vm6493_vm12  ;;  %vm6500_vm12 = vweird.f32 %v5804_v17 }
 0x5c3   : > { %v2689_v45 = vmul.f32 %v3808_v3, %v2688_v8  ;;  %v2718_v40 = vsub.f32 1.0, %v2717_v60  ;;  %v2732_v25 = vmul.f32 %v3816_v16, %v5807_v62  ;;  %v3818_v49 = vpop.eup %3817  ;;  %vm2737_vm14 = vweird.f32 %v3816_v16  ;;  %vm5872_vm4 = vmor %vm6500_vm12, %vm2752_vm9 }
 0x5c4   : > { %v2704_v37 = vmul.f32 %v5822_v18, %v2703_v42  ;;  %v2748_v53 = vsub.f32 1.0, %v2747_v34  ;;  %v2762_v55 = vmul.f32 %v3818_v49, %v5810_v33  ;;  %vm6503_vm9 = vweird.f32 %v5807_v62 }
 0x5c5   : > { %v2690_v22 = vadd.f32 %v3808_v3, %v2689_v45  ;;  %v2719_v43 = vmul.f32 %v3812_v57, %v2718_v40  ;;  %v2733_v36 = vsub.f32 1.0, %v2732_v25  ;;  %vm2711_vm2 = vcmp.eq.f32.partialorder %v2710_v28, 8.507059e+37 }
 0x5c6   : > { %v2705_v4 = vadd.f32 %v5822_v18, %v2704_v37  ;;  %v2749_v1 = vmul.f32 %v3814_v41, %v2748_v53  ;;  %v2763_v59 = vsub.f32 1.0, %v2762_v55  ;;  %v2787_v40 = vand.u32 2147483648, %v5840_v6 }
 0x5c7   : > { %v2694_v10 = vsel %vm5843_vm10, %v3808_v3, %v2690_v22  ;;  %v2720_v2 = vadd.f32 %v3812_v57, %v2719_v43  ;;  %v2734_v20 = vmul.f32 %v3816_v16, %v2733_v36  ;;  %v2742_v3 = vand.u32 2147483648, %v5807_v62 }
 0x5c8   : > { %v2699_v13 = vsel %vm5816_vm13, %v2698_v29, %v2694_v10  ;;  %v2750_v7 = vadd.f32 %v3814_v41, %v2749_v1  ;;  %vm2767_vm10 = vweird.f32 %v3818_v49  ;;  %vm5885_vm13 = vmor %vm6503_vm9, %vm2737_vm14  ;;  %v2764_v38 = vmul.f32 %v3818_v49, %v2763_v59 }
 0x5c9   : > { %2816 = vperm.xlu0 %3802, %v2699_v13   ;;  %v2724_v63 = vsel %vm5854_vm1, %v3812_v57, %v2720_v2  ;;  %v2735_v17 = vadd.f32 %v3816_v16, %v2734_v20  ;;  %v2709_v57 = vsel %vm5863_vm11, %v5822_v18, %v2705_v4  ;;  %v2770_v62 = vand.u32 2147483647, %v5810_v33  ;;  %vm5902_vm14 = vmor %vm2766_vm5, %vm2767_vm10  ;;  %v3820_v18 = vpop.eup %3819 }
 0x5ca   : > { %v2729_v51 = vsel %vm5829_vm3, %v2728_v27, %v2724_v63  ;;  %v2754_v39 = vsel %vm5872_vm4, %v3814_v41, %v2750_v7  ;;  %v2743_v8 = vor.u32 1.1754944e-38, %v2742_v3  ;;  %v2765_v60 = vadd.f32 %v3818_v49, %v2764_v38  ;;  %v2807_v63 = vld [vmem:[#allocation4 + $0x8] sm:$0xff] }
 0x5cb   : > { %2826 = vperm.xlu1 %3803, %v2729_v51   ;;  %v2759_v27 = vsel %vm5835_vm15, %v2758_v12, %v2754_v39  ;;  %v2739_v11 = vsel %vm5885_vm13, %v3816_v16, %v2735_v17  ;;  %vm2741_vm11 = vcmp.eq.f32.partialorder %v2740_v35, 8.507059e+37  ;;  %v2714_v28 = vsel %vm2711_vm2, %v5824_v47, %v2709_v57  ;;  %v2811_v7 = vld [vmem:[#allocation4 + $0x28] sm:$0xff]  ;;  %v2810_v57 = vld [vmem:[#allocation4 + $0x20] sm:$0xff]  ;;  %v2809_v39 = vld [vmem:[#allocation4 + $0x18] sm:$0xff] }
 0x5cc   : > { %2836 = vperm.xlu2 %3804, %v2759_v27   ;;  %v2773_v41 = vor.u32 1.1754944e-38, %v2772_v48  ;;  %v2777_v61 = vmul.f32 %v3820_v18, %v5840_v6  ;;  %v2769_v12 = vsel %vm5902_vm14, %v3818_v49, %v2765_v60  ;;  %vm2771_vm15 = vcmp.eq.f32.partialorder %v2770_v62, 8.507059e+37  ;;  %v2677_v49 = vld [vmem:[#allocation5 + $0x38] sm:$0xff]  ;;  %v2812_v60 = vld [vmem:[#allocation4 + $0x30] sm:$0xff] }
 0x5cd   : > { %vm2781_vm3 = vweird.f32 %v5840_v6  ;;  %v2744_v33 = vsel %vm2741_vm11, %v2743_v8, %v2739_v11  ;;  %vm2782_vm1 = vweird.f32 %v3820_v18  ;;  %v2785_v16 = vand.u32 2147483647, %v5840_v6  ;;  %v2806_v6 = vld [vmem:[#allocation4] sm:$0xff]  ;;  %v2918_v11 = vld [vmem:[%s6194_s4 + $0xa8] sm:$0xff] }
 0x5ce   : > { %v2778_v45 = vsub.f32 1.0, %v2777_v61  ;;  %v2774_v34 = vsel %vm2771_vm15, %v2773_v41, %v2769_v12  ;;  %vm2783_vm12 = vmor %vm2781_vm3, %vm2782_vm1  ;;  %v2788_v37 = vor.u32 1.1754944e-38, %v2787_v40  ;;  %v2685_v22 = vmax.f32 %v2677_v49, 1.0  ;;  %2954 = vmatpush.msra.mxu0 %v2918_v11  ;;  %3662 = vmatpush.msra.mxu3 %v2918_v11  ;;  %v2916_v41 = vld [vmem:[%s6194_s4 + $0x98] sm:$0xff]  ;;  %v2915_v61 = vld [vmem:[%s6194_s4 + $0x90] sm:$0xff] }
 0x5cf   : > { %vm2786_vm4 = vcmp.eq.f32.partialorder %v2785_v16, 8.507059e+37  ;;  %v2914_v12 = vld [vmem:[%s6194_s4 + $0x88] sm:$0xff]  ;;  %v2911_v40 = vld [vmem:[%s6194_s4 + $0x70] sm:$0xff]  ;;  %vm2921_vm2 = vcmask 523264   ;;  %vm2902_vm14 = vcmask 261120  }
 0x5d0   : > { %v2779_v5 = vmul.f32 %v3820_v18, %v2778_v45  ;;  %3821 = vrcp.f32 %v2685_v22  ;;  %vm2796_vm5 = vweird.f32 %v2685_v22  ;;  %v2802_v10 = vand.u32 2147483648, %v2685_v22  ;;  %v2912_v45 = vld [vmem:[%s6194_s4 + $0x78] sm:$0xff] }
 0x5d1   : > { %2821 = vperm.xlu0 %3802, %v2714_v28   ;;  %v2800_v13 = vand.u32 2147483647, %v2685_v22  ;;  %v2917_v28 = vld [vmem:[%s6194_s4 + $0xa0] sm:$0xff] }
 0x5d2   : > { %v2780_v47 = vadd.f32 %v3820_v18, %v2779_v5  ;;  %v2803_v3 = vor.u32 1.1754944e-38, %v2802_v10  ;;  %2955 = vmatpush.msra.mxu0 %v2917_v28  ;;  %3663 = vmatpush.msra.mxu3 %v2917_v28  ;;  %v5964_v10 = vld [vmem:[#allocation2 + $0x30] sm:$0xff] }
 0x5d3   : > { %2831 = vperm.xlu1 %3803, %v2744_v33   ;;  %vm2801_vm13 = vcmp.eq.f32.partialorder %v2800_v13, 8.507059e+37  ;;  %v2913_v33 = vld [vmem:[%s6194_s4 + $0x80] sm:$0xff] }
 0x5d4   : > { %2841 = vperm.xlu2 %3804, %v2774_v34   ;;  %v2784_v25 = vsel %vm2783_vm12, %v3820_v18, %v2780_v47  ;;  %2956 = vmatpush.msra.mxu0 %v2916_v41  ;;  %v5946_v34 = vld [vmem:[#allocation2] sm:$0xff] }
 0x5d5   : > { %v2789_v35 = vsel %vm2786_vm4, %v2788_v37, %v2784_v25  ;;  %3664 = vmatpush.msra.mxu3 %v2916_v41  ;;  %v2813_v25 = vld [vmem:[#allocation4 + $0x38] sm:$0xff] }
 0x5d6   : > { %v3822_v43 = vpop.eup %3821  ;;  %2957 = vmatpush.msra.mxu0 %v2915_v61 }
 0x5d7   : > { %v2792_v53 = vmul.f32 %v3822_v43, %v2685_v22  ;;  %vm2797_vm10 = vweird.f32 %v3822_v43  ;;  %3665 = vmatpush.msra.mxu3 %v2915_v61 }
 0x5d8   : > { %vm2798_vm9 = vmor %vm2796_vm5, %vm2797_vm10  ;;  %2958 = vmatpush.msra.mxu0 %v2914_v12 }
 0x5d9   : > { %v2793_v4 = vsub.f32 1.0, %v2792_v53  ;;  %3666 = vmatpush.msra.mxu3 %v2914_v12 }
 0x5da   : > { %2959 = vmatpush.msra.mxu0 %v2913_v33 }
 0x5db   : > { %2846 = vperm.xlu1 %3803, %v2789_v35   ;;  %v2794_v36 = vmul.f32 %v3822_v43, %v2793_v4  ;;  %3667 = vmatpush.msra.mxu3 %v2913_v33  ;;  %v5951_v35 = vld [vmem:[#allocation2 + $0x8] sm:$0xff] }
 0x5dc   : > { %2960 = vmatpush.msra.mxu0 %v2912_v45 }
 0x5dd   : > { %v2795_v1 = vadd.f32 %v3822_v43, %v2794_v36  ;;  %3668 = vmatpush.msra.mxu3 %v2912_v45 }
 0x5de   : > { %2961 = vmatpush.msra.mxu0 %v2911_v40 }
 0x5df   : > { %v2799_v59 = vsel %vm2798_vm9, %v3822_v43, %v2795_v1  ;;  %3669 = vmatpush.msra.mxu3 %v2911_v40  ;;  %v5953_v43 = vld [vmem:[#allocation2 + $0x28] sm:$0xff]  ;;  %v5971_v1 = vld [vmem:[#allocation2 + $0x18] sm:$0xff] }
 0x5e0   : > { %v2804_v29 = vsel %vm2801_vm13, %v2803_v3, %v2799_v59  ;;  %v3150_v59 = vld [vmem:[%s6194_s4 + $0xc8] sm:$0xff] }
 0x5e1   : > { %3187 = vmatpush.msra.mxu1 %v3150_v59 }
 0x626   : > { %v2837_v58 = vpop.permute.xlu2 %2836 }
 0x627   : > { %v2858_v27 = vmul.f32 %v2837_v58, %v2810_v57 }
 0x62e   : > { %v2842_v51 = vpop.permute.xlu2 %2841 }
 0x62f   : > { %v2859_v48 = vmul.f32 %v2842_v51, %v2811_v7  ;;  %v5990_v7 = vld [vmem:[%s6195_s5 + $0x4] ss:$0 sm:$0xff] }
 0x630   : > { %v3149_v51 = vld [vmem:[%s6194_s4 + $0xc0] sm:$0xff] }
 0x631   : > { %3188 = vmatpush.msra.mxu1 %v3149_v51 }
 0x63b   : > { %v2817_v55 = vpop.permute.xlu0 %2816 }
 0x63c   : > { %v2854_v2 = vmul.f32 %v2817_v55, %v2806_v6  ;;  %v5961_v6 = vld [vmem:[#allocation2 + $0x10] sm:$0xff] }
 0x63d   : > { %v2827_v23 = vpop.permute.xlu1 %2826 }
 0x63e   : > { %2878 = vrot.lane.b32.xlu0 %v2854_v2, %s3941_s25  ;;  %v2856_v20 = vmul.f32 %v2827_v23, %v2808_v19 }
 0x640   : > { %2882 = vrot.lane.b32.xlu1 %v2856_v20, %s3941_s25  ;;  %v5977_v20 = vld [vmem:[#allocation2 + $0x20] sm:$0xff] }
 0x643   : > { %v2822_v17 = vpop.permute.xlu0 %2821 }
 0x644   : > { %v2855_v38 = vmul.f32 %v2822_v17, %v2807_v63  ;;  %v5985_v63 = vld [vmem:[#allocation2 + $0x38] sm:$0xff] }
 0x645   : > { %v2832_v62 = vpop.permute.xlu1 %2831 }
 0x646   : > { %2851 = vperm.xlu0 %3802, %v2804_v29   ;;  %2880 = vrot.lane.b32.xlu2 %v2855_v38, %s3941_s25  ;;  %v2857_v8 = vmul.f32 %v2832_v62, %v2809_v39  ;;  %v3148_v38 = vld [vmem:[%s6194_s4 + $0xb8] sm:$0xff]  ;;  %v3147_v39 = vld [vmem:[%s6194_s4 + $0xb0] sm:$0xff] }
 0x647   : > { %3189 = vmatpush.msra.mxu1 %v3148_v38 }
 0x648   : > { %2888 = vrot.lane.b32.xlu1 %v2859_v48, %s3941_s25 }
 0x649   : > { %3190 = vmatpush.msra.mxu1 %v3147_v39 }
 0x64d   : > { %v2847_v42 = vpop.permute.xlu1 %2846 }
 0x64e   : > { %2886 = vrot.lane.b32.xlu0 %v2858_v27, %s3941_s25  ;;  %2884 = vrot.lane.b32.xlu2 %v2857_v8, %s3941_s25  ;;  %v2860_v18 = vmul.f32 %v2847_v42, %v2812_v60 }
 0x656   : > { %2890 = vrot.lane.b32.xlu2 %v2860_v18, %s3941_s25 }
 0x6a0   : > { %v2881_v16 = vpop.permute.xlu2 %2880 }
 0x6a1   : > { %v2904_v4 = vsel %vm2902_vm14, %v5951_v35, %v2881_v16 }
 0x6a8   : > { %v2885_v49 = vpop.permute.xlu2 %2884 }
 0x6a9   : > { %v2906_v13 = vsel %vm2902_vm14, %v5971_v1, %v2885_v49 }
 0x6b0   : > { %v2879_v5 = vpop.permute.xlu0 %2878  ;;  %v2891_v55 = vpop.permute.xlu2 %2890 }
 0x6b1   : > { %v2903_v47 = vsel %vm2902_vm14, %v5946_v34, %v2879_v5  ;;  %v2909_v2 = vsel %vm2902_vm14, %v5964_v10, %v2891_v55 }
 0x6b2   : > { %3599 = vmatmul.msk.f32.vlgmr.msra.gmra.mxu0 %vm2921_vm2, %v2903_v47  ;;  %v2883_v37 = vpop.permute.xlu1 %2882 }
 0x6b3   : > { %v2905_v19 = vsel %vm2902_vm14, %v5961_v6, %v2883_v37 }
 0x6b8   : > { %v2852_v22 = vpop.permute.xlu0 %2851 }
 0x6b9   : > { %v2861_v53 = vmul.f32 %v2852_v22, %v2813_v25 }
 0x6ba   : > { %3600 = vmatmul.msk.f32.gmra.mxu0 %vm2921_vm2, %v2904_v4  ;;  %v2889_v58 = vpop.permute.xlu1 %2888 }
 0x6bb   : > { %2892 = vrot.lane.b32.xlu0 %v2861_v53, %s3941_s25  ;;  %v2908_v36 = vsel %vm2902_vm14, %v5953_v43, %v2889_v58 }
 0x6bc   : > { %3604 = vmatmul.msk.f32.vlgmr.msra.gmra.mxu3 %vm2921_vm2, %v2908_v36 }
 0x6c0   : > { %v2887_v23 = vpop.permute.xlu0 %2886 }
 0x6c1   : > { %v2907_v3 = vsel %vm2902_vm14, %v5977_v20, %v2887_v23 }
 0x6c2   : > { %3601 = vmatmul.msk.f32.gmra.mxu0 %vm2921_vm2, %v2905_v19 }
 0x6c4   : > { %3605 = vmatmul.msk.f32.gmra.mxu3 %vm2921_vm2, %v2909_v2 }
 0x6ca   : > { %3602 = vmatmul.msk.f32.gmra.mxu0 %vm2921_vm2, %v2906_v13 }
 0x6d2   : > { %3603 = vmatmul.msk.f32.gmra.mxu0 %vm2921_vm2, %v2907_v3 }
 0x72d   : > { %v2893_v17 = vpop.permute.xlu0 %2892 }
 0x72e   : > { %v2910_v29 = vsel %vm2902_vm14, %v5985_v63, %v2893_v17 }
 0x72f   : > { %v2963_v48 = vpop.f32.mrf.mxu0  ;;  %3606 = vmatmul.msk.f32.gmra.mxu3 %vm2921_vm2, %v2910_v29 }
 0x730   : > { %v2964_v57 = vadd.f32 %v5990_v7, %v2963_v48 }
 0x732   : > { %v2987_v62 = vsub.f32 0.0, %v2964_v57 }
 0x734   : > { %v2995_v27 = vmul.f32 1.442695, %v2987_v62 }
 0x736   : > { %3823 = vpow2.f32 %v2995_v27 }
 0x737   : > { %v2966_v8 = vpop.f32.mrf.mxu0 }
 0x738   : > { %v6006_v60 = vadd.f32 %v5990_v7, %v2966_v8 }
 0x73a   : > { %v2988_v42 = vsub.f32 0.0, %v6006_v60 }
 0x73c   : > { %v3824_v18 = vpop.eup %3823  ;;  %v2997_v11 = vmul.f32 1.442695, %v2988_v42 }
 0x73d   : > { %v3011_v28 = vadd.f32 1.0, %v3824_v18 }
 0x73e   : > { %3825 = vpow2.f32 %v2997_v11 }
 0x73f   : > { %3827 = vrcp.f32 %v3011_v28  ;;  %v2969_v41 = vpop.f32.mrf.mxu0  ;;  %v2978_v61 = vpop.f32.mrf.mxu3  ;;  %v3030_v55 = vand.u32 2147483648, %v3011_v28  ;;  %v3028_v2 = vand.u32 2147483647, %v3011_v28  ;;  %vm3024_vm15 = vweird.f32 %v3011_v28 }
 0x740   : > { %v6010_v12 = vadd.f32 %v5990_v7, %v2969_v41  ;;  %v6013_v33 = vadd.f32 %v5990_v7, %v2978_v61 }
 0x741   : > { %v3031_v29 = vor.u32 1.1754944e-38, %v3030_v55  ;;  %vm3029_vm1 = vcmp.eq.f32.partialorder %v3028_v2, 8.507059e+37 }
 0x742   : > { %v2989_v45 = vsub.f32 0.0, %v6010_v12  ;;  %v2992_v40 = vsub.f32 0.0, %v6013_v33 }
 0x744   : > { %v3826_v16 = vpop.eup %3825  ;;  %v2999_v5 = vmul.f32 1.442695, %v2989_v45  ;;  %v3005_v47 = vmul.f32 1.442695, %v2992_v40 }
 0x745   : > { %v3828_v37 = vpop.eup %3827  ;;  %v3012_v25 = vadd.f32 1.0, %v3826_v16 }
 0x746   : > { %v3020_v49 = vmul.f32 %v3828_v37, %v3011_v28  ;;  %3829 = vpow2.f32 %v2999_v5  ;;  %vm3025_vm11 = vweird.f32 %v3828_v37 }
 0x747   : > { %3831 = vrcp.f32 %v3012_v25  ;;  %v2972_v22 = vpop.f32.mrf.mxu0  ;;  %v2981_v53 = vpop.f32.mrf.mxu3  ;;  %vm3026_vm3 = vmor %vm3024_vm15, %vm3025_vm11  ;;  %v3045_v41 = vand.u32 2147483648, %v3012_v25  ;;  %v3043_v40 = vand.u32 2147483647, %v3012_v25  ;;  %vm3039_vm4 = vweird.f32 %v3012_v25 }
 0x748   : > { %v3021_v4 = vsub.f32 1.0, %v3020_v49  ;;  %v6018_v58 = vadd.f32 %v5990_v7, %v2972_v22  ;;  %3833 = vpow2.f32 %v3005_v47  ;;  %v6021_v36 = vadd.f32 %v5990_v7, %v2981_v53 }
 0x749   : > { %v3046_v49 = vor.u32 1.1754944e-38, %v3045_v41  ;;  %vm3044_vm10 = vcmp.eq.f32.partialorder %v3043_v40, 8.507059e+37 }
 0x74a   : > { %v3022_v19 = vmul.f32 %v3828_v37, %v3021_v4  ;;  %v2990_v13 = vsub.f32 0.0, %v6018_v58  ;;  %v2993_v51 = vsub.f32 0.0, %v6021_v36 }
 0x74c   : > { %v3830_v23 = vpop.eup %3829  ;;  %v3023_v3 = vadd.f32 %v3828_v37, %v3022_v19  ;;  %v3001_v59 = vmul.f32 1.442695, %v2990_v13  ;;  %v3007_v28 = vmul.f32 1.442695, %v2993_v51 }
 0x74d   : > { %v3832_v17 = vpop.eup %3831  ;;  %v3013_v38 = vadd.f32 1.0, %v3830_v23 }
 0x74e   : > { %v3834_v48 = vpop.eup %3833  ;;  %v3027_v39 = vsel %vm3026_vm3, %v3828_v37, %v3023_v3  ;;  %v3035_v62 = vmul.f32 %v3832_v17, %v3012_v25  ;;  %3835 = vpow2.f32 %v3001_v59  ;;  %vm3040_vm12 = vweird.f32 %v3832_v17 }
 0x74f   : > { %v3032_v27 = vsel %vm3029_vm1, %v3031_v29, %v3027_v39  ;;  %3837 = vrcp.f32 %v3013_v38  ;;  %v2975_v8 = vpop.f32.mrf.mxu0  ;;  %v6028_v61 = vadd.f32 1.0, %v3834_v48  ;;  %vm3041_vm5 = vmor %vm3039_vm4, %vm3040_vm12  ;;  %vm3054_vm9 = vweird.f32 %v3013_v38 }
 0x750   : > { %v3139_v42 = vmul.f32 %v3032_v27, %v2964_v57  ;;  %v3036_v18 = vsub.f32 1.0, %v3035_v62  ;;  %v6026_v11 = vadd.f32 %v5990_v7, %v2975_v8  ;;  %3839 = vpow2.f32 %v3007_v28 }
 0x751   : > { %3841 = vrcp.f32 %v6028_v61  ;;  %v3060_v19 = vand.u32 2147483648, %v3013_v38  ;;  %v3058_v25 = vand.u32 2147483647, %v3013_v38 }
 0x752   : > { %v3037_v45 = vmul.f32 %v3832_v17, %v3036_v18  ;;  %v2991_v16 = vsub.f32 0.0, %v6026_v11  ;;  %3607 = vmatmul.msk.f32.vlgmr.msra.gmra.mxu1 %vm2902_vm14, %v3139_v42 }
 0x753   : > { %v3061_v51 = vor.u32 1.1754944e-38, %v3060_v19  ;;  %vm3059_vm11 = vcmp.eq.f32.partialorder %v3058_v25, 8.507059e+37 }
 0x754   : > { %v3836_v5 = vpop.eup %3835  ;;  %v3038_v47 = vadd.f32 %v3832_v17, %v3037_v45  ;;  %v3003_v37 = vmul.f32 1.442695, %v2991_v16 }
 0x755   : > { %v3838_v57 = vpop.eup %3837  ;;  %v3014_v22 = vadd.f32 1.0, %v3836_v5 }
 0x756   : > { %v3042_v53 = vsel %vm3041_vm5, %v3832_v17, %v3038_v47  ;;  %v3050_v4 = vmul.f32 %v3838_v57, %v3013_v38  ;;  %3843 = vpow2.f32 %v3003_v37  ;;  %vm3055_vm13 = vweird.f32 %v3838_v57  ;;  %v3840_v23 = vpop.eup %3839 }
 0x757   : > { %v3047_v55 = vsel %vm3044_vm10, %v3046_v49, %v3042_v53  ;;  %3845 = vrcp.f32 %v3014_v22  ;;  %v6035_v59 = vpop.eup %3841  ;;  %vm3056_vm2 = vmor %vm3054_vm9, %vm3055_vm13  ;;  %v6037_v62 = vadd.f32 1.0, %v3840_v23  ;;  %vm3069_vm15 = vweird.f32 %v3014_v22 }
 0x758   : > { %v3140_v2 = vmul.f32 %v3047_v55, %v6006_v60  ;;  %v3051_v13 = vsub.f32 1.0, %v3050_v4  ;;  %v3075_v38 = vand.u32 2147483648, %v3014_v22  ;;  %v3095_v42 = vmul.f32 %v6035_v59, %v6028_v61 }
 0x759   : > { %v3073_v41 = vand.u32 2147483647, %v3014_v22  ;;  %vm3099_vm10 = vweird.f32 %v6028_v61  ;;  %vm3100_vm9 = vweird.f32 %v6035_v59  ;;  %v3105_v23 = vand.u32 2147483648, %v6028_v61 }
 0x75a   : > { %v3052_v3 = vmul.f32 %v3838_v57, %v3051_v13  ;;  %3608 = vmatmul.msk.f32.gmra.mxu1 %vm2902_vm14, %v3140_v2  ;;  %v3076_v40 = vor.u32 1.1754944e-38, %v3075_v38  ;;  %v3096_v16 = vsub.f32 1.0, %v3095_v42  ;;  %v3120_v42 = vand.u32 2147483648, %v6037_v62 }
 0x75b   : > { %vm3074_vm12 = vcmp.eq.f32.partialorder %v3073_v41, 8.507059e+37 }
 0x75c   : > { %v3844_v17 = vpop.eup %3843  ;;  %v3053_v29 = vadd.f32 %v3838_v57, %v3052_v3  ;;  %v3097_v4 = vmul.f32 %v6035_v59, %v3096_v16  ;;  %v3121_v41 = vor.u32 1.1754944e-38, %v3120_v42 }
 0x75d   : > { %v3846_v48 = vpop.eup %3845  ;;  %v3015_v39 = vadd.f32 1.0, %v3844_v17 }
 0x75e   : > { %v3057_v27 = vsel %vm3056_vm2, %v3838_v57, %v3053_v29  ;;  %v3065_v60 = vmul.f32 %v3846_v48, %v3014_v22  ;;  %vm3070_vm3 = vweird.f32 %v3846_v48 }
 0x75f   : > { %v3062_v8 = vsel %vm3059_vm11, %v3061_v51, %v3057_v27  ;;  %3847 = vrcp.f32 %v3015_v39  ;;  %vm3071_vm1 = vmor %vm3069_vm15, %vm3070_vm3  ;;  %vm3084_vm4 = vweird.f32 %v3015_v39  ;;  %v3088_v19 = vand.u32 2147483647, %v3015_v39 }
 0x760   : > { %v3141_v18 = vmul.f32 %v3062_v8, %v6010_v12  ;;  %v3066_v28 = vsub.f32 1.0, %v3065_v60  ;;  %3849 = vrcp.f32 %v6037_v62  ;;  %v3090_v12 = vand.u32 2147483648, %v3015_v39  ;;  %vm3101_vm11 = vmor %vm3099_vm10, %vm3100_vm9 }
 0x761   : > { %vm3089_vm2 = vcmp.eq.f32.partialorder %v3088_v19, 8.507059e+37  ;;  %v3103_v51 = vand.u32 2147483647, %v6028_v61  ;;  %vm3114_vm3 = vweird.f32 %v6037_v62  ;;  %v3806_v19 = vld [vmem:[%s6195_s5 + $0x5] ss:$0 sm:$0xff] }
 0x762   : > { %v3067_v45 = vmul.f32 %v3846_v48, %v3066_v28  ;;  %3609 = vmatmul.msk.f32.gmra.mxu1 %vm2902_vm14, %v3141_v18  ;;  %v3091_v25 = vor.u32 1.1754944e-38, %v3090_v12  ;;  %v3118_v28 = vand.u32 2147483647, %v6037_v62 }
 0x763   : > { %vm3104_vm15 = vcmp.eq.f32.partialorder %v3103_v51, 8.507059e+37 }
 0x764   : > { %v3068_v5 = vadd.f32 %v3846_v48, %v3067_v45 }
 0x765   : > { %v3848_v47 = vpop.eup %3847 }
 0x766   : > { %v3072_v37 = vsel %vm3071_vm1, %v3846_v48, %v3068_v5  ;;  %v3080_v57 = vmul.f32 %v3848_v47, %v3015_v39  ;;  %v3850_v49 = vpop.eup %3849  ;;  %vm3085_vm5 = vweird.f32 %v3848_v47  ;;  %v3106_v39 = vor.u32 1.1754944e-38, %v3105_v23 }
 0x767   : > { %v3077_v53 = vsel %vm3074_vm12, %v3076_v40, %v3072_v37  ;;  %v3110_v13 = vmul.f32 %v3850_v49, %v6037_v62  ;;  %vm3086_vm13 = vmor %vm3084_vm4, %vm3085_vm5  ;;  %vm3115_vm1 = vweird.f32 %v3850_v49  ;;  %vm3119_vm4 = vcmp.eq.f32.partialorder %v3118_v28, 8.507059e+37  ;;  %v3242_v40 = vld [vmem:[%s6196_s6] sm:$0xff] }
 0x768   : > { %v3142_v22 = vmul.f32 %v3077_v53, %v6018_v58  ;;  %v3081_v55 = vsub.f32 1.0, %v3080_v57  ;;  %v3098_v58 = vadd.f32 %v6035_v59, %v3097_v4  ;;  %vm3116_vm12 = vmor %vm3114_vm3, %vm3115_vm1  ;;  %3246 = vxpose.xlu1.b32.start [1/4] (short) (narrow) %v3242_v40, 8  ;;  %v3244_v57 = vld [vmem:[%s6196_s6 + $0x10] sm:$0xff]  ;;  %vm3344_vm1 = vcmask 516096  }
 0x769   : > { %v3111_v29 = vsub.f32 1.0, %v3110_v13 }
 0x76a   : > { %v3082_v2 = vmul.f32 %v3848_v47, %v3081_v55  ;;  %3610 = vmatmul.msk.f32.gmra.mxu1 %vm2902_vm14, %v3142_v22  ;;  %v3102_v60 = vsel %vm3101_vm11, %v6035_v59, %v3098_v58 }
 0x76b   : > { %v3112_v8 = vmul.f32 %v3850_v49, %v3111_v29  ;;  %v3107_v38 = vsel %vm3104_vm15, %v3106_v39, %v3102_v60 }
 0x76c   : > { %v3083_v3 = vadd.f32 %v3848_v47, %v3082_v2  ;;  %v3144_v61 = vmul.f32 %v3107_v38, %v6013_v33 }
 0x76d   : > { %v3113_v18 = vadd.f32 %v3850_v49, %v3112_v8 }
 0x76e   : > { %v3087_v17 = vsel %vm3086_vm13, %v3848_v47, %v3083_v3  ;;  %v3243_v47 = vld [vmem:[%s6196_s6 + $0x8] sm:$0xff] }
 0x76f   : > { %v3092_v48 = vsel %vm3089_vm2, %v3091_v25, %v3087_v17 }
 0x770   : > { %v3143_v27 = vmul.f32 %v3092_v48, %v6026_v11  ;;  %v3117_v11 = vsel %vm3116_vm12, %v3850_v49, %v3113_v18  ;;  %3247 = vxpose.xlu1.b32.cont [2/4] (short) (narrow) %v3243_v47, 8 }
 0x771   : > { %v3122_v59 = vsel %vm3119_vm4, %v3121_v41, %v3117_v11 }
 0x772   : > { %3611 = vmatmul.msk.f32.gmra.mxu1 %vm2902_vm14, %v3143_v27  ;;  %v3145_v45 = vmul.f32 %v3122_v59, %v6021_v36 }
 0x778   : > { %3248 = vxpose.xlu1.b32.cont [3/4] (short) (narrow) %v3244_v57, 8 }
 0x77a   : > { %3612 = vmatmul.msk.f32.gmra.mxu1 %vm2902_vm14, %v3144_v61 }
 0x782   : > { %3613 = vmatmul.msk.f32.gmra.mxu1 %vm2902_vm14, %v3145_v45 }
 0x7b2   : > { %v2984_v33 = vpop.f32.mrf.mxu3 }
 0x7b3   : > { %v2985_v16 = vadd.f32 %v5990_v7, %v2984_v33  ;;  %v3245_v7 = vld [vmem:[%s6196_s6 + $0x18] sm:$0xff] }
 0x7b4   : > { %3249 = vxpose.xlu1.b32.end [4/4] (short) (narrow) %v3245_v7, 8 }
 0x7b5   : > { %v2994_v62 = vsub.f32 0.0, %v2985_v16 }
 0x7b7   : > { %v3009_v5 = vmul.f32 1.442695, %v2994_v62 }
 0x7b9   : > { %3851 = vpow2.f32 %v3009_v5 }
 0x7bf   : > { %v3852_v37 = vpop.eup %3851 }
 0x7c0   : > { %v3018_v36 = vadd.f32 1.0, %v3852_v37 }
 0x7c2   : > { %3853 = vrcp.f32 %v3018_v36  ;;  %v3135_v4 = vand.u32 2147483648, %v3018_v36  ;;  %v3133_v55 = vand.u32 2147483647, %v3018_v36  ;;  %vm3129_vm10 = vweird.f32 %v3018_v36 }
 0x7c4   : > { %v3136_v25 = vor.u32 1.1754944e-38, %v3135_v4  ;;  %vm3134_vm13 = vcmp.eq.f32.partialorder %v3133_v55, 8.507059e+37 }
 0x7c8   : > { %v3854_v49 = vpop.eup %3853 }
 0x7c9   : > { %v3125_v53 = vmul.f32 %v3854_v49, %v3018_v36  ;;  %vm3130_vm5 = vweird.f32 %v3854_v49 }
 0x7ca   : > { %vm3131_vm9 = vmor %vm3129_vm10, %vm3130_vm5 }
 0x7cb   : > { %v3126_v12 = vsub.f32 1.0, %v3125_v53  ;;  %v3942_v53 = vmov 0.0  }
 0x7cc   : > { %3346 = vst.msk [vmem:[#allocation6 + $0x3] sm:$0x1] %vm3344_vm1, %v3942_v53 }
 0x7cd   : > { %v3127_v22 = vmul.f32 %v3854_v49, %v3126_v12 }
 0x7cf   : > { %v3128_v2 = vadd.f32 %v3854_v49, %v3127_v22  ;;  %v3192_v13 = vpop.f32.mrf.mxu1 }
 0x7d0   : > { %v3216_v23 = vadd.f32 %v3192_v13, %v5946_v34 }
 0x7d1   : > { %v3132_v3 = vsel %vm3131_vm9, %v3854_v49, %v3128_v2 }
 0x7d2   : > { %v3137_v58 = vsel %vm3134_vm13, %v3136_v25, %v3132_v3  ;;  %v3226_v51 = vadd.f32 %v3806_v19, %v3216_v23 }
 0x7d3   : > { %v3146_v17 = vmul.f32 %v3137_v58, %v2985_v16 }
 0x7d4   : > { %3234 = vst.msk [vmem:[%s6197_s7] sm:$0xff] %vm2902_vm14, %v3226_v51 }
 0x7d5   : > { %3614 = vmatmul.msk.f32.gmra.mxu1 %vm2902_vm14, %v3146_v17 }
 0x7d7   : > { %v3195_v29 = vpop.f32.mrf.mxu1 }
 0x7d8   : > { %v3217_v48 = vadd.f32 %v3195_v29, %v5951_v35 }
 0x7da   : > { %v3227_v39 = vadd.f32 %v3806_v19, %v3217_v48 }
 0x7dc   : > { %3235 = vst.msk [vmem:[%s6197_s7 + $0x8] sm:$0xff] %vm2902_vm14, %v3227_v39 }
 0x7df   : > { %v3198_v34 = vpop.f32.mrf.mxu1 }
 0x7e0   : > { %v3218_v27 = vadd.f32 %v3198_v34, %v5961_v6 }
 0x7e2   : > { %v3228_v60 = vadd.f32 %v3806_v19, %v3218_v27 }
 0x7e4   : > { %3236 = vst.msk [vmem:[%s6197_s7 + $0x10] sm:$0xff] %vm2902_vm14, %v3228_v60 }
 0x7e7   : > { %v3201_v8 = vpop.f32.mrf.mxu1 }
 0x7e8   : > { %v3219_v38 = vadd.f32 %v3201_v8, %v5971_v1 }
 0x7ea   : > { %v3229_v42 = vadd.f32 %v3806_v19, %v3219_v38 }
 0x7ec   : > { %3237 = vst.msk [vmem:[%s6197_s7 + $0x18] sm:$0xff] %vm2902_vm14, %v3229_v42 }
 0x7ef   : > { %v3204_v35 = vpop.f32.mrf.mxu1 }
 0x7f0   : > { %v3220_v61 = vadd.f32 %v3204_v35, %v5977_v20 }
 0x7f2   : > { %v3230_v18 = vadd.f32 %v3806_v19, %v3220_v61 }
 0x7f4   : > { %3238 = vst.msk [vmem:[%s6197_s7 + $0x20] sm:$0xff] %vm2902_vm14, %v3230_v18 }
 0x7f7   : > { %v3207_v6 = vpop.f32.mrf.mxu1 }
 0x7f8   : > { %v3221_v28 = vadd.f32 %v3207_v6, %v5953_v43 }
 0x7fa   : > { %v3231_v41 = vadd.f32 %v3806_v19, %v3221_v28 }
 0x7fc   : > { %3239 = vst.msk [vmem:[%s6197_s7 + $0x28] sm:$0xff] %vm2902_vm14, %v3231_v41 }
 0x7ff   : > { %v3210_v1 = vpop.f32.mrf.mxu1 }
 0x800   : > { %v3222_v11 = vadd.f32 %v3210_v1, %v5964_v10  ;;  %v3327_v10 = vld [vmem:[#allocation6 + $0x2] sm:$0x1] }
 0x802   : > { %v3232_v59 = vadd.f32 %v3806_v19, %v3222_v11 }
 0x804   : > { %3240 = vst.msk [vmem:[%s6197_s7 + $0x30] sm:$0xff] %vm2902_vm14, %v3232_v59 }
 0x840   : > { %v3262_v43 = vpop.trf.xlu1 }
 0x852   : > { %v3213_v20 = vpop.f32.mrf.mxu1 }
 0x853   : > { %v3223_v45 = vadd.f32 %v3213_v20, %v5985_v63  ;;  %v3328_v63 = vmax.f32 %v3327_v10, 1.0 }
 0x855   : > { %v3233_v40 = vadd.f32 %v3806_v19, %v3223_v45  ;;  %3855 = vrcp.f32 %v3328_v63  ;;  %v3340_v47 = vand.u32 2147483648, %v3328_v63  ;;  %vm3334_vm2 = vweird.f32 %v3328_v63 }
 0x856   : > { %v3338_v36 = vand.u32 2147483647, %v3328_v63 }
 0x857   : > { %3241 = vst.msk [vmem:[%s6197_s7 + $0x38] sm:$0xff] %vm2902_vm14, %v3233_v40  ;;  %3615 = vmatpush.xpose.msk.msra.mxu2 %vm2902_vm14, %v3233_v40  ;;  %v3341_v57 = vor.u32 1.1754944e-38, %v3340_v47 }
 0x858   : > { %vm3339_vm3 = vcmp.eq.f32.partialorder %v3338_v36, 8.507059e+37 }
 0x85b   : > { %3616 = vmatpush.xpose.msk.msra.mxu2 %vm2902_vm14, %v3232_v59  ;;  %v3856_v33 = vpop.eup %3855 }
 0x85c   : > { %v3330_v16 = vmul.f32 %v3856_v33, %v3328_v63  ;;  %vm3335_vm11 = vweird.f32 %v3856_v33 }
 0x85d   : > { %vm3336_vm15 = vmor %vm3334_vm2, %vm3335_vm11 }
 0x85e   : > { %v3331_v62 = vsub.f32 1.0, %v3330_v16 }
 0x85f   : > { %3617 = vmatpush.xpose.msk.msra.mxu2 %vm2902_vm14, %v3231_v41 }
 0x860   : > { %v3332_v5 = vmul.f32 %v3856_v33, %v3331_v62 }
 0x862   : > { %v3333_v37 = vadd.f32 %v3856_v33, %v3332_v5 }
 0x863   : > { %3618 = vmatpush.xpose.msk.msra.mxu2 %vm2902_vm14, %v3230_v18 }
 0x864   : > { %v3337_v49 = vsel %vm3336_vm15, %v3856_v33, %v3333_v37 }
 0x865   : > { %v3342_v7 = vsel %vm3339_vm3, %v3341_v57, %v3337_v49 }
 0x866   : > { %3345 = vst.msk [vmem:[#allocation6 + $0x2] sm:$0x1] %vm3344_vm1, %v3342_v7 }
 0x867   : > { %3619 = vmatpush.xpose.msk.msra.mxu2 %vm2902_vm14, %v3229_v42 }
 0x86b   : > { %3620 = vmatpush.xpose.msk.msra.mxu2 %vm2902_vm14, %v3228_v60 }
 0x86f   : > { %3621 = vmatpush.xpose.msk.msra.mxu2 %vm2902_vm14, %v3227_v39 }
 0x873   : > { %3622 = vmatpush.xpose.msk.msra.mxu2 %vm2902_vm14, %v3226_v51 }
 0x876   : > { %3623 = vmatmul.msk.f32.vlgmr.msra.gmra.mxu2 %vm2902_vm14, %v3262_v43  ;;  %vm3325_vm14 = vcmask 517120  }
 0x8f9   : > { %v3322_v12 = vpop.f32.mrf.mxu2 }
 0x8fa   : > { %3326 = vst.msk [vmem:[#allocation6] sm:$0x3] %vm3325_vm14, %v3322_v12 }
 0x8fb PF: > { %p3347_p12 = scmp.eq.s32.totalorder %s3916_s28, 1  ;;  %p3624_p13 = scmp.ne.s32.totalorder %s3916_s28, 1 }
 0x8fd   : > { %3350 = sbr.rel (%p3624_p13) target bundleno = 2577 (0xa11), region = 64 }
 0x902   : > { %v3943_v4 = vmov 1.0   ;;  %vm6508_vm12 = vnez %v6456_v24  ;;  %vm6509_vm4 = vnez %v6472_v32  ;;  %vm6510_vm5 = vnez %v6470_v52  ;;  %v3351_v56 = vld [vmem:[#allocation6] sm:$0x1] }
 0x903   : > { %3625 = vmatpush.msk.msra.mxu0 %vm5625_vm8, %v3943_v4  ;;  %3634 = vmatpush.xpose.msk.msra.mxu1 %vm5557_vm0, %v3943_v4  ;;  %vm6511_vm8 = vnez %v6454_v31  ;;  %vm6512_vm0 = vnez %v6468_v0  ;;  %vm6514_vm10 = vnez %v6452_v9  ;;  %vm6515_vm9 = vnez %v6461_v26  ;;  %v3376_v9 = vld [vmem:[#allocation6 + $0x3] sm:$0x1] }
 0x904   : > { %vm6516_vm13 = vnez %v6450_v50  ;;  %vm6517_vm2 = vnez %v6448_v44  ;;  %vm6518_vm11 = vnez %v6446_v15  ;;  %vm6519_vm15 = vnez %v6444_v30 }
 0x905   : > { %3626 = vmatpush.msk.msra.mxu0 %vm5619_vm6, %v3943_v4  ;;  %vm6513_vm6 = vnez %v6465_v21  ;;  %vm3398_vm3 = vcmask 516096  }
 0x907   : > { %3627 = vmatpush.msk.msra.mxu0 %vm5613_vm7, %v3943_v4  ;;  %3635 = vmatpush.xpose.msk.msra.mxu1 %vm6508_vm12, %v3943_v4  ;;  %vm3352_vm7 = vcmask 523264  }
 0x909   : > { %3628 = vmatpush.msk.msra.mxu0 %vm6509_vm4, %v3943_v4 }
 0x90b   : > { %3629 = vmatpush.msk.msra.mxu0 %vm6510_vm5, %v3943_v4  ;;  %3636 = vmatpush.xpose.msk.msra.mxu1 %vm6511_vm8, %v3943_v4 }
 0x90d   : > { %3630 = vmatpush.msk.msra.mxu0 %vm6512_vm0, %v3943_v4 }
 0x90f   : > { %3631 = vmatpush.msk.msra.mxu0 %vm6513_vm6, %v3943_v4  ;;  %3637 = vmatpush.xpose.msk.msra.mxu1 %vm6514_vm10, %v3943_v4 }
 0x911   : > { %3632 = vmatpush.msk.msra.mxu0 %vm6515_vm9, %v3943_v4 }
 0x912   : > { %3633 = vmatmul.msk.f32.vlgmr.msra.gmra.mxu0 %vm3352_vm7, %v3351_v56 }
 0x913   : > { %3638 = vmatpush.xpose.msk.msra.mxu1 %vm6516_vm13, %v3943_v4 }
 0x917   : > { %3639 = vmatpush.xpose.msk.msra.mxu1 %vm6517_vm2, %v3943_v4 }
 0x91b   : > { %3640 = vmatpush.xpose.msk.msra.mxu1 %vm6518_vm11, %v3943_v4 }
 0x91f   : > { %3641 = vmatpush.xpose.msk.msra.mxu1 %vm6519_vm15, %v3943_v4 }
 0x98f   : > { %v3373_v31 = vpop.f32.mrf.mxu0 }
 0x990   : > { %3393 = vmatmul.f32.vlgmr.msra.gmra.mxu1 %v3373_v31 }
 0xa0d   : > { %v3394_v24 = vpop.f32.mrf.mxu1 }
 0xa0e   : > { %v3397_v26 = vadd.f32 %v3394_v24, %v3376_v9 }
 0xa10   : > { %3399 = vst.msk [vmem:[#allocation6 + $0x3] sm:$0x1] %vm3398_vm3, %v3397_v26 }
 0xa11 PF: > { %p3400_p0 = pnand %p3347_p12, %p2665_p10 }
 0xa13   : > { %3403 = sbr.rel (%p3400_p0) target bundleno = 2706 (0xa92), region = 68 }
 0xa18   : > { %v3407_v15 = vld [vmem:[%s6195_s5 + $0x6] sm:$0x1]  ;;  %v3944_v30 = vmov 0   ;;  %v3404_v44 = vld [vmem:[#allocation6 + $0x3] sm:$0x1]  ;;  %vm3416_vm1 = vcmask 516096  }
 0xa19   : > { %3857 = vset.pattern.permute.xlu0 %v3944_v30  ;;  %v3405_v50 = vld [vmem:[#allocation6 + $0x2] sm:$0x1]  ;;  %v3414_v0 = vld [vmem:[#allocation6 + $0x1] sm:$0x1] }
 0xa1a   : > { %3410 = vperm.xlu0 %3857, %v3407_v15   ;;  %v3406_v21 = vmul.f32 %v3405_v50, %v3404_v44 }
 0xa8c   : > { %v3411_v52 = vpop.permute.xlu0 %3410 }
 0xa8d   : > { %v3413_v32 = vadd.f32 %v3411_v52, %v3406_v21 }
 0xa8f   : > { %v3415_v46 = vadd.f32 %v3414_v0, %v3413_v32 }
 0xa91   : > { %3417 = vst.msk [vmem:[#allocation7] sm:$0x1] %vm3416_vm1, %v3415_v46 }
 0xa92 PF: > { %p3674_p1 = scmp.eq.s32.totalorder %s3490_s10, 3  ;;  %s3429_s24 = sshll.u32 %s6198_s8, 4  ;;  %s3430_s24 = int_to_ptr.hbm [resolvable:$true] %s3429_s24 }
 0xa93   : > { %s3945_s26 = smov [#allocation7]  }
 0xa94   : > { %s3427_s13 = sshll.u32 %s3945_s26, 4  ;;  %s3428_s13 = int_to_ptr.vmem [resolvable:$true] %s3427_s13 }
 0xa95   : > { %3671 = dma.vmem_to_hbm [thread:$0]  (%p3674_p1), %s3428_s13, 16, %s3430_s24, [#allocation8]  }
 0xa96   : > { %3907 = dma.done.wait (%p3674_p1), [#allocation8], 16  }
 0xa97   : > { %3909 = vsyncadd (%p3674_p1), [#allocation8], 4294967280 }
 0xa98 PF: > { %s20_s9 = sadd.s32 1, %s3928_s9   ;;  %s6520_s27 = smov %s3920_s29 }
 0xa99   : > { %p17_p2 = scmp.ge.s32.totalorder %s20_s9, 6   ;;  %s6521_s28 = smov %s3924_s30 }
 0xa9a   : > { %s6522_s29 = smov %s6525_s11  ;;  %s6523_s30 = smov %s6529_s12 }
 0xa9b   :  { %19 = sbr.rel (!%p17_p2) target bundleno = 3 (0x3), region = 106 }
 0xaa0   :  { %3446 = vsyncpa [#allocation8], 1 }
 0xaa1   :  { %3448 = vsyncpa [#allocation8 + $0x1], 1 }

</bundles_post_ra>
